<compile_context>
chip_gen: v7x
topology: tpu7x:2x2x1
jax: 0.10.0
libtpu: 0.0.40
codegen_flags: <defaults>
</compile_context>

<pallas_src>
import math
import functools

import jax
import jax.numpy as jnp
from jax.experimental import pallas as pl
from jax.experimental.pallas import tpu as pltpu


# ----------------------------------------------------------------------------
# Fused kernel: whole ClassFormerDecoder forward for one batch element.
# ----------------------------------------------------------------------------
def _classformer_kernel(enc_ref, cls_ref,
                        wq_a_ref, wk_a_ref, wv_a_ref, woT_a_ref, bo_a_ref,
                        gN_ref, bN_ref,
                        wq_b_ref, wk_b_ref, wv_b_ref, woT_b_ref, bo_b_ref,
                        g1_ref, b1_ref,
                        w1T_ref, fb1_ref, w2T_ref, fb2_ref,
                        g2_ref, b2_ref,
                        wfcT_ref, bfc_ref,
                        o_ref, *, n_layers, n_heads, eps):
    f32 = jnp.float32
    enc = enc_ref[...]                       # (S, E)   encoder embeddings
    x = cls_ref[...]                         # (Sq, E)  cls query embedding
    E = x.shape[-1]
    dh = E // n_heads
    inv_sqrt_dh = 1.0 / math.sqrt(dh)

    def layer_norm(z, g, b):
        mean = jnp.mean(z, axis=-1, keepdims=True)
        var = jnp.mean((z - mean) * (z - mean), axis=-1, keepdims=True)
        return (z - mean) * jax.lax.rsqrt(var + eps) * g + b

    def mha(q_in, kv_in, wq, wk, wv, wo_t, bo):
        # Block-diagonal weights: one (S,E)@(E,E) matmul does all heads at once.
        qp = jnp.dot(q_in, wq, preferred_element_type=f32)    # (Sq, E)
        kp = jnp.dot(kv_in, wk, preferred_element_type=f32)   # (S,  E)
        vp = jnp.dot(kv_in, wv, preferred_element_type=f32)   # (S,  E)
        ctx = []
        for h in range(n_heads):                               # unrolled, tiny
            lo = h * dh
            qh = qp[:, lo:lo + dh]                             # (Sq, Dh)
            kh = kp[:, lo:lo + dh]                             # (S,  Dh)
            vh = vp[:, lo:lo + dh]                             # (S,  Dh)
            # q @ k^T without an explicit transpose: contract the Dh axes.
            prod = jax.lax.dot_general(
                qh, kh, (((1,), (1,)), ((), ())),
                preferred_element_type=f32) * inv_sqrt_dh      # (Sq, S)
            m = jnp.max(prod, axis=-1, keepdims=True)
            e = jnp.exp(prod - m)
            p = e * pl.reciprocal(jnp.sum(e, axis=-1, keepdims=True), approx=True)
            ctx.append(jnp.dot(p, vh, preferred_element_type=f32))
        concat = jnp.concatenate(ctx, axis=-1)                 # (Sq, E)
        return jnp.dot(concat, wo_t, preferred_element_type=f32) + bo

    for l in range(n_layers):                                  # static unroll
        # --- DecoderBlock: self-attention (mask is always None here) --------
        sa = mha(x, x, wq_a_ref[l], wk_a_ref[l], wv_a_ref[l],
                 woT_a_ref[l], bo_a_ref[l])
        query = layer_norm(sa + x, gN_ref[l], bN_ref[l])
        # --- TransformerBlock: cross-attention (key/value = enc) ------------
        ca = mha(query, enc, wq_b_ref[l], wk_b_ref[l], wv_b_ref[l],
                 woT_b_ref[l], bo_b_ref[l])
        n1 = layer_norm(ca + query, g1_ref[l], b1_ref[l])
        # --- feed-forward + residual + norm2 --------------------------------
        # TODO(synk): at production sizes tile the FFN hidden dim (Hd) with an
        #             accumulator so resident weights fit v7x's 64 MiB VMEM.
        hdn = jnp.maximum(
            jnp.dot(n1, w1T_ref[l], preferred_element_type=f32) + fb1_ref[l], 0.0)
        ffw = jnp.dot(hdn, w2T_ref[l], preferred_element_type=f32) + fb2_ref[l]
        x = layer_norm(ffw + n1, g2_ref[l], b2_ref[l])

    # fc_out: (Sq, E) @ (E, 1) + bias
    o_ref[...] = jnp.dot(x, wfcT_ref[...], preferred_element_type=f32) + bfc_ref[...]


# ----------------------------------------------------------------------------
# Wrapper: weight re-packing (block-diag QKV, pre-transposed mats) + pallas_call
# ----------------------------------------------------------------------------
def classformer_decoder(enc, params):
    B, S, E = enc.shape
    layers = params["layers"]
    L = len(layers)
    H = layers[0]["attn_dec"]["n_heads"]
    num_cls = params["query_emb"].shape[1]
    Hd = layers[0]["ffn"]["w1"].shape[0]

    eyeH = jnp.eye(H, dtype=jnp.float32)

    def blkdiag(w):          # per-head Linear weight (Dh,Dh) -> (E,E); x @ out == per-head x @ w.T
        return jnp.kron(eyeH, w.T)

    def stack(fn):
        return jnp.stack([fn(lp) for lp in layers], axis=0)

    def ln_pair(name):
        return (stack(lambda lp: lp[name]["g"].reshape(1, E)),
                stack(lambda lp: lp[name]["b"].reshape(1, E)))

    wq_a = stack(lambda lp: blkdiag(lp["attn_dec"]["wq"]))
    wk_a = stack(lambda lp: blkdiag(lp["attn_dec"]["wk"]))
    wv_a = stack(lambda lp: blkdiag(lp["attn_dec"]["wv"]))
    woT_a = stack(lambda lp: lp["attn_dec"]["wo"].T)
    bo_a = stack(lambda lp: lp["attn_dec"]["bo"].reshape(1, E))
    gN, bN = ln_pair("norm_dec")

    wq_b = stack(lambda lp: blkdiag(lp["attn_tb"]["wq"]))
    wk_b = stack(lambda lp: blkdiag(lp["attn_tb"]["wk"]))
    wv_b = stack(lambda lp: blkdiag(lp["attn_tb"]["wv"]))
    woT_b = stack(lambda lp: lp["attn_tb"]["wo"].T)
    bo_b = stack(lambda lp: lp["attn_tb"]["bo"].reshape(1, E))
    g1, b1 = ln_pair("norm1")

    w1T = stack(lambda lp: lp["ffn"]["w1"].T)             # (L, E, Hd)
    fb1 = stack(lambda lp: lp["ffn"]["b1"].reshape(1, Hd))
    w2T = stack(lambda lp: lp["ffn"]["w2"].T)             # (L, Hd, E)
    fb2 = stack(lambda lp: lp["ffn"]["b2"].reshape(1, E))
    g2, b2 = ln_pair("norm2")

    wfcT = params["fc_w"].T                               # (E, 1)
    bfc = params["fc_b"].reshape(1, 1)                    # (1, 1)

    weights = [wq_a, wk_a, wv_a, woT_a, bo_a, gN, bN,
               wq_b, wk_b, wv_b, woT_b, bo_b, g1, b1,
               w1T, fb1, w2T, fb2, g2, b2,
               wfcT, bfc]

    def const_spec(a):
        nd = a.ndim
        return pl.BlockSpec(a.shape, lambda b, _n=nd: (0,) * _n)

    in_specs = ([pl.BlockSpec((None, S, E), lambda b: (b, 0, 0)),
                 pl.BlockSpec((num_cls, E), lambda b: (0, 0))]
                + [const_spec(a) for a in weights])

    out = pl.pallas_call(
        functools.partial(_classformer_kernel, n_layers=L, n_heads=H, eps=1e-5),
        out_shape=jax.ShapeDtypeStruct((B, num_cls, 1), jnp.float32),
        grid=(B,),
        in_specs=in_specs,
        out_specs=pl.BlockSpec((None, num_cls, 1), lambda b: (b, 0, 0)),
        compiler_params=pltpu.CompilerParams(dimension_semantics=("parallel",)),
    )(enc, params["query_emb"][0], *weights)

    return jnp.squeeze(out)     # torch.squeeze(out)


# ----------------------------------------------------------------------------
# Pure-JAX reference (mirrors the PyTorch module exactly) for validation.
# ----------------------------------------------------------------------------
_HP = jax.lax.Precision.HIGHEST


def _layer_norm_ref(z, g, b, eps=1e-5):
    mean = jnp.mean(z, axis=-1, keepdims=True)
    var = jnp.mean((z - mean) ** 2, axis=-1, keepdims=True)
    return (z - mean) / jnp.sqrt(var + eps) * g + b


def _mha_ref(key, query, value, p, mask=None):
    B, S, E = key.shape
    Sq = query.shape[1]
    H = p["n_heads"]
    Dh = E // H
    kh = key.reshape(B, S, H, Dh)
    qh = query.reshape(B, Sq, H, Dh)
    vh = value.reshape(B, S, H, Dh)
    k = jnp.einsum("bshd,od->bsho", kh, p["wk"], precision=_HP).transpose(0, 2, 1, 3)
    q = jnp.einsum("bshd,od->bsho", qh, p["wq"], precision=_HP).transpose(0, 2, 1, 3)
    v = jnp.einsum("bshd,od->bsho", vh, p["wv"], precision=_HP).transpose(0, 2, 1, 3)
    prod = jnp.einsum("bhqd,bhkd->bhqk", q, k, precision=_HP)
    if mask is not None:
        prod = jnp.where(mask == 0, 0.0, prod)
    prod = prod / math.sqrt(Dh)
    scores = jax.nn.softmax(prod, axis=-1)
    ctx = jnp.einsum("bhqk,bhkd->bhqd", scores, v, precision=_HP)
    concat = ctx.transpose(0, 2, 1, 3).reshape(B, Sq, E)
    return jnp.einsum("bqe,oe->bqo", concat, p["wo"], precision=_HP) + p["bo"]


def classformer_ref(enc, params):
    B = enc.shape[0]
    x = jnp.broadcast_to(params["query_emb"],
                         (B,) + params["query_emb"].shape[1:])
    for lp in params["layers"]:
        sa = _mha_ref(x, x, x, lp["attn_dec"], None)
        query = _layer_norm_ref(sa + x, lp["norm_dec"]["g"], lp["norm_dec"]["b"])
        att = _mha_ref(enc, query, enc, lp["attn_tb"], None)
        n1 = _layer_norm_ref(att + query, lp["norm1"]["g"], lp["norm1"]["b"])
        h = jax.nn.relu(jnp.einsum("bqe,he->bqh", n1, lp["ffn"]["w1"],
                                   precision=_HP) + lp["ffn"]["b1"])
        f = jnp.einsum("bqh,eh->bqe", h, lp["ffn"]["w2"],
                       precision=_HP) + lp["ffn"]["b2"]
        x = _layer_norm_ref(f + n1, lp["norm2"]["g"], lp["norm2"]["b"])
    out = jnp.einsum("bqe,oe->bqo", x, params["fc_w"], precision=_HP) + params["fc_b"]
    return jnp.squeeze(out)


# ----------------------------------------------------------------------------
# Deterministic parameter init (shapes from the modules' __init__).
# ----------------------------------------------------------------------------
def init_params(rng, E, H, expansion, num_layers, num_cls):
    Dh = E // H
    Hd = expansion * E
    keys = jax.random.split(rng, num_layers + 2)

    def nrm(k, shape, scale=0.05):
        return scale * jax.random.normal(k, shape, dtype=jnp.float32)

    def mha_p(k):
        ks = jax.random.split(k, 5)
        return dict(n_heads=H,
                    wq=nrm(ks[0], (Dh, Dh)), wk=nrm(ks[1], (Dh, Dh)),
                    wv=nrm(ks[2], (Dh, Dh)), wo=nrm(ks[3], (E, E)),
                    bo=nrm(ks[4], (E,)))

    def ln_p(k):
        ks = jax.random.split(k, 2)
        return dict(g=1.0 + 0.1 * jax.random.normal(ks[0], (E,), jnp.float32),
                    b=0.1 * jax.random.normal(ks[1], (E,), jnp.float32))

    def layer_p(k):
        ks = jax.random.split(k, 9)
        return dict(
            attn_dec=mha_p(ks[0]), norm_dec=ln_p(ks[1]),
            attn_tb=mha_p(ks[2]), norm1=ln_p(ks[3]), norm2=ln_p(ks[4]),
            ffn=dict(w1=nrm(ks[5], (Hd, E)), b1=nrm(ks[6], (Hd,)),
                     w2=nrm(ks[7], (E, Hd)), b2=nrm(ks[8], (E,))))

    layer_list = [layer_p(keys[i]) for i in range(num_layers)]
    qk = keys[num_layers]
    fks = jax.random.split(keys[num_layers + 1], 2)
    return dict(query_emb=jax.random.normal(qk, (1, num_cls, E), jnp.float32),
                layers=layer_list,
                fc_w=nrm(fks[0], (1, E)),
                fc_b=nrm(fks[1], (1,)))


if __name__ == "__main__":
    # batch, enc seq, embed_dim, n_heads, expansion, num_layers, num_cls
    B, S, E, H, EXP, L, NCLS = 2, 8, 32, 8, 4, 2, 1

    rng = jax.random.PRNGKey(0)
    r_params, r_enc = jax.random.split(rng)
    params = init_params(r_params, E, H, EXP, L, NCLS)
    enc_ebd = jax.random.normal(r_enc, (B, S, E), dtype=jnp.float32)

    out = classformer_decoder(enc_ebd, params)
    out = jax.block_until_ready(out)

    ref = classformer_ref(enc_ebd, params)
    assert out.shape == ref.shape == (B,), (out.shape, ref.shape)
    assert jnp.allclose(out, ref, atol=2e-3, rtol=2e-3), (
        float(jnp.max(jnp.abs(out - ref))))

    print("KERNEL_OK")
</pallas_src>

<mosaic_0001>
module attributes {stable_mosaic.version = 11 : i64} {
  func.func @_classformer_kernel(%arg0: i32, %arg1: memref<1x8x32xf32, #tpu.memory_space<vmem>>, %arg2: memref<1x32xf32, #tpu.memory_space<vmem>>, %arg3: memref<2x32x32xf32, #tpu.memory_space<vmem>>, %arg4: memref<2x32x32xf32, #tpu.memory_space<vmem>>, %arg5: memref<2x32x32xf32, #tpu.memory_space<vmem>>, %arg6: memref<2x32x32xf32, #tpu.memory_space<vmem>>, %arg7: memref<2x1x32xf32, #tpu.memory_space<vmem>>, %arg8: memref<2x1x32xf32, #tpu.memory_space<vmem>>, %arg9: memref<2x1x32xf32, #tpu.memory_space<vmem>>, %arg10: memref<2x32x32xf32, #tpu.memory_space<vmem>>, %arg11: memref<2x32x32xf32, #tpu.memory_space<vmem>>, %arg12: memref<2x32x32xf32, #tpu.memory_space<vmem>>, %arg13: memref<2x32x32xf32, #tpu.memory_space<vmem>>, %arg14: memref<2x1x32xf32, #tpu.memory_space<vmem>>, %arg15: memref<2x1x32xf32, #tpu.memory_space<vmem>>, %arg16: memref<2x1x32xf32, #tpu.memory_space<vmem>>, %arg17: memref<2x32x128xf32, #tpu.memory_space<vmem>>, %arg18: memref<2x1x128xf32, #tpu.memory_space<vmem>>, %arg19: memref<2x128x32xf32, #tpu.memory_space<vmem>>, %arg20: memref<2x1x32xf32, #tpu.memory_space<vmem>>, %arg21: memref<2x1x32xf32, #tpu.memory_space<vmem>>, %arg22: memref<2x1x32xf32, #tpu.memory_space<vmem>>, %arg23: memref<32x1xf32, #tpu.memory_space<vmem>>, %arg24: memref<1x1xf32, #tpu.memory_space<vmem>>, %arg25: memref<1x1x1xf32, #tpu.memory_space<vmem>>) attributes {dimension_semantics = [#tpu.dimension_semantics<parallel>], iteration_bounds = array<i64: 2>, scalar_prefetch = 0 : i64, scratch_operands = 0 : i64, tpu.core_type = #tpu.core_type<tc>, window_params = [{transform_indices = @transform_0, window_bounds = array<i64: 1, 8, 32>}, {pipeline_mode = #tpu.pipeline_mode<synchronous>, transform_indices = @transform_1, window_bounds = array<i64: 1, 32>}, {pipeline_mode = #tpu.pipeline_mode<synchronous>, transform_indices = @transform_2, window_bounds = array<i64: 2, 32, 32>}, {pipeline_mode = #tpu.pipeline_mode<synchronous>, transform_indices = @transform_3, window_bounds = array<i64: 2, 32, 32>}, {pipeline_mode = #tpu.pipeline_mode<synchronous>, transform_indices = @transform_4, window_bounds = array<i64: 2, 32, 32>}, {pipeline_mode = #tpu.pipeline_mode<synchronous>, transform_indices = @transform_5, window_bounds = array<i64: 2, 32, 32>}, {pipeline_mode = #tpu.pipeline_mode<synchronous>, transform_indices = @transform_6, window_bounds = array<i64: 2, 1, 32>}, {pipeline_mode = #tpu.pipeline_mode<synchronous>, transform_indices = @transform_7, window_bounds = array<i64: 2, 1, 32>}, {pipeline_mode = #tpu.pipeline_mode<synchronous>, transform_indices = @transform_8, window_bounds = array<i64: 2, 1, 32>}, {pipeline_mode = #tpu.pipeline_mode<synchronous>, transform_indices = @transform_9, window_bounds = array<i64: 2, 32, 32>}, {pipeline_mode = #tpu.pipeline_mode<synchronous>, transform_indices = @transform_10, window_bounds = array<i64: 2, 32, 32>}, {pipeline_mode = #tpu.pipeline_mode<synchronous>, transform_indices = @transform_11, window_bounds = array<i64: 2, 32, 32>}, {pipeline_mode = #tpu.pipeline_mode<synchronous>, transform_indices = @transform_12, window_bounds = array<i64: 2, 32, 32>}, {pipeline_mode = #tpu.pipeline_mode<synchronous>, transform_indices = @transform_13, window_bounds = array<i64: 2, 1, 32>}, {pipeline_mode = #tpu.pipeline_mode<synchronous>, transform_indices = @transform_14, window_bounds = array<i64: 2, 1, 32>}, {pipeline_mode = #tpu.pipeline_mode<synchronous>, transform_indices = @transform_15, window_bounds = array<i64: 2, 1, 32>}, {pipeline_mode = #tpu.pipeline_mode<synchronous>, transform_indices = @transform_16, window_bounds = array<i64: 2, 32, 128>}, {pipeline_mode = #tpu.pipeline_mode<synchronous>, transform_indices = @transform_17, window_bounds = array<i64: 2, 1, 128>}, {pipeline_mode = #tpu.pipeline_mode<synchronous>, transform_indices = @transform_18, window_bounds = array<i64: 2, 128, 32>}, {pipeline_mode = #tpu.pipeline_mode<synchronous>, transform_indices = @transform_19, window_bounds = array<i64: 2, 1, 32>}, {pipeline_mode = #tpu.pipeline_mode<synchronous>, transform_indices = @transform_20, window_bounds = array<i64: 2, 1, 32>}, {pipeline_mode = #tpu.pipeline_mode<synchronous>, transform_indices = @transform_21, window_bounds = array<i64: 2, 1, 32>}, {pipeline_mode = #tpu.pipeline_mode<synchronous>, transform_indices = @transform_22, window_bounds = array<i64: 32, 1>}, {pipeline_mode = #tpu.pipeline_mode<synchronous>, transform_indices = @transform_23, window_bounds = array<i64: 1, 1>}, {transform_indices = @transform_24, window_bounds = array<i64: 1, 1, 1>}]} {
    %c0 = arith.constant 0 : index
    %c0_0 = arith.constant 0 : index
    %c0_1 = arith.constant 0 : index
    %0 = vector.load %arg1[%c0, %c0_0, %c0_1] : memref<1x8x32xf32, #tpu.memory_space<vmem>>, vector<1x8x32xf32>
    %1 = vector.shape_cast %0 : vector<1x8x32xf32> to vector<8x32xf32>
    %c0_2 = arith.constant 0 : index
    %c0_3 = arith.constant 0 : index
    %2 = vector.load %arg2[%c0_2, %c0_3] : memref<1x32xf32, #tpu.memory_space<vmem>>, vector<1x32xf32>
    %c0_4 = arith.constant 0 : index
    %c0_5 = arith.constant 0 : index
    %c0_6 = arith.constant 0 : index
    %3 = vector.load %arg3[%c0_4, %c0_5, %c0_6] : memref<2x32x32xf32, #tpu.memory_space<vmem>>, vector<1x32x32xf32>
    %4 = vector.shape_cast %3 : vector<1x32x32xf32> to vector<32x32xf32>
    %c0_7 = arith.constant 0 : index
    %c0_8 = arith.constant 0 : index
    %c0_9 = arith.constant 0 : index
    %5 = vector.load %arg4[%c0_7, %c0_8, %c0_9] : memref<2x32x32xf32, #tpu.memory_space<vmem>>, vector<1x32x32xf32>
    %6 = vector.shape_cast %5 : vector<1x32x32xf32> to vector<32x32xf32>
    %c0_10 = arith.constant 0 : index
    %c0_11 = arith.constant 0 : index
    %c0_12 = arith.constant 0 : index
    %7 = vector.load %arg5[%c0_10, %c0_11, %c0_12] : memref<2x32x32xf32, #tpu.memory_space<vmem>>, vector<1x32x32xf32>
    %8 = vector.shape_cast %7 : vector<1x32x32xf32> to vector<32x32xf32>
    %c0_13 = arith.constant 0 : index
    %c0_14 = arith.constant 0 : index
    %c0_15 = arith.constant 0 : index
    %9 = vector.load %arg6[%c0_13, %c0_14, %c0_15] : memref<2x32x32xf32, #tpu.memory_space<vmem>>, vector<1x32x32xf32>
    %10 = vector.shape_cast %9 : vector<1x32x32xf32> to vector<32x32xf32>
    %c0_16 = arith.constant 0 : index
    %c0_17 = arith.constant 0 : index
    %c0_18 = arith.constant 0 : index
    %11 = vector.load %arg7[%c0_16, %c0_17, %c0_18] : memref<2x1x32xf32, #tpu.memory_space<vmem>>, vector<1x1x32xf32>
    %12 = vector.shape_cast %11 : vector<1x1x32xf32> to vector<1x32xf32>
    %cst = arith.constant dense<0.000000e+00> : vector<1x32xf32>
    %13 = tpu.matmul %2, %4, %cst {dimension_numbers = #tpu.dot_dimension_numbers<[1], [0], [0], [1], [0, 0, 1, 1], [], []>} : vector<1x32xf32>, vector<32x32xf32>, vector<1x32xf32> -> vector<1x32xf32>
    %cst_19 = arith.constant dense<0.000000e+00> : vector<1x32xf32>
    %14 = tpu.matmul %2, %6, %cst_19 {dimension_numbers = #tpu.dot_dimension_numbers<[1], [0], [0], [1], [0, 0, 1, 1], [], []>} : vector<1x32xf32>, vector<32x32xf32>, vector<1x32xf32> -> vector<1x32xf32>
    %cst_20 = arith.constant dense<0.000000e+00> : vector<1x32xf32>
    %15 = tpu.matmul %2, %8, %cst_20 {dimension_numbers = #tpu.dot_dimension_numbers<[1], [0], [0], [1], [0, 0, 1, 1], [], []>} : vector<1x32xf32>, vector<32x32xf32>, vector<1x32xf32> -> vector<1x32xf32>
    %16 = vector.extract_strided_slice %13 {offsets = [0, 0], sizes = [1, 4], strides = [1, 1]} : vector<1x32xf32> to vector<1x4xf32>
    %17 = vector.extract_strided_slice %14 {offsets = [0, 0], sizes = [1, 4], strides = [1, 1]} : vector<1x32xf32> to vector<1x4xf32>
    %18 = vector.extract_strided_slice %15 {offsets = [0, 0], sizes = [1, 4], strides = [1, 1]} : vector<1x32xf32> to vector<1x4xf32>
    %cst_21 = arith.constant dense<0.000000e+00> : vector<1x1xf32>
    %19 = tpu.matmul %16, %17, %cst_21 {dimension_numbers = #tpu.dot_dimension_numbers<[1], [1], [0], [0], [0, 0, 1, 0], [], []>} : vector<1x4xf32>, vector<1x4xf32>, vector<1x1xf32> -> vector<1x1xf32>
    %cst_22 = arith.constant 5.000000e-01 : f32
    %20 = vector.broadcast %cst_22 : f32 to vector<1x1xf32>
    %21 = arith.mulf %19, %20 : vector<1x1xf32>
    %cst_23 = arith.constant dense<0xFF800000> : vector<1xf32>
    %22 = vector.multi_reduction <maximumf>, %21, %cst_23 [1] : vector<1x1xf32> to vector<1xf32>
    %23 = vector.shape_cast %22 : vector<1xf32> to vector<1x1xf32>
    %24 = arith.subf %21, %23 : vector<1x1xf32>
    %25 = math.exp %24 : vector<1x1xf32>
    %cst_24 = arith.constant dense<0.000000e+00> : vector<1xf32>
    %26 = vector.multi_reduction <add>, %25, %cst_24 [1] : vector<1x1xf32> to vector<1xf32>
    %27 = vector.shape_cast %26 : vector<1xf32> to vector<1x1xf32>
    %28 = tpu.reciprocal %27 {approx = true} : vector<1x1xf32> -> vector<1x1xf32>
    %29 = arith.mulf %25, %28 : vector<1x1xf32>
    %cst_25 = arith.constant dense<0.000000e+00> : vector<1x4xf32>
    %30 = tpu.matmul %29, %18, %cst_25 {dimension_numbers = #tpu.dot_dimension_numbers<[1], [0], [0], [1], [0, 0, 1, 1], [], []>} : vector<1x1xf32>, vector<1x4xf32>, vector<1x4xf32> -> vector<1x4xf32>
    %31 = vector.extract_strided_slice %13 {offsets = [0, 4], sizes = [1, 4], strides = [1, 1]} : vector<1x32xf32> to vector<1x4xf32>
    %32 = vector.extract_strided_slice %14 {offsets = [0, 4], sizes = [1, 4], strides = [1, 1]} : vector<1x32xf32> to vector<1x4xf32>
    %33 = vector.extract_strided_slice %15 {offsets = [0, 4], sizes = [1, 4], strides = [1, 1]} : vector<1x32xf32> to vector<1x4xf32>
    %cst_26 = arith.constant dense<0.000000e+00> : vector<1x1xf32>
    %34 = tpu.matmul %31, %32, %cst_26 {dimension_numbers = #tpu.dot_dimension_numbers<[1], [1], [0], [0], [0, 0, 1, 0], [], []>} : vector<1x4xf32>, vector<1x4xf32>, vector<1x1xf32> -> vector<1x1xf32>
    %cst_27 = arith.constant 5.000000e-01 : f32
    %35 = vector.broadcast %cst_27 : f32 to vector<1x1xf32>
    %36 = arith.mulf %34, %35 : vector<1x1xf32>
    %cst_28 = arith.constant dense<0xFF800000> : vector<1xf32>
    %37 = vector.multi_reduction <maximumf>, %36, %cst_28 [1] : vector<1x1xf32> to vector<1xf32>
    %38 = vector.shape_cast %37 : vector<1xf32> to vector<1x1xf32>
    %39 = arith.subf %36, %38 : vector<1x1xf32>
    %40 = math.exp %39 : vector<1x1xf32>
    %cst_29 = arith.constant dense<0.000000e+00> : vector<1xf32>
    %41 = vector.multi_reduction <add>, %40, %cst_29 [1] : vector<1x1xf32> to vector<1xf32>
    %42 = vector.shape_cast %41 : vector<1xf32> to vector<1x1xf32>
    %43 = tpu.reciprocal %42 {approx = true} : vector<1x1xf32> -> vector<1x1xf32>
    %44 = arith.mulf %40, %43 : vector<1x1xf32>
    %cst_30 = arith.constant dense<0.000000e+00> : vector<1x4xf32>
    %45 = tpu.matmul %44, %33, %cst_30 {dimension_numbers = #tpu.dot_dimension_numbers<[1], [0], [0], [1], [0, 0, 1, 1], [], []>} : vector<1x1xf32>, vector<1x4xf32>, vector<1x4xf32> -> vector<1x4xf32>
    %46 = vector.extract_strided_slice %13 {offsets = [0, 8], sizes = [1, 4], strides = [1, 1]} : vector<1x32xf32> to vector<1x4xf32>
    %47 = vector.extract_strided_slice %14 {offsets = [0, 8], sizes = [1, 4], strides = [1, 1]} : vector<1x32xf32> to vector<1x4xf32>
    %48 = vector.extract_strided_slice %15 {offsets = [0, 8], sizes = [1, 4], strides = [1, 1]} : vector<1x32xf32> to vector<1x4xf32>
    %cst_31 = arith.constant dense<0.000000e+00> : vector<1x1xf32>
    %49 = tpu.matmul %46, %47, %cst_31 {dimension_numbers = #tpu.dot_dimension_numbers<[1], [1], [0], [0], [0, 0, 1, 0], [], []>} : vector<1x4xf32>, vector<1x4xf32>, vector<1x1xf32> -> vector<1x1xf32>
    %cst_32 = arith.constant 5.000000e-01 : f32
    %50 = vector.broadcast %cst_32 : f32 to vector<1x1xf32>
    %51 = arith.mulf %49, %50 : vector<1x1xf32>
    %cst_33 = arith.constant dense<0xFF800000> : vector<1xf32>
    %52 = vector.multi_reduction <maximumf>, %51, %cst_33 [1] : vector<1x1xf32> to vector<1xf32>
    %53 = vector.shape_cast %52 : vector<1xf32> to vector<1x1xf32>
    %54 = arith.subf %51, %53 : vector<1x1xf32>
    %55 = math.exp %54 : vector<1x1xf32>
    %cst_34 = arith.constant dense<0.000000e+00> : vector<1xf32>
    %56 = vector.multi_reduction <add>, %55, %cst_34 [1] : vector<1x1xf32> to vector<1xf32>
    %57 = vector.shape_cast %56 : vector<1xf32> to vector<1x1xf32>
    %58 = tpu.reciprocal %57 {approx = true} : vector<1x1xf32> -> vector<1x1xf32>
    %59 = arith.mulf %55, %58 : vector<1x1xf32>
    %cst_35 = arith.constant dense<0.000000e+00> : vector<1x4xf32>
    %60 = tpu.matmul %59, %48, %cst_35 {dimension_numbers = #tpu.dot_dimension_numbers<[1], [0], [0], [1], [0, 0, 1, 1], [], []>} : vector<1x1xf32>, vector<1x4xf32>, vector<1x4xf32> -> vector<1x4xf32>
    %61 = vector.extract_strided_slice %13 {offsets = [0, 12], sizes = [1, 4], strides = [1, 1]} : vector<1x32xf32> to vector<1x4xf32>
    %62 = vector.extract_strided_slice %14 {offsets = [0, 12], sizes = [1, 4], strides = [1, 1]} : vector<1x32xf32> to vector<1x4xf32>
    %63 = vector.extract_strided_slice %15 {offsets = [0, 12], sizes = [1, 4], strides = [1, 1]} : vector<1x32xf32> to vector<1x4xf32>
    %cst_36 = arith.constant dense<0.000000e+00> : vector<1x1xf32>
    %64 = tpu.matmul %61, %62, %cst_36 {dimension_numbers = #tpu.dot_dimension_numbers<[1], [1], [0], [0], [0, 0, 1, 0], [], []>} : vector<1x4xf32>, vector<1x4xf32>, vector<1x1xf32> -> vector<1x1xf32>
    %cst_37 = arith.constant 5.000000e-01 : f32
    %65 = vector.broadcast %cst_37 : f32 to vector<1x1xf32>
    %66 = arith.mulf %64, %65 : vector<1x1xf32>
    %cst_38 = arith.constant dense<0xFF800000> : vector<1xf32>
    %67 = vector.multi_reduction <maximumf>, %66, %cst_38 [1] : vector<1x1xf32> to vector<1xf32>
    %68 = vector.shape_cast %67 : vector<1xf32> to vector<1x1xf32>
    %69 = arith.subf %66, %68 : vector<1x1xf32>
    %70 = math.exp %69 : vector<1x1xf32>
    %cst_39 = arith.constant dense<0.000000e+00> : vector<1xf32>
    %71 = vector.multi_reduction <add>, %70, %cst_39 [1] : vector<1x1xf32> to vector<1xf32>
    %72 = vector.shape_cast %71 : vector<1xf32> to vector<1x1xf32>
    %73 = tpu.reciprocal %72 {approx = true} : vector<1x1xf32> -> vector<1x1xf32>
    %74 = arith.mulf %70, %73 : vector<1x1xf32>
    %cst_40 = arith.constant dense<0.000000e+00> : vector<1x4xf32>
    %75 = tpu.matmul %74, %63, %cst_40 {dimension_numbers = #tpu.dot_dimension_numbers<[1], [0], [0], [1], [0, 0, 1, 1], [], []>} : vector<1x1xf32>, vector<1x4xf32>, vector<1x4xf32> -> vector<1x4xf32>
    %76 = vector.extract_strided_slice %13 {offsets = [0, 16], sizes = [1, 4], strides = [1, 1]} : vector<1x32xf32> to vector<1x4xf32>
    %77 = vector.extract_strided_slice %14 {offsets = [0, 16], sizes = [1, 4], strides = [1, 1]} : vector<1x32xf32> to vector<1x4xf32>
    %78 = vector.extract_strided_slice %15 {offsets = [0, 16], sizes = [1, 4], strides = [1, 1]} : vector<1x32xf32> to vector<1x4xf32>
    %cst_41 = arith.constant dense<0.000000e+00> : vector<1x1xf32>
    %79 = tpu.matmul %76, %77, %cst_41 {dimension_numbers = #tpu.dot_dimension_numbers<[1], [1], [0], [0], [0, 0, 1, 0], [], []>} : vector<1x4xf32>, vector<1x4xf32>, vector<1x1xf32> -> vector<1x1xf32>
    %cst_42 = arith.constant 5.000000e-01 : f32
    %80 = vector.broadcast %cst_42 : f32 to vector<1x1xf32>
    %81 = arith.mulf %79, %80 : vector<1x1xf32>
    %cst_43 = arith.constant dense<0xFF800000> : vector<1xf32>
    %82 = vector.multi_reduction <maximumf>, %81, %cst_43 [1] : vector<1x1xf32> to vector<1xf32>
    %83 = vector.shape_cast %82 : vector<1xf32> to vector<1x1xf32>
    %84 = arith.subf %81, %83 : vector<1x1xf32>
    %85 = math.exp %84 : vector<1x1xf32>
    %cst_44 = arith.constant dense<0.000000e+00> : vector<1xf32>
    %86 = vector.multi_reduction <add>, %85, %cst_44 [1] : vector<1x1xf32> to vector<1xf32>
    %87 = vector.shape_cast %86 : vector<1xf32> to vector<1x1xf32>
    %88 = tpu.reciprocal %87 {approx = true} : vector<1x1xf32> -> vector<1x1xf32>
    %89 = arith.mulf %85, %88 : vector<1x1xf32>
    %cst_45 = arith.constant dense<0.000000e+00> : vector<1x4xf32>
    %90 = tpu.matmul %89, %78, %cst_45 {dimension_numbers = #tpu.dot_dimension_numbers<[1], [0], [0], [1], [0, 0, 1, 1], [], []>} : vector<1x1xf32>, vector<1x4xf32>, vector<1x4xf32> -> vector<1x4xf32>
    %91 = vector.extract_strided_slice %13 {offsets = [0, 20], sizes = [1, 4], strides = [1, 1]} : vector<1x32xf32> to vector<1x4xf32>
    %92 = vector.extract_strided_slice %14 {offsets = [0, 20], sizes = [1, 4], strides = [1, 1]} : vector<1x32xf32> to vector<1x4xf32>
    %93 = vector.extract_strided_slice %15 {offsets = [0, 20], sizes = [1, 4], strides = [1, 1]} : vector<1x32xf32> to vector<1x4xf32>
    %cst_46 = arith.constant dense<0.000000e+00> : vector<1x1xf32>
    %94 = tpu.matmul %91, %92, %cst_46 {dimension_numbers = #tpu.dot_dimension_numbers<[1], [1], [0], [0], [0, 0, 1, 0], [], []>} : vector<1x4xf32>, vector<1x4xf32>, vector<1x1xf32> -> vector<1x1xf32>
    %cst_47 = arith.constant 5.000000e-01 : f32
    %95 = vector.broadcast %cst_47 : f32 to vector<1x1xf32>
    %96 = arith.mulf %94, %95 : vector<1x1xf32>
    %cst_48 = arith.constant dense<0xFF800000> : vector<1xf32>
    %97 = vector.multi_reduction <maximumf>, %96, %cst_48 [1] : vector<1x1xf32> to vector<1xf32>
    %98 = vector.shape_cast %97 : vector<1xf32> to vector<1x1xf32>
    %99 = arith.subf %96, %98 : vector<1x1xf32>
    %100 = math.exp %99 : vector<1x1xf32>
    %cst_49 = arith.constant dense<0.000000e+00> : vector<1xf32>
    %101 = vector.multi_reduction <add>, %100, %cst_49 [1] : vector<1x1xf32> to vector<1xf32>
    %102 = vector.shape_cast %101 : vector<1xf32> to vector<1x1xf32>
    %103 = tpu.reciprocal %102 {approx = true} : vector<1x1xf32> -> vector<1x1xf32>
    %104 = arith.mulf %100, %103 : vector<1x1xf32>
    %cst_50 = arith.constant dense<0.000000e+00> : vector<1x4xf32>
    %105 = tpu.matmul %104, %93, %cst_50 {dimension_numbers = #tpu.dot_dimension_numbers<[1], [0], [0], [1], [0, 0, 1, 1], [], []>} : vector<1x1xf32>, vector<1x4xf32>, vector<1x4xf32> -> vector<1x4xf32>
    %106 = vector.extract_strided_slice %13 {offsets = [0, 24], sizes = [1, 4], strides = [1, 1]} : vector<1x32xf32> to vector<1x4xf32>
    %107 = vector.extract_strided_slice %14 {offsets = [0, 24], sizes = [1, 4], strides = [1, 1]} : vector<1x32xf32> to vector<1x4xf32>
    %108 = vector.extract_strided_slice %15 {offsets = [0, 24], sizes = [1, 4], strides = [1, 1]} : vector<1x32xf32> to vector<1x4xf32>
    %cst_51 = arith.constant dense<0.000000e+00> : vector<1x1xf32>
    %109 = tpu.matmul %106, %107, %cst_51 {dimension_numbers = #tpu.dot_dimension_numbers<[1], [1], [0], [0], [0, 0, 1, 0], [], []>} : vector<1x4xf32>, vector<1x4xf32>, vector<1x1xf32> -> vector<1x1xf32>
    %cst_52 = arith.constant 5.000000e-01 : f32
    %110 = vector.broadcast %cst_52 : f32 to vector<1x1xf32>
    %111 = arith.mulf %109, %110 : vector<1x1xf32>
    %cst_53 = arith.constant dense<0xFF800000> : vector<1xf32>
    %112 = vector.multi_reduction <maximumf>, %111, %cst_53 [1] : vector<1x1xf32> to vector<1xf32>
    %113 = vector.shape_cast %112 : vector<1xf32> to vector<1x1xf32>
    %114 = arith.subf %111, %113 : vector<1x1xf32>
    %115 = math.exp %114 : vector<1x1xf32>
    %cst_54 = arith.constant dense<0.000000e+00> : vector<1xf32>
    %116 = vector.multi_reduction <add>, %115, %cst_54 [1] : vector<1x1xf32> to vector<1xf32>
    %117 = vector.shape_cast %116 : vector<1xf32> to vector<1x1xf32>
    %118 = tpu.reciprocal %117 {approx = true} : vector<1x1xf32> -> vector<1x1xf32>
    %119 = arith.mulf %115, %118 : vector<1x1xf32>
    %cst_55 = arith.constant dense<0.000000e+00> : vector<1x4xf32>
    %120 = tpu.matmul %119, %108, %cst_55 {dimension_numbers = #tpu.dot_dimension_numbers<[1], [0], [0], [1], [0, 0, 1, 1], [], []>} : vector<1x1xf32>, vector<1x4xf32>, vector<1x4xf32> -> vector<1x4xf32>
    %121 = vector.extract_strided_slice %13 {offsets = [0, 28], sizes = [1, 4], strides = [1, 1]} : vector<1x32xf32> to vector<1x4xf32>
    %122 = vector.extract_strided_slice %14 {offsets = [0, 28], sizes = [1, 4], strides = [1, 1]} : vector<1x32xf32> to vector<1x4xf32>
    %123 = vector.extract_strided_slice %15 {offsets = [0, 28], sizes = [1, 4], strides = [1, 1]} : vector<1x32xf32> to vector<1x4xf32>
    %cst_56 = arith.constant dense<0.000000e+00> : vector<1x1xf32>
    %124 = tpu.matmul %121, %122, %cst_56 {dimension_numbers = #tpu.dot_dimension_numbers<[1], [1], [0], [0], [0, 0, 1, 0], [], []>} : vector<1x4xf32>, vector<1x4xf32>, vector<1x1xf32> -> vector<1x1xf32>
    %cst_57 = arith.constant 5.000000e-01 : f32
    %125 = vector.broadcast %cst_57 : f32 to vector<1x1xf32>
    %126 = arith.mulf %124, %125 : vector<1x1xf32>
    %cst_58 = arith.constant dense<0xFF800000> : vector<1xf32>
    %127 = vector.multi_reduction <maximumf>, %126, %cst_58 [1] : vector<1x1xf32> to vector<1xf32>
    %128 = vector.shape_cast %127 : vector<1xf32> to vector<1x1xf32>
    %129 = arith.subf %126, %128 : vector<1x1xf32>
    %130 = math.exp %129 : vector<1x1xf32>
    %cst_59 = arith.constant dense<0.000000e+00> : vector<1xf32>
    %131 = vector.multi_reduction <add>, %130, %cst_59 [1] : vector<1x1xf32> to vector<1xf32>
    %132 = vector.shape_cast %131 : vector<1xf32> to vector<1x1xf32>
    %133 = tpu.reciprocal %132 {approx = true} : vector<1x1xf32> -> vector<1x1xf32>
    %134 = arith.mulf %130, %133 : vector<1x1xf32>
    %cst_60 = arith.constant dense<0.000000e+00> : vector<1x4xf32>
    %135 = tpu.matmul %134, %123, %cst_60 {dimension_numbers = #tpu.dot_dimension_numbers<[1], [0], [0], [1], [0, 0, 1, 1], [], []>} : vector<1x1xf32>, vector<1x4xf32>, vector<1x4xf32> -> vector<1x4xf32>
    %136 = tpu.concatenate %30, %45, %60, %75, %90, %105, %120, %135 in 1 : vector<1x4xf32>, vector<1x4xf32>, vector<1x4xf32>, vector<1x4xf32>, vector<1x4xf32>, vector<1x4xf32>, vector<1x4xf32>, vector<1x4xf32> -> vector<1x32xf32>
    %cst_61 = arith.constant dense<0.000000e+00> : vector<1x32xf32>
    %137 = tpu.matmul %136, %10, %cst_61 {dimension_numbers = #tpu.dot_dimension_numbers<[1], [0], [0], [1], [0, 0, 1, 1], [], []>} : vector<1x32xf32>, vector<32x32xf32>, vector<1x32xf32> -> vector<1x32xf32>
    %138 = arith.addf %137, %12 : vector<1x32xf32>
    %139 = arith.addf %138, %2 : vector<1x32xf32>
    %c0_62 = arith.constant 0 : index
    %c0_63 = arith.constant 0 : index
    %c0_64 = arith.constant 0 : index
    %140 = vector.load %arg8[%c0_62, %c0_63, %c0_64] : memref<2x1x32xf32, #tpu.memory_space<vmem>>, vector<1x1x32xf32>
    %141 = vector.shape_cast %140 : vector<1x1x32xf32> to vector<1x32xf32>
    %c0_65 = arith.constant 0 : index
    %c0_66 = arith.constant 0 : index
    %c0_67 = arith.constant 0 : index
    %142 = vector.load %arg9[%c0_65, %c0_66, %c0_67] : memref<2x1x32xf32, #tpu.memory_space<vmem>>, vector<1x1x32xf32>
    %143 = vector.shape_cast %142 : vector<1x1x32xf32> to vector<1x32xf32>
    %cst_68 = arith.constant dense<0.000000e+00> : vector<1xf32>
    %144 = vector.multi_reduction <add>, %139, %cst_68 [1] : vector<1x32xf32> to vector<1xf32>
    %145 = vector.shape_cast %144 : vector<1xf32> to vector<1x1xf32>
    %cst_69 = arith.constant 3.200000e+01 : f32
    %146 = vector.broadcast %cst_69 : f32 to vector<1x1xf32>
    %147 = arith.divf %145, %146 : vector<1x1xf32>
    %148 = vector.broadcast %147 : vector<1x1xf32> to vector<1x32xf32>
    %149 = arith.subf %139, %148 : vector<1x32xf32>
    %150 = vector.broadcast %147 : vector<1x1xf32> to vector<1x32xf32>
    %151 = arith.subf %139, %150 : vector<1x32xf32>
    %152 = arith.mulf %149, %151 : vector<1x32xf32>
    %cst_70 = arith.constant dense<0.000000e+00> : vector<1xf32>
    %153 = vector.multi_reduction <add>, %152, %cst_70 [1] : vector<1x32xf32> to vector<1xf32>
    %154 = vector.shape_cast %153 : vector<1xf32> to vector<1x1xf32>
    %cst_71 = arith.constant 3.200000e+01 : f32
    %155 = vector.broadcast %cst_71 : f32 to vector<1x1xf32>
    %156 = arith.divf %154, %155 : vector<1x1xf32>
    %157 = vector.broadcast %147 : vector<1x1xf32> to vector<1x32xf32>
    %158 = arith.subf %139, %157 : vector<1x32xf32>
    %cst_72 = arith.constant 9.99999974E-6 : f32
    %159 = vector.broadcast %cst_72 : f32 to vector<1x1xf32>
    %160 = arith.addf %156, %159 : vector<1x1xf32>
    %161 = math.rsqrt %160 : vector<1x1xf32>
    %162 = vector.broadcast %161 : vector<1x1xf32> to vector<1x32xf32>
    %163 = arith.mulf %158, %162 : vector<1x32xf32>
    %164 = arith.mulf %163, %141 : vector<1x32xf32>
    %165 = arith.addf %164, %143 : vector<1x32xf32>
    %c0_73 = arith.constant 0 : index
    %c0_74 = arith.constant 0 : index
    %c0_75 = arith.constant 0 : index
    %166 = vector.load %arg10[%c0_73, %c0_74, %c0_75] : memref<2x32x32xf32, #tpu.memory_space<vmem>>, vector<1x32x32xf32>
    %167 = vector.shape_cast %166 : vector<1x32x32xf32> to vector<32x32xf32>
    %c0_76 = arith.constant 0 : index
    %c0_77 = arith.constant 0 : index
    %c0_78 = arith.constant 0 : index
    %168 = vector.load %arg11[%c0_76, %c0_77, %c0_78] : memref<2x32x32xf32, #tpu.memory_space<vmem>>, vector<1x32x32xf32>
    %169 = vector.shape_cast %168 : vector<1x32x32xf32> to vector<32x32xf32>
    %c0_79 = arith.constant 0 : index
    %c0_80 = arith.constant 0 : index
    %c0_81 = arith.constant 0 : index
    %170 = vector.load %arg12[%c0_79, %c0_80, %c0_81] : memref<2x32x32xf32, #tpu.memory_space<vmem>>, vector<1x32x32xf32>
    %171 = vector.shape_cast %170 : vector<1x32x32xf32> to vector<32x32xf32>
    %c0_82 = arith.constant 0 : index
    %c0_83 = arith.constant 0 : index
    %c0_84 = arith.constant 0 : index
    %172 = vector.load %arg13[%c0_82, %c0_83, %c0_84] : memref<2x32x32xf32, #tpu.memory_space<vmem>>, vector<1x32x32xf32>
    %173 = vector.shape_cast %172 : vector<1x32x32xf32> to vector<32x32xf32>
    %c0_85 = arith.constant 0 : index
    %c0_86 = arith.constant 0 : index
    %c0_87 = arith.constant 0 : index
    %174 = vector.load %arg14[%c0_85, %c0_86, %c0_87] : memref<2x1x32xf32, #tpu.memory_space<vmem>>, vector<1x1x32xf32>
    %175 = vector.shape_cast %174 : vector<1x1x32xf32> to vector<1x32xf32>
    %cst_88 = arith.constant dense<0.000000e+00> : vector<1x32xf32>
    %176 = tpu.matmul %165, %167, %cst_88 {dimension_numbers = #tpu.dot_dimension_numbers<[1], [0], [0], [1], [0, 0, 1, 1], [], []>} : vector<1x32xf32>, vector<32x32xf32>, vector<1x32xf32> -> vector<1x32xf32>
    %cst_89 = arith.constant dense<0.000000e+00> : vector<8x32xf32>
    %177 = tpu.matmul %1, %169, %cst_89 {dimension_numbers = #tpu.dot_dimension_numbers<[1], [0], [0], [1], [0, 0, 1, 1], [], []>} : vector<8x32xf32>, vector<32x32xf32>, vector<8x32xf32> -> vector<8x32xf32>
    %cst_90 = arith.constant dense<0.000000e+00> : vector<8x32xf32>
    %178 = tpu.matmul %1, %171, %cst_90 {dimension_numbers = #tpu.dot_dimension_numbers<[1], [0], [0], [1], [0, 0, 1, 1], [], []>} : vector<8x32xf32>, vector<32x32xf32>, vector<8x32xf32> -> vector<8x32xf32>
    %179 = vector.extract_strided_slice %176 {offsets = [0, 0], sizes = [1, 4], strides = [1, 1]} : vector<1x32xf32> to vector<1x4xf32>
    %180 = vector.extract_strided_slice %177 {offsets = [0, 0], sizes = [8, 4], strides = [1, 1]} : vector<8x32xf32> to vector<8x4xf32>
    %181 = vector.extract_strided_slice %178 {offsets = [0, 0], sizes = [8, 4], strides = [1, 1]} : vector<8x32xf32> to vector<8x4xf32>
    %cst_91 = arith.constant dense<0.000000e+00> : vector<1x8xf32>
    %182 = tpu.matmul %179, %180, %cst_91 {dimension_numbers = #tpu.dot_dimension_numbers<[1], [1], [0], [0], [0, 0, 1, 0], [], []>} : vector<1x4xf32>, vector<8x4xf32>, vector<1x8xf32> -> vector<1x8xf32>
    %cst_92 = arith.constant 5.000000e-01 : f32
    %183 = vector.broadcast %cst_92 : f32 to vector<1x8xf32>
    %184 = arith.mulf %182, %183 : vector<1x8xf32>
    %cst_93 = arith.constant dense<0xFF800000> : vector<1xf32>
    %185 = vector.multi_reduction <maximumf>, %184, %cst_93 [1] : vector<1x8xf32> to vector<1xf32>
    %186 = vector.shape_cast %185 : vector<1xf32> to vector<1x1xf32>
    %187 = vector.broadcast %186 : vector<1x1xf32> to vector<1x8xf32>
    %188 = arith.subf %184, %187 : vector<1x8xf32>
    %189 = math.exp %188 : vector<1x8xf32>
    %cst_94 = arith.constant dense<0.000000e+00> : vector<1xf32>
    %190 = vector.multi_reduction <add>, %189, %cst_94 [1] : vector<1x8xf32> to vector<1xf32>
    %191 = vector.shape_cast %190 : vector<1xf32> to vector<1x1xf32>
    %192 = tpu.reciprocal %191 {approx = true} : vector<1x1xf32> -> vector<1x1xf32>
    %193 = vector.broadcast %192 : vector<1x1xf32> to vector<1x8xf32>
    %194 = arith.mulf %189, %193 : vector<1x8xf32>
    %cst_95 = arith.constant dense<0.000000e+00> : vector<1x4xf32>
    %195 = tpu.matmul %194, %181, %cst_95 {dimension_numbers = #tpu.dot_dimension_numbers<[1], [0], [0], [1], [0, 0, 1, 1], [], []>} : vector<1x8xf32>, vector<8x4xf32>, vector<1x4xf32> -> vector<1x4xf32>
    %196 = vector.extract_strided_slice %176 {offsets = [0, 4], sizes = [1, 4], strides = [1, 1]} : vector<1x32xf32> to vector<1x4xf32>
    %197 = vector.extract_strided_slice %177 {offsets = [0, 4], sizes = [8, 4], strides = [1, 1]} : vector<8x32xf32> to vector<8x4xf32>
    %198 = vector.extract_strided_slice %178 {offsets = [0, 4], sizes = [8, 4], strides = [1, 1]} : vector<8x32xf32> to vector<8x4xf32>
    %cst_96 = arith.constant dense<0.000000e+00> : vector<1x8xf32>
    %199 = tpu.matmul %196, %197, %cst_96 {dimension_numbers = #tpu.dot_dimension_numbers<[1], [1], [0], [0], [0, 0, 1, 0], [], []>} : vector<1x4xf32>, vector<8x4xf32>, vector<1x8xf32> -> vector<1x8xf32>
    %cst_97 = arith.constant 5.000000e-01 : f32
    %200 = vector.broadcast %cst_97 : f32 to vector<1x8xf32>
    %201 = arith.mulf %199, %200 : vector<1x8xf32>
    %cst_98 = arith.constant dense<0xFF800000> : vector<1xf32>
    %202 = vector.multi_reduction <maximumf>, %201, %cst_98 [1] : vector<1x8xf32> to vector<1xf32>
    %203 = vector.shape_cast %202 : vector<1xf32> to vector<1x1xf32>
    %204 = vector.broadcast %203 : vector<1x1xf32> to vector<1x8xf32>
    %205 = arith.subf %201, %204 : vector<1x8xf32>
    %206 = math.exp %205 : vector<1x8xf32>
    %cst_99 = arith.constant dense<0.000000e+00> : vector<1xf32>
    %207 = vector.multi_reduction <add>, %206, %cst_99 [1] : vector<1x8xf32> to vector<1xf32>
    %208 = vector.shape_cast %207 : vector<1xf32> to vector<1x1xf32>
    %209 = tpu.reciprocal %208 {approx = true} : vector<1x1xf32> -> vector<1x1xf32>
    %210 = vector.broadcast %209 : vector<1x1xf32> to vector<1x8xf32>
    %211 = arith.mulf %206, %210 : vector<1x8xf32>
    %cst_100 = arith.constant dense<0.000000e+00> : vector<1x4xf32>
    %212 = tpu.matmul %211, %198, %cst_100 {dimension_numbers = #tpu.dot_dimension_numbers<[1], [0], [0], [1], [0, 0, 1, 1], [], []>} : vector<1x8xf32>, vector<8x4xf32>, vector<1x4xf32> -> vector<1x4xf32>
    %213 = vector.extract_strided_slice %176 {offsets = [0, 8], sizes = [1, 4], strides = [1, 1]} : vector<1x32xf32> to vector<1x4xf32>
    %214 = vector.extract_strided_slice %177 {offsets = [0, 8], sizes = [8, 4], strides = [1, 1]} : vector<8x32xf32> to vector<8x4xf32>
    %215 = vector.extract_strided_slice %178 {offsets = [0, 8], sizes = [8, 4], strides = [1, 1]} : vector<8x32xf32> to vector<8x4xf32>
    %cst_101 = arith.constant dense<0.000000e+00> : vector<1x8xf32>
    %216 = tpu.matmul %213, %214, %cst_101 {dimension_numbers = #tpu.dot_dimension_numbers<[1], [1], [0], [0], [0, 0, 1, 0], [], []>} : vector<1x4xf32>, vector<8x4xf32>, vector<1x8xf32> -> vector<1x8xf32>
    %cst_102 = arith.constant 5.000000e-01 : f32
    %217 = vector.broadcast %cst_102 : f32 to vector<1x8xf32>
    %218 = arith.mulf %216, %217 : vector<1x8xf32>
    %cst_103 = arith.constant dense<0xFF800000> : vector<1xf32>
    %219 = vector.multi_reduction <maximumf>, %218, %cst_103 [1] : vector<1x8xf32> to vector<1xf32>
    %220 = vector.shape_cast %219 : vector<1xf32> to vector<1x1xf32>
    %221 = vector.broadcast %220 : vector<1x1xf32> to vector<1x8xf32>
    %222 = arith.subf %218, %221 : vector<1x8xf32>
    %223 = math.exp %222 : vector<1x8xf32>
    %cst_104 = arith.constant dense<0.000000e+00> : vector<1xf32>
    %224 = vector.multi_reduction <add>, %223, %cst_104 [1] : vector<1x8xf32> to vector<1xf32>
    %225 = vector.shape_cast %224 : vector<1xf32> to vector<1x1xf32>
    %226 = tpu.reciprocal %225 {approx = true} : vector<1x1xf32> -> vector<1x1xf32>
    %227 = vector.broadcast %226 : vector<1x1xf32> to vector<1x8xf32>
    %228 = arith.mulf %223, %227 : vector<1x8xf32>
    %cst_105 = arith.constant dense<0.000000e+00> : vector<1x4xf32>
    %229 = tpu.matmul %228, %215, %cst_105 {dimension_numbers = #tpu.dot_dimension_numbers<[1], [0], [0], [1], [0, 0, 1, 1], [], []>} : vector<1x8xf32>, vector<8x4xf32>, vector<1x4xf32> -> vector<1x4xf32>
    %230 = vector.extract_strided_slice %176 {offsets = [0, 12], sizes = [1, 4], strides = [1, 1]} : vector<1x32xf32> to vector<1x4xf32>
    %231 = vector.extract_strided_slice %177 {offsets = [0, 12], sizes = [8, 4], strides = [1, 1]} : vector<8x32xf32> to vector<8x4xf32>
    %232 = vector.extract_strided_slice %178 {offsets = [0, 12], sizes = [8, 4], strides = [1, 1]} : vector<8x32xf32> to vector<8x4xf32>
    %cst_106 = arith.constant dense<0.000000e+00> : vector<1x8xf32>
    %233 = tpu.matmul %230, %231, %cst_106 {dimension_numbers = #tpu.dot_dimension_numbers<[1], [1], [0], [0], [0, 0, 1, 0], [], []>} : vector<1x4xf32>, vector<8x4xf32>, vector<1x8xf32> -> vector<1x8xf32>
    %cst_107 = arith.constant 5.000000e-01 : f32
    %234 = vector.broadcast %cst_107 : f32 to vector<1x8xf32>
    %235 = arith.mulf %233, %234 : vector<1x8xf32>
    %cst_108 = arith.constant dense<0xFF800000> : vector<1xf32>
    %236 = vector.multi_reduction <maximumf>, %235, %cst_108 [1] : vector<1x8xf32> to vector<1xf32>
    %237 = vector.shape_cast %236 : vector<1xf32> to vector<1x1xf32>
    %238 = vector.broadcast %237 : vector<1x1xf32> to vector<1x8xf32>
    %239 = arith.subf %235, %238 : vector<1x8xf32>
    %240 = math.exp %239 : vector<1x8xf32>
    %cst_109 = arith.constant dense<0.000000e+00> : vector<1xf32>
    %241 = vector.multi_reduction <add>, %240, %cst_109 [1] : vector<1x8xf32> to vector<1xf32>
    %242 = vector.shape_cast %241 : vector<1xf32> to vector<1x1xf32>
    %243 = tpu.reciprocal %242 {approx = true} : vector<1x1xf32> -> vector<1x1xf32>
    %244 = vector.broadcast %243 : vector<1x1xf32> to vector<1x8xf32>
    %245 = arith.mulf %240, %244 : vector<1x8xf32>
    %cst_110 = arith.constant dense<0.000000e+00> : vector<1x4xf32>
    %246 = tpu.matmul %245, %232, %cst_110 {dimension_numbers = #tpu.dot_dimension_numbers<[1], [0], [0], [1], [0, 0, 1, 1], [], []>} : vector<1x8xf32>, vector<8x4xf32>, vector<1x4xf32> -> vector<1x4xf32>
    %247 = vector.extract_strided_slice %176 {offsets = [0, 16], sizes = [1, 4], strides = [1, 1]} : vector<1x32xf32> to vector<1x4xf32>
    %248 = vector.extract_strided_slice %177 {offsets = [0, 16], sizes = [8, 4], strides = [1, 1]} : vector<8x32xf32> to vector<8x4xf32>
    %249 = vector.extract_strided_slice %178 {offsets = [0, 16], sizes = [8, 4], strides = [1, 1]} : vector<8x32xf32> to vector<8x4xf32>
    %cst_111 = arith.constant dense<0.000000e+00> : vector<1x8xf32>
    %250 = tpu.matmul %247, %248, %cst_111 {dimension_numbers = #tpu.dot_dimension_numbers<[1], [1], [0], [0], [0, 0, 1, 0], [], []>} : vector<1x4xf32>, vector<8x4xf32>, vector<1x8xf32> -> vector<1x8xf32>
    %cst_112 = arith.constant 5.000000e-01 : f32
    %251 = vector.broadcast %cst_112 : f32 to vector<1x8xf32>
    %252 = arith.mulf %250, %251 : vector<1x8xf32>
    %cst_113 = arith.constant dense<0xFF800000> : vector<1xf32>
    %253 = vector.multi_reduction <maximumf>, %252, %cst_113 [1] : vector<1x8xf32> to vector<1xf32>
    %254 = vector.shape_cast %253 : vector<1xf32> to vector<1x1xf32>
    %255 = vector.broadcast %254 : vector<1x1xf32> to vector<1x8xf32>
    %256 = arith.subf %252, %255 : vector<1x8xf32>
    %257 = math.exp %256 : vector<1x8xf32>
    %cst_114 = arith.constant dense<0.000000e+00> : vector<1xf32>
    %258 = vector.multi_reduction <add>, %257, %cst_114 [1] : vector<1x8xf32> to vector<1xf32>
    %259 = vector.shape_cast %258 : vector<1xf32> to vector<1x1xf32>
    %260 = tpu.reciprocal %259 {approx = true} : vector<1x1xf32> -> vector<1x1xf32>
    %261 = vector.broadcast %260 : vector<1x1xf32> to vector<1x8xf32>
    %262 = arith.mulf %257, %261 : vector<1x8xf32>
    %cst_115 = arith.constant dense<0.000000e+00> : vector<1x4xf32>
    %263 = tpu.matmul %262, %249, %cst_115 {dimension_numbers = #tpu.dot_dimension_numbers<[1], [0], [0], [1], [0, 0, 1, 1], [], []>} : vector<1x8xf32>, vector<8x4xf32>, vector<1x4xf32> -> vector<1x4xf32>
    %264 = vector.extract_strided_slice %176 {offsets = [0, 20], sizes = [1, 4], strides = [1, 1]} : vector<1x32xf32> to vector<1x4xf32>
    %265 = vector.extract_strided_slice %177 {offsets = [0, 20], sizes = [8, 4], strides = [1, 1]} : vector<8x32xf32> to vector<8x4xf32>
    %266 = vector.extract_strided_slice %178 {offsets = [0, 20], sizes = [8, 4], strides = [1, 1]} : vector<8x32xf32> to vector<8x4xf32>
    %cst_116 = arith.constant dense<0.000000e+00> : vector<1x8xf32>
    %267 = tpu.matmul %264, %265, %cst_116 {dimension_numbers = #tpu.dot_dimension_numbers<[1], [1], [0], [0], [0, 0, 1, 0], [], []>} : vector<1x4xf32>, vector<8x4xf32>, vector<1x8xf32> -> vector<1x8xf32>
    %cst_117 = arith.constant 5.000000e-01 : f32
    %268 = vector.broadcast %cst_117 : f32 to vector<1x8xf32>
    %269 = arith.mulf %267, %268 : vector<1x8xf32>
    %cst_118 = arith.constant dense<0xFF800000> : vector<1xf32>
    %270 = vector.multi_reduction <maximumf>, %269, %cst_118 [1] : vector<1x8xf32> to vector<1xf32>
    %271 = vector.shape_cast %270 : vector<1xf32> to vector<1x1xf32>
    %272 = vector.broadcast %271 : vector<1x1xf32> to vector<1x8xf32>
    %273 = arith.subf %269, %272 : vector<1x8xf32>
    %274 = math.exp %273 : vector<1x8xf32>
    %cst_119 = arith.constant dense<0.000000e+00> : vector<1xf32>
    %275 = vector.multi_reduction <add>, %274, %cst_119 [1] : vector<1x8xf32> to vector<1xf32>
    %276 = vector.shape_cast %275 : vector<1xf32> to vector<1x1xf32>
    %277 = tpu.reciprocal %276 {approx = true} : vector<1x1xf32> -> vector<1x1xf32>
    %278 = vector.broadcast %277 : vector<1x1xf32> to vector<1x8xf32>
    %279 = arith.mulf %274, %278 : vector<1x8xf32>
    %cst_120 = arith.constant dense<0.000000e+00> : vector<1x4xf32>
    %280 = tpu.matmul %279, %266, %cst_120 {dimension_numbers = #tpu.dot_dimension_numbers<[1], [0], [0], [1], [0, 0, 1, 1], [], []>} : vector<1x8xf32>, vector<8x4xf32>, vector<1x4xf32> -> vector<1x4xf32>
    %281 = vector.extract_strided_slice %176 {offsets = [0, 24], sizes = [1, 4], strides = [1, 1]} : vector<1x32xf32> to vector<1x4xf32>
    %282 = vector.extract_strided_slice %177 {offsets = [0, 24], sizes = [8, 4], strides = [1, 1]} : vector<8x32xf32> to vector<8x4xf32>
    %283 = vector.extract_strided_slice %178 {offsets = [0, 24], sizes = [8, 4], strides = [1, 1]} : vector<8x32xf32> to vector<8x4xf32>
    %cst_121 = arith.constant dense<0.000000e+00> : vector<1x8xf32>
    %284 = tpu.matmul %281, %282, %cst_121 {dimension_numbers = #tpu.dot_dimension_numbers<[1], [1], [0], [0], [0, 0, 1, 0], [], []>} : vector<1x4xf32>, vector<8x4xf32>, vector<1x8xf32> -> vector<1x8xf32>
    %cst_122 = arith.constant 5.000000e-01 : f32
    %285 = vector.broadcast %cst_122 : f32 to vector<1x8xf32>
    %286 = arith.mulf %284, %285 : vector<1x8xf32>
    %cst_123 = arith.constant dense<0xFF800000> : vector<1xf32>
    %287 = vector.multi_reduction <maximumf>, %286, %cst_123 [1] : vector<1x8xf32> to vector<1xf32>
    %288 = vector.shape_cast %287 : vector<1xf32> to vector<1x1xf32>
    %289 = vector.broadcast %288 : vector<1x1xf32> to vector<1x8xf32>
    %290 = arith.subf %286, %289 : vector<1x8xf32>
    %291 = math.exp %290 : vector<1x8xf32>
    %cst_124 = arith.constant dense<0.000000e+00> : vector<1xf32>
    %292 = vector.multi_reduction <add>, %291, %cst_124 [1] : vector<1x8xf32> to vector<1xf32>
    %293 = vector.shape_cast %292 : vector<1xf32> to vector<1x1xf32>
    %294 = tpu.reciprocal %293 {approx = true} : vector<1x1xf32> -> vector<1x1xf32>
    %295 = vector.broadcast %294 : vector<1x1xf32> to vector<1x8xf32>
    %296 = arith.mulf %291, %295 : vector<1x8xf32>
    %cst_125 = arith.constant dense<0.000000e+00> : vector<1x4xf32>
    %297 = tpu.matmul %296, %283, %cst_125 {dimension_numbers = #tpu.dot_dimension_numbers<[1], [0], [0], [1], [0, 0, 1, 1], [], []>} : vector<1x8xf32>, vector<8x4xf32>, vector<1x4xf32> -> vector<1x4xf32>
    %298 = vector.extract_strided_slice %176 {offsets = [0, 28], sizes = [1, 4], strides = [1, 1]} : vector<1x32xf32> to vector<1x4xf32>
    %299 = vector.extract_strided_slice %177 {offsets = [0, 28], sizes = [8, 4], strides = [1, 1]} : vector<8x32xf32> to vector<8x4xf32>
    %300 = vector.extract_strided_slice %178 {offsets = [0, 28], sizes = [8, 4], strides = [1, 1]} : vector<8x32xf32> to vector<8x4xf32>
    %cst_126 = arith.constant dense<0.000000e+00> : vector<1x8xf32>
    %301 = tpu.matmul %298, %299, %cst_126 {dimension_numbers = #tpu.dot_dimension_numbers<[1], [1], [0], [0], [0, 0, 1, 0], [], []>} : vector<1x4xf32>, vector<8x4xf32>, vector<1x8xf32> -> vector<1x8xf32>
    %cst_127 = arith.constant 5.000000e-01 : f32
    %302 = vector.broadcast %cst_127 : f32 to vector<1x8xf32>
    %303 = arith.mulf %301, %302 : vector<1x8xf32>
    %cst_128 = arith.constant dense<0xFF800000> : vector<1xf32>
    %304 = vector.multi_reduction <maximumf>, %303, %cst_128 [1] : vector<1x8xf32> to vector<1xf32>
    %305 = vector.shape_cast %304 : vector<1xf32> to vector<1x1xf32>
    %306 = vector.broadcast %305 : vector<1x1xf32> to vector<1x8xf32>
    %307 = arith.subf %303, %306 : vector<1x8xf32>
    %308 = math.exp %307 : vector<1x8xf32>
    %cst_129 = arith.constant dense<0.000000e+00> : vector<1xf32>
    %309 = vector.multi_reduction <add>, %308, %cst_129 [1] : vector<1x8xf32> to vector<1xf32>
    %310 = vector.shape_cast %309 : vector<1xf32> to vector<1x1xf32>
    %311 = tpu.reciprocal %310 {approx = true} : vector<1x1xf32> -> vector<1x1xf32>
    %312 = vector.broadcast %311 : vector<1x1xf32> to vector<1x8xf32>
    %313 = arith.mulf %308, %312 : vector<1x8xf32>
    %cst_130 = arith.constant dense<0.000000e+00> : vector<1x4xf32>
    %314 = tpu.matmul %313, %300, %cst_130 {dimension_numbers = #tpu.dot_dimension_numbers<[1], [0], [0], [1], [0, 0, 1, 1], [], []>} : vector<1x8xf32>, vector<8x4xf32>, vector<1x4xf32> -> vector<1x4xf32>
    %315 = tpu.concatenate %195, %212, %229, %246, %263, %280, %297, %314 in 1 : vector<1x4xf32>, vector<1x4xf32>, vector<1x4xf32>, vector<1x4xf32>, vector<1x4xf32>, vector<1x4xf32>, vector<1x4xf32>, vector<1x4xf32> -> vector<1x32xf32>
    %cst_131 = arith.constant dense<0.000000e+00> : vector<1x32xf32>
    %316 = tpu.matmul %315, %173, %cst_131 {dimension_numbers = #tpu.dot_dimension_numbers<[1], [0], [0], [1], [0, 0, 1, 1], [], []>} : vector<1x32xf32>, vector<32x32xf32>, vector<1x32xf32> -> vector<1x32xf32>
    %317 = arith.addf %316, %175 : vector<1x32xf32>
    %318 = arith.addf %317, %165 : vector<1x32xf32>
    %c0_132 = arith.constant 0 : index
    %c0_133 = arith.constant 0 : index
    %c0_134 = arith.constant 0 : index
    %319 = vector.load %arg15[%c0_132, %c0_133, %c0_134] : memref<2x1x32xf32, #tpu.memory_space<vmem>>, vector<1x1x32xf32>
    %320 = vector.shape_cast %319 : vector<1x1x32xf32> to vector<1x32xf32>
    %c0_135 = arith.constant 0 : index
    %c0_136 = arith.constant 0 : index
    %c0_137 = arith.constant 0 : index
    %321 = vector.load %arg16[%c0_135, %c0_136, %c0_137] : memref<2x1x32xf32, #tpu.memory_space<vmem>>, vector<1x1x32xf32>
    %322 = vector.shape_cast %321 : vector<1x1x32xf32> to vector<1x32xf32>
    %cst_138 = arith.constant dense<0.000000e+00> : vector<1xf32>
    %323 = vector.multi_reduction <add>, %318, %cst_138 [1] : vector<1x32xf32> to vector<1xf32>
    %324 = vector.shape_cast %323 : vector<1xf32> to vector<1x1xf32>
    %cst_139 = arith.constant 3.200000e+01 : f32
    %325 = vector.broadcast %cst_139 : f32 to vector<1x1xf32>
    %326 = arith.divf %324, %325 : vector<1x1xf32>
    %327 = vector.broadcast %326 : vector<1x1xf32> to vector<1x32xf32>
    %328 = arith.subf %318, %327 : vector<1x32xf32>
    %329 = vector.broadcast %326 : vector<1x1xf32> to vector<1x32xf32>
    %330 = arith.subf %318, %329 : vector<1x32xf32>
    %331 = arith.mulf %328, %330 : vector<1x32xf32>
    %cst_140 = arith.constant dense<0.000000e+00> : vector<1xf32>
    %332 = vector.multi_reduction <add>, %331, %cst_140 [1] : vector<1x32xf32> to vector<1xf32>
    %333 = vector.shape_cast %332 : vector<1xf32> to vector<1x1xf32>
    %cst_141 = arith.constant 3.200000e+01 : f32
    %334 = vector.broadcast %cst_141 : f32 to vector<1x1xf32>
    %335 = arith.divf %333, %334 : vector<1x1xf32>
    %336 = vector.broadcast %326 : vector<1x1xf32> to vector<1x32xf32>
    %337 = arith.subf %318, %336 : vector<1x32xf32>
    %cst_142 = arith.constant 9.99999974E-6 : f32
    %338 = vector.broadcast %cst_142 : f32 to vector<1x1xf32>
    %339 = arith.addf %335, %338 : vector<1x1xf32>
    %340 = math.rsqrt %339 : vector<1x1xf32>
    %341 = vector.broadcast %340 : vector<1x1xf32> to vector<1x32xf32>
    %342 = arith.mulf %337, %341 : vector<1x32xf32>
    %343 = arith.mulf %342, %320 : vector<1x32xf32>
    %344 = arith.addf %343, %322 : vector<1x32xf32>
    %c0_143 = arith.constant 0 : index
    %c0_144 = arith.constant 0 : index
    %c0_145 = arith.constant 0 : index
    %345 = vector.load %arg17[%c0_143, %c0_144, %c0_145] : memref<2x32x128xf32, #tpu.memory_space<vmem>>, vector<1x32x128xf32>
    %346 = vector.shape_cast %345 : vector<1x32x128xf32> to vector<32x128xf32>
    %cst_146 = arith.constant dense<0.000000e+00> : vector<1x128xf32>
    %347 = tpu.matmul %344, %346, %cst_146 {dimension_numbers = #tpu.dot_dimension_numbers<[1], [0], [0], [1], [0, 0, 1, 1], [], []>} : vector<1x32xf32>, vector<32x128xf32>, vector<1x128xf32> -> vector<1x128xf32>
    %c0_147 = arith.constant 0 : index
    %c0_148 = arith.constant 0 : index
    %c0_149 = arith.constant 0 : index
    %348 = vector.load %arg18[%c0_147, %c0_148, %c0_149] : memref<2x1x128xf32, #tpu.memory_space<vmem>>, vector<1x1x128xf32>
    %349 = vector.shape_cast %348 : vector<1x1x128xf32> to vector<1x128xf32>
    %350 = arith.addf %347, %349 : vector<1x128xf32>
    %cst_150 = arith.constant 0.000000e+00 : f32
    %351 = vector.broadcast %cst_150 : f32 to vector<1x128xf32>
    %352 = arith.maximumf %350, %351 : vector<1x128xf32>
    %c0_151 = arith.constant 0 : index
    %c0_152 = arith.constant 0 : index
    %c0_153 = arith.constant 0 : index
    %353 = vector.load %arg19[%c0_151, %c0_152, %c0_153] : memref<2x128x32xf32, #tpu.memory_space<vmem>>, vector<1x128x32xf32>
    %354 = vector.shape_cast %353 : vector<1x128x32xf32> to vector<128x32xf32>
    %cst_154 = arith.constant dense<0.000000e+00> : vector<1x32xf32>
    %355 = tpu.matmul %352, %354, %cst_154 {dimension_numbers = #tpu.dot_dimension_numbers<[1], [0], [0], [1], [0, 0, 1, 1], [], []>} : vector<1x128xf32>, vector<128x32xf32>, vector<1x32xf32> -> vector<1x32xf32>
    %c0_155 = arith.constant 0 : index
    %c0_156 = arith.constant 0 : index
    %c0_157 = arith.constant 0 : index
    %356 = vector.load %arg20[%c0_155, %c0_156, %c0_157] : memref<2x1x32xf32, #tpu.memory_space<vmem>>, vector<1x1x32xf32>
    %357 = vector.shape_cast %356 : vector<1x1x32xf32> to vector<1x32xf32>
    %358 = arith.addf %355, %357 : vector<1x32xf32>
    %359 = arith.addf %358, %344 : vector<1x32xf32>
    %c0_158 = arith.constant 0 : index
    %c0_159 = arith.constant 0 : index
    %c0_160 = arith.constant 0 : index
    %360 = vector.load %arg21[%c0_158, %c0_159, %c0_160] : memref<2x1x32xf32, #tpu.memory_space<vmem>>, vector<1x1x32xf32>
    %361 = vector.shape_cast %360 : vector<1x1x32xf32> to vector<1x32xf32>
    %c0_161 = arith.constant 0 : index
    %c0_162 = arith.constant 0 : index
    %c0_163 = arith.constant 0 : index
    %362 = vector.load %arg22[%c0_161, %c0_162, %c0_163] : memref<2x1x32xf32, #tpu.memory_space<vmem>>, vector<1x1x32xf32>
    %363 = vector.shape_cast %362 : vector<1x1x32xf32> to vector<1x32xf32>
    %cst_164 = arith.constant dense<0.000000e+00> : vector<1xf32>
    %364 = vector.multi_reduction <add>, %359, %cst_164 [1] : vector<1x32xf32> to vector<1xf32>
    %365 = vector.shape_cast %364 : vector<1xf32> to vector<1x1xf32>
    %cst_165 = arith.constant 3.200000e+01 : f32
    %366 = vector.broadcast %cst_165 : f32 to vector<1x1xf32>
    %367 = arith.divf %365, %366 : vector<1x1xf32>
    %368 = vector.broadcast %367 : vector<1x1xf32> to vector<1x32xf32>
    %369 = arith.subf %359, %368 : vector<1x32xf32>
    %370 = vector.broadcast %367 : vector<1x1xf32> to vector<1x32xf32>
    %371 = arith.subf %359, %370 : vector<1x32xf32>
    %372 = arith.mulf %369, %371 : vector<1x32xf32>
    %cst_166 = arith.constant dense<0.000000e+00> : vector<1xf32>
    %373 = vector.multi_reduction <add>, %372, %cst_166 [1] : vector<1x32xf32> to vector<1xf32>
    %374 = vector.shape_cast %373 : vector<1xf32> to vector<1x1xf32>
    %cst_167 = arith.constant 3.200000e+01 : f32
    %375 = vector.broadcast %cst_167 : f32 to vector<1x1xf32>
    %376 = arith.divf %374, %375 : vector<1x1xf32>
    %377 = vector.broadcast %367 : vector<1x1xf32> to vector<1x32xf32>
    %378 = arith.subf %359, %377 : vector<1x32xf32>
    %cst_168 = arith.constant 9.99999974E-6 : f32
    %379 = vector.broadcast %cst_168 : f32 to vector<1x1xf32>
    %380 = arith.addf %376, %379 : vector<1x1xf32>
    %381 = math.rsqrt %380 : vector<1x1xf32>
    %382 = vector.broadcast %381 : vector<1x1xf32> to vector<1x32xf32>
    %383 = arith.mulf %378, %382 : vector<1x32xf32>
    %384 = arith.mulf %383, %361 : vector<1x32xf32>
    %385 = arith.addf %384, %363 : vector<1x32xf32>
    %c1 = arith.constant 1 : index
    %c0_169 = arith.constant 0 : index
    %c0_170 = arith.constant 0 : index
    %386 = vector.load %arg3[%c1, %c0_169, %c0_170] : memref<2x32x32xf32, #tpu.memory_space<vmem>>, vector<1x32x32xf32>
    %387 = vector.shape_cast %386 : vector<1x32x32xf32> to vector<32x32xf32>
    %c1_171 = arith.constant 1 : index
    %c0_172 = arith.constant 0 : index
    %c0_173 = arith.constant 0 : index
    %388 = vector.load %arg4[%c1_171, %c0_172, %c0_173] : memref<2x32x32xf32, #tpu.memory_space<vmem>>, vector<1x32x32xf32>
    %389 = vector.shape_cast %388 : vector<1x32x32xf32> to vector<32x32xf32>
    %c1_174 = arith.constant 1 : index
    %c0_175 = arith.constant 0 : index
    %c0_176 = arith.constant 0 : index
    %390 = vector.load %arg5[%c1_174, %c0_175, %c0_176] : memref<2x32x32xf32, #tpu.memory_space<vmem>>, vector<1x32x32xf32>
    %391 = vector.shape_cast %390 : vector<1x32x32xf32> to vector<32x32xf32>
    %c1_177 = arith.constant 1 : index
    %c0_178 = arith.constant 0 : index
    %c0_179 = arith.constant 0 : index
    %392 = vector.load %arg6[%c1_177, %c0_178, %c0_179] : memref<2x32x32xf32, #tpu.memory_space<vmem>>, vector<1x32x32xf32>
    %393 = vector.shape_cast %392 : vector<1x32x32xf32> to vector<32x32xf32>
    %c1_180 = arith.constant 1 : index
    %c0_181 = arith.constant 0 : index
    %c0_182 = arith.constant 0 : index
    %394 = vector.load %arg7[%c1_180, %c0_181, %c0_182] : memref<2x1x32xf32, #tpu.memory_space<vmem>>, vector<1x1x32xf32>
    %395 = vector.shape_cast %394 : vector<1x1x32xf32> to vector<1x32xf32>
    %cst_183 = arith.constant dense<0.000000e+00> : vector<1x32xf32>
    %396 = tpu.matmul %385, %387, %cst_183 {dimension_numbers = #tpu.dot_dimension_numbers<[1], [0], [0], [1], [0, 0, 1, 1], [], []>} : vector<1x32xf32>, vector<32x32xf32>, vector<1x32xf32> -> vector<1x32xf32>
    %cst_184 = arith.constant dense<0.000000e+00> : vector<1x32xf32>
    %397 = tpu.matmul %385, %389, %cst_184 {dimension_numbers = #tpu.dot_dimension_numbers<[1], [0], [0], [1], [0, 0, 1, 1], [], []>} : vector<1x32xf32>, vector<32x32xf32>, vector<1x32xf32> -> vector<1x32xf32>
    %cst_185 = arith.constant dense<0.000000e+00> : vector<1x32xf32>
    %398 = tpu.matmul %385, %391, %cst_185 {dimension_numbers = #tpu.dot_dimension_numbers<[1], [0], [0], [1], [0, 0, 1, 1], [], []>} : vector<1x32xf32>, vector<32x32xf32>, vector<1x32xf32> -> vector<1x32xf32>
    %399 = vector.extract_strided_slice %396 {offsets = [0, 0], sizes = [1, 4], strides = [1, 1]} : vector<1x32xf32> to vector<1x4xf32>
    %400 = vector.extract_strided_slice %397 {offsets = [0, 0], sizes = [1, 4], strides = [1, 1]} : vector<1x32xf32> to vector<1x4xf32>
    %401 = vector.extract_strided_slice %398 {offsets = [0, 0], sizes = [1, 4], strides = [1, 1]} : vector<1x32xf32> to vector<1x4xf32>
    %cst_186 = arith.constant dense<0.000000e+00> : vector<1x1xf32>
    %402 = tpu.matmul %399, %400, %cst_186 {dimension_numbers = #tpu.dot_dimension_numbers<[1], [1], [0], [0], [0, 0, 1, 0], [], []>} : vector<1x4xf32>, vector<1x4xf32>, vector<1x1xf32> -> vector<1x1xf32>
    %cst_187 = arith.constant 5.000000e-01 : f32
    %403 = vector.broadcast %cst_187 : f32 to vector<1x1xf32>
    %404 = arith.mulf %402, %403 : vector<1x1xf32>
    %cst_188 = arith.constant dense<0xFF800000> : vector<1xf32>
    %405 = vector.multi_reduction <maximumf>, %404, %cst_188 [1] : vector<1x1xf32> to vector<1xf32>
    %406 = vector.shape_cast %405 : vector<1xf32> to vector<1x1xf32>
    %407 = arith.subf %404, %406 : vector<1x1xf32>
    %408 = math.exp %407 : vector<1x1xf32>
    %cst_189 = arith.constant dense<0.000000e+00> : vector<1xf32>
    %409 = vector.multi_reduction <add>, %408, %cst_189 [1] : vector<1x1xf32> to vector<1xf32>
    %410 = vector.shape_cast %409 : vector<1xf32> to vector<1x1xf32>
    %411 = tpu.reciprocal %410 {approx = true} : vector<1x1xf32> -> vector<1x1xf32>
    %412 = arith.mulf %408, %411 : vector<1x1xf32>
    %cst_190 = arith.constant dense<0.000000e+00> : vector<1x4xf32>
    %413 = tpu.matmul %412, %401, %cst_190 {dimension_numbers = #tpu.dot_dimension_numbers<[1], [0], [0], [1], [0, 0, 1, 1], [], []>} : vector<1x1xf32>, vector<1x4xf32>, vector<1x4xf32> -> vector<1x4xf32>
    %414 = vector.extract_strided_slice %396 {offsets = [0, 4], sizes = [1, 4], strides = [1, 1]} : vector<1x32xf32> to vector<1x4xf32>
    %415 = vector.extract_strided_slice %397 {offsets = [0, 4], sizes = [1, 4], strides = [1, 1]} : vector<1x32xf32> to vector<1x4xf32>
    %416 = vector.extract_strided_slice %398 {offsets = [0, 4], sizes = [1, 4], strides = [1, 1]} : vector<1x32xf32> to vector<1x4xf32>
    %cst_191 = arith.constant dense<0.000000e+00> : vector<1x1xf32>
    %417 = tpu.matmul %414, %415, %cst_191 {dimension_numbers = #tpu.dot_dimension_numbers<[1], [1], [0], [0], [0, 0, 1, 0], [], []>} : vector<1x4xf32>, vector<1x4xf32>, vector<1x1xf32> -> vector<1x1xf32>
    %cst_192 = arith.constant 5.000000e-01 : f32
    %418 = vector.broadcast %cst_192 : f32 to vector<1x1xf32>
    %419 = arith.mulf %417, %418 : vector<1x1xf32>
    %cst_193 = arith.constant dense<0xFF800000> : vector<1xf32>
    %420 = vector.multi_reduction <maximumf>, %419, %cst_193 [1] : vector<1x1xf32> to vector<1xf32>
    %421 = vector.shape_cast %420 : vector<1xf32> to vector<1x1xf32>
    %422 = arith.subf %419, %421 : vector<1x1xf32>
    %423 = math.exp %422 : vector<1x1xf32>
    %cst_194 = arith.constant dense<0.000000e+00> : vector<1xf32>
    %424 = vector.multi_reduction <add>, %423, %cst_194 [1] : vector<1x1xf32> to vector<1xf32>
    %425 = vector.shape_cast %424 : vector<1xf32> to vector<1x1xf32>
    %426 = tpu.reciprocal %425 {approx = true} : vector<1x1xf32> -> vector<1x1xf32>
    %427 = arith.mulf %423, %426 : vector<1x1xf32>
    %cst_195 = arith.constant dense<0.000000e+00> : vector<1x4xf32>
    %428 = tpu.matmul %427, %416, %cst_195 {dimension_numbers = #tpu.dot_dimension_numbers<[1], [0], [0], [1], [0, 0, 1, 1], [], []>} : vector<1x1xf32>, vector<1x4xf32>, vector<1x4xf32> -> vector<1x4xf32>
    %429 = vector.extract_strided_slice %396 {offsets = [0, 8], sizes = [1, 4], strides = [1, 1]} : vector<1x32xf32> to vector<1x4xf32>
    %430 = vector.extract_strided_slice %397 {offsets = [0, 8], sizes = [1, 4], strides = [1, 1]} : vector<1x32xf32> to vector<1x4xf32>
    %431 = vector.extract_strided_slice %398 {offsets = [0, 8], sizes = [1, 4], strides = [1, 1]} : vector<1x32xf32> to vector<1x4xf32>
    %cst_196 = arith.constant dense<0.000000e+00> : vector<1x1xf32>
    %432 = tpu.matmul %429, %430, %cst_196 {dimension_numbers = #tpu.dot_dimension_numbers<[1], [1], [0], [0], [0, 0, 1, 0], [], []>} : vector<1x4xf32>, vector<1x4xf32>, vector<1x1xf32> -> vector<1x1xf32>
    %cst_197 = arith.constant 5.000000e-01 : f32
    %433 = vector.broadcast %cst_197 : f32 to vector<1x1xf32>
    %434 = arith.mulf %432, %433 : vector<1x1xf32>
    %cst_198 = arith.constant dense<0xFF800000> : vector<1xf32>
    %435 = vector.multi_reduction <maximumf>, %434, %cst_198 [1] : vector<1x1xf32> to vector<1xf32>
    %436 = vector.shape_cast %435 : vector<1xf32> to vector<1x1xf32>
    %437 = arith.subf %434, %436 : vector<1x1xf32>
    %438 = math.exp %437 : vector<1x1xf32>
    %cst_199 = arith.constant dense<0.000000e+00> : vector<1xf32>
    %439 = vector.multi_reduction <add>, %438, %cst_199 [1] : vector<1x1xf32> to vector<1xf32>
    %440 = vector.shape_cast %439 : vector<1xf32> to vector<1x1xf32>
    %441 = tpu.reciprocal %440 {approx = true} : vector<1x1xf32> -> vector<1x1xf32>
    %442 = arith.mulf %438, %441 : vector<1x1xf32>
    %cst_200 = arith.constant dense<0.000000e+00> : vector<1x4xf32>
    %443 = tpu.matmul %442, %431, %cst_200 {dimension_numbers = #tpu.dot_dimension_numbers<[1], [0], [0], [1], [0, 0, 1, 1], [], []>} : vector<1x1xf32>, vector<1x4xf32>, vector<1x4xf32> -> vector<1x4xf32>
    %444 = vector.extract_strided_slice %396 {offsets = [0, 12], sizes = [1, 4], strides = [1, 1]} : vector<1x32xf32> to vector<1x4xf32>
    %445 = vector.extract_strided_slice %397 {offsets = [0, 12], sizes = [1, 4], strides = [1, 1]} : vector<1x32xf32> to vector<1x4xf32>
    %446 = vector.extract_strided_slice %398 {offsets = [0, 12], sizes = [1, 4], strides = [1, 1]} : vector<1x32xf32> to vector<1x4xf32>
    %cst_201 = arith.constant dense<0.000000e+00> : vector<1x1xf32>
    %447 = tpu.matmul %444, %445, %cst_201 {dimension_numbers = #tpu.dot_dimension_numbers<[1], [1], [0], [0], [0, 0, 1, 0], [], []>} : vector<1x4xf32>, vector<1x4xf32>, vector<1x1xf32> -> vector<1x1xf32>
    %cst_202 = arith.constant 5.000000e-01 : f32
    %448 = vector.broadcast %cst_202 : f32 to vector<1x1xf32>
    %449 = arith.mulf %447, %448 : vector<1x1xf32>
    %cst_203 = arith.constant dense<0xFF800000> : vector<1xf32>
    %450 = vector.multi_reduction <maximumf>, %449, %cst_203 [1] : vector<1x1xf32> to vector<1xf32>
    %451 = vector.shape_cast %450 : vector<1xf32> to vector<1x1xf32>
    %452 = arith.subf %449, %451 : vector<1x1xf32>
    %453 = math.exp %452 : vector<1x1xf32>
    %cst_204 = arith.constant dense<0.000000e+00> : vector<1xf32>
    %454 = vector.multi_reduction <add>, %453, %cst_204 [1] : vector<1x1xf32> to vector<1xf32>
    %455 = vector.shape_cast %454 : vector<1xf32> to vector<1x1xf32>
    %456 = tpu.reciprocal %455 {approx = true} : vector<1x1xf32> -> vector<1x1xf32>
    %457 = arith.mulf %453, %456 : vector<1x1xf32>
    %cst_205 = arith.constant dense<0.000000e+00> : vector<1x4xf32>
    %458 = tpu.matmul %457, %446, %cst_205 {dimension_numbers = #tpu.dot_dimension_numbers<[1], [0], [0], [1], [0, 0, 1, 1], [], []>} : vector<1x1xf32>, vector<1x4xf32>, vector<1x4xf32> -> vector<1x4xf32>
    %459 = vector.extract_strided_slice %396 {offsets = [0, 16], sizes = [1, 4], strides = [1, 1]} : vector<1x32xf32> to vector<1x4xf32>
    %460 = vector.extract_strided_slice %397 {offsets = [0, 16], sizes = [1, 4], strides = [1, 1]} : vector<1x32xf32> to vector<1x4xf32>
    %461 = vector.extract_strided_slice %398 {offsets = [0, 16], sizes = [1, 4], strides = [1, 1]} : vector<1x32xf32> to vector<1x4xf32>
    %cst_206 = arith.constant dense<0.000000e+00> : vector<1x1xf32>
    %462 = tpu.matmul %459, %460, %cst_206 {dimension_numbers = #tpu.dot_dimension_numbers<[1], [1], [0], [0], [0, 0, 1, 0], [], []>} : vector<1x4xf32>, vector<1x4xf32>, vector<1x1xf32> -> vector<1x1xf32>
    %cst_207 = arith.constant 5.000000e-01 : f32
    %463 = vector.broadcast %cst_207 : f32 to vector<1x1xf32>
    %464 = arith.mulf %462, %463 : vector<1x1xf32>
    %cst_208 = arith.constant dense<0xFF800000> : vector<1xf32>
    %465 = vector.multi_reduction <maximumf>, %464, %cst_208 [1] : vector<1x1xf32> to vector<1xf32>
    %466 = vector.shape_cast %465 : vector<1xf32> to vector<1x1xf32>
    %467 = arith.subf %464, %466 : vector<1x1xf32>
    %468 = math.exp %467 : vector<1x1xf32>
    %cst_209 = arith.constant dense<0.000000e+00> : vector<1xf32>
    %469 = vector.multi_reduction <add>, %468, %cst_209 [1] : vector<1x1xf32> to vector<1xf32>
    %470 = vector.shape_cast %469 : vector<1xf32> to vector<1x1xf32>
    %471 = tpu.reciprocal %470 {approx = true} : vector<1x1xf32> -> vector<1x1xf32>
    %472 = arith.mulf %468, %471 : vector<1x1xf32>
    %cst_210 = arith.constant dense<0.000000e+00> : vector<1x4xf32>
    %473 = tpu.matmul %472, %461, %cst_210 {dimension_numbers = #tpu.dot_dimension_numbers<[1], [0], [0], [1], [0, 0, 1, 1], [], []>} : vector<1x1xf32>, vector<1x4xf32>, vector<1x4xf32> -> vector<1x4xf32>
    %474 = vector.extract_strided_slice %396 {offsets = [0, 20], sizes = [1, 4], strides = [1, 1]} : vector<1x32xf32> to vector<1x4xf32>
    %475 = vector.extract_strided_slice %397 {offsets = [0, 20], sizes = [1, 4], strides = [1, 1]} : vector<1x32xf32> to vector<1x4xf32>
    %476 = vector.extract_strided_slice %398 {offsets = [0, 20], sizes = [1, 4], strides = [1, 1]} : vector<1x32xf32> to vector<1x4xf32>
    %cst_211 = arith.constant dense<0.000000e+00> : vector<1x1xf32>
    %477 = tpu.matmul %474, %475, %cst_211 {dimension_numbers = #tpu.dot_dimension_numbers<[1], [1], [0], [0], [0, 0, 1, 0], [], []>} : vector<1x4xf32>, vector<1x4xf32>, vector<1x1xf32> -> vector<1x1xf32>
    %cst_212 = arith.constant 5.000000e-01 : f32
    %478 = vector.broadcast %cst_212 : f32 to vector<1x1xf32>
    %479 = arith.mulf %477, %478 : vector<1x1xf32>
    %cst_213 = arith.constant dense<0xFF800000> : vector<1xf32>
    %480 = vector.multi_reduction <maximumf>, %479, %cst_213 [1] : vector<1x1xf32> to vector<1xf32>
    %481 = vector.shape_cast %480 : vector<1xf32> to vector<1x1xf32>
    %482 = arith.subf %479, %481 : vector<1x1xf32>
    %483 = math.exp %482 : vector<1x1xf32>
    %cst_214 = arith.constant dense<0.000000e+00> : vector<1xf32>
    %484 = vector.multi_reduction <add>, %483, %cst_214 [1] : vector<1x1xf32> to vector<1xf32>
    %485 = vector.shape_cast %484 : vector<1xf32> to vector<1x1xf32>
    %486 = tpu.reciprocal %485 {approx = true} : vector<1x1xf32> -> vector<1x1xf32>
    %487 = arith.mulf %483, %486 : vector<1x1xf32>
    %cst_215 = arith.constant dense<0.000000e+00> : vector<1x4xf32>
    %488 = tpu.matmul %487, %476, %cst_215 {dimension_numbers = #tpu.dot_dimension_numbers<[1], [0], [0], [1], [0, 0, 1, 1], [], []>} : vector<1x1xf32>, vector<1x4xf32>, vector<1x4xf32> -> vector<1x4xf32>
    %489 = vector.extract_strided_slice %396 {offsets = [0, 24], sizes = [1, 4], strides = [1, 1]} : vector<1x32xf32> to vector<1x4xf32>
    %490 = vector.extract_strided_slice %397 {offsets = [0, 24], sizes = [1, 4], strides = [1, 1]} : vector<1x32xf32> to vector<1x4xf32>
    %491 = vector.extract_strided_slice %398 {offsets = [0, 24], sizes = [1, 4], strides = [1, 1]} : vector<1x32xf32> to vector<1x4xf32>
    %cst_216 = arith.constant dense<0.000000e+00> : vector<1x1xf32>
    %492 = tpu.matmul %489, %490, %cst_216 {dimension_numbers = #tpu.dot_dimension_numbers<[1], [1], [0], [0], [0, 0, 1, 0], [], []>} : vector<1x4xf32>, vector<1x4xf32>, vector<1x1xf32> -> vector<1x1xf32>
    %cst_217 = arith.constant 5.000000e-01 : f32
    %493 = vector.broadcast %cst_217 : f32 to vector<1x1xf32>
    %494 = arith.mulf %492, %493 : vector<1x1xf32>
    %cst_218 = arith.constant dense<0xFF800000> : vector<1xf32>
    %495 = vector.multi_reduction <maximumf>, %494, %cst_218 [1] : vector<1x1xf32> to vector<1xf32>
    %496 = vector.shape_cast %495 : vector<1xf32> to vector<1x1xf32>
    %497 = arith.subf %494, %496 : vector<1x1xf32>
    %498 = math.exp %497 : vector<1x1xf32>
    %cst_219 = arith.constant dense<0.000000e+00> : vector<1xf32>
    %499 = vector.multi_reduction <add>, %498, %cst_219 [1] : vector<1x1xf32> to vector<1xf32>
    %500 = vector.shape_cast %499 : vector<1xf32> to vector<1x1xf32>
    %501 = tpu.reciprocal %500 {approx = true} : vector<1x1xf32> -> vector<1x1xf32>
    %502 = arith.mulf %498, %501 : vector<1x1xf32>
    %cst_220 = arith.constant dense<0.000000e+00> : vector<1x4xf32>
    %503 = tpu.matmul %502, %491, %cst_220 {dimension_numbers = #tpu.dot_dimension_numbers<[1], [0], [0], [1], [0, 0, 1, 1], [], []>} : vector<1x1xf32>, vector<1x4xf32>, vector<1x4xf32> -> vector<1x4xf32>
    %504 = vector.extract_strided_slice %396 {offsets = [0, 28], sizes = [1, 4], strides = [1, 1]} : vector<1x32xf32> to vector<1x4xf32>
    %505 = vector.extract_strided_slice %397 {offsets = [0, 28], sizes = [1, 4], strides = [1, 1]} : vector<1x32xf32> to vector<1x4xf32>
    %506 = vector.extract_strided_slice %398 {offsets = [0, 28], sizes = [1, 4], strides = [1, 1]} : vector<1x32xf32> to vector<1x4xf32>
    %cst_221 = arith.constant dense<0.000000e+00> : vector<1x1xf32>
    %507 = tpu.matmul %504, %505, %cst_221 {dimension_numbers = #tpu.dot_dimension_numbers<[1], [1], [0], [0], [0, 0, 1, 0], [], []>} : vector<1x4xf32>, vector<1x4xf32>, vector<1x1xf32> -> vector<1x1xf32>
    %cst_222 = arith.constant 5.000000e-01 : f32
    %508 = vector.broadcast %cst_222 : f32 to vector<1x1xf32>
    %509 = arith.mulf %507, %508 : vector<1x1xf32>
    %cst_223 = arith.constant dense<0xFF800000> : vector<1xf32>
    %510 = vector.multi_reduction <maximumf>, %509, %cst_223 [1] : vector<1x1xf32> to vector<1xf32>
    %511 = vector.shape_cast %510 : vector<1xf32> to vector<1x1xf32>
    %512 = arith.subf %509, %511 : vector<1x1xf32>
    %513 = math.exp %512 : vector<1x1xf32>
    %cst_224 = arith.constant dense<0.000000e+00> : vector<1xf32>
    %514 = vector.multi_reduction <add>, %513, %cst_224 [1] : vector<1x1xf32> to vector<1xf32>
    %515 = vector.shape_cast %514 : vector<1xf32> to vector<1x1xf32>
    %516 = tpu.reciprocal %515 {approx = true} : vector<1x1xf32> -> vector<1x1xf32>
    %517 = arith.mulf %513, %516 : vector<1x1xf32>
    %cst_225 = arith.constant dense<0.000000e+00> : vector<1x4xf32>
    %518 = tpu.matmul %517, %506, %cst_225 {dimension_numbers = #tpu.dot_dimension_numbers<[1], [0], [0], [1], [0, 0, 1, 1], [], []>} : vector<1x1xf32>, vector<1x4xf32>, vector<1x4xf32> -> vector<1x4xf32>
    %519 = tpu.concatenate %413, %428, %443, %458, %473, %488, %503, %518 in 1 : vector<1x4xf32>, vector<1x4xf32>, vector<1x4xf32>, vector<1x4xf32>, vector<1x4xf32>, vector<1x4xf32>, vector<1x4xf32>, vector<1x4xf32> -> vector<1x32xf32>
    %cst_226 = arith.constant dense<0.000000e+00> : vector<1x32xf32>
    %520 = tpu.matmul %519, %393, %cst_226 {dimension_numbers = #tpu.dot_dimension_numbers<[1], [0], [0], [1], [0, 0, 1, 1], [], []>} : vector<1x32xf32>, vector<32x32xf32>, vector<1x32xf32> -> vector<1x32xf32>
    %521 = arith.addf %520, %395 : vector<1x32xf32>
    %522 = arith.addf %521, %385 : vector<1x32xf32>
    %c1_227 = arith.constant 1 : index
    %c0_228 = arith.constant 0 : index
    %c0_229 = arith.constant 0 : index
    %523 = vector.load %arg8[%c1_227, %c0_228, %c0_229] : memref<2x1x32xf32, #tpu.memory_space<vmem>>, vector<1x1x32xf32>
    %524 = vector.shape_cast %523 : vector<1x1x32xf32> to vector<1x32xf32>
    %c1_230 = arith.constant 1 : index
    %c0_231 = arith.constant 0 : index
    %c0_232 = arith.constant 0 : index
    %525 = vector.load %arg9[%c1_230, %c0_231, %c0_232] : memref<2x1x32xf32, #tpu.memory_space<vmem>>, vector<1x1x32xf32>
    %526 = vector.shape_cast %525 : vector<1x1x32xf32> to vector<1x32xf32>
    %cst_233 = arith.constant dense<0.000000e+00> : vector<1xf32>
    %527 = vector.multi_reduction <add>, %522, %cst_233 [1] : vector<1x32xf32> to vector<1xf32>
    %528 = vector.shape_cast %527 : vector<1xf32> to vector<1x1xf32>
    %cst_234 = arith.constant 3.200000e+01 : f32
    %529 = vector.broadcast %cst_234 : f32 to vector<1x1xf32>
    %530 = arith.divf %528, %529 : vector<1x1xf32>
    %531 = vector.broadcast %530 : vector<1x1xf32> to vector<1x32xf32>
    %532 = arith.subf %522, %531 : vector<1x32xf32>
    %533 = vector.broadcast %530 : vector<1x1xf32> to vector<1x32xf32>
    %534 = arith.subf %522, %533 : vector<1x32xf32>
    %535 = arith.mulf %532, %534 : vector<1x32xf32>
    %cst_235 = arith.constant dense<0.000000e+00> : vector<1xf32>
    %536 = vector.multi_reduction <add>, %535, %cst_235 [1] : vector<1x32xf32> to vector<1xf32>
    %537 = vector.shape_cast %536 : vector<1xf32> to vector<1x1xf32>
    %cst_236 = arith.constant 3.200000e+01 : f32
    %538 = vector.broadcast %cst_236 : f32 to vector<1x1xf32>
    %539 = arith.divf %537, %538 : vector<1x1xf32>
    %540 = vector.broadcast %530 : vector<1x1xf32> to vector<1x32xf32>
    %541 = arith.subf %522, %540 : vector<1x32xf32>
    %cst_237 = arith.constant 9.99999974E-6 : f32
    %542 = vector.broadcast %cst_237 : f32 to vector<1x1xf32>
    %543 = arith.addf %539, %542 : vector<1x1xf32>
    %544 = math.rsqrt %543 : vector<1x1xf32>
    %545 = vector.broadcast %544 : vector<1x1xf32> to vector<1x32xf32>
    %546 = arith.mulf %541, %545 : vector<1x32xf32>
    %547 = arith.mulf %546, %524 : vector<1x32xf32>
    %548 = arith.addf %547, %526 : vector<1x32xf32>
    %c1_238 = arith.constant 1 : index
    %c0_239 = arith.constant 0 : index
    %c0_240 = arith.constant 0 : index
    %549 = vector.load %arg10[%c1_238, %c0_239, %c0_240] : memref<2x32x32xf32, #tpu.memory_space<vmem>>, vector<1x32x32xf32>
    %550 = vector.shape_cast %549 : vector<1x32x32xf32> to vector<32x32xf32>
    %c1_241 = arith.constant 1 : index
    %c0_242 = arith.constant 0 : index
    %c0_243 = arith.constant 0 : index
    %551 = vector.load %arg11[%c1_241, %c0_242, %c0_243] : memref<2x32x32xf32, #tpu.memory_space<vmem>>, vector<1x32x32xf32>
    %552 = vector.shape_cast %551 : vector<1x32x32xf32> to vector<32x32xf32>
    %c1_244 = arith.constant 1 : index
    %c0_245 = arith.constant 0 : index
    %c0_246 = arith.constant 0 : index
    %553 = vector.load %arg12[%c1_244, %c0_245, %c0_246] : memref<2x32x32xf32, #tpu.memory_space<vmem>>, vector<1x32x32xf32>
    %554 = vector.shape_cast %553 : vector<1x32x32xf32> to vector<32x32xf32>
    %c1_247 = arith.constant 1 : index
    %c0_248 = arith.constant 0 : index
    %c0_249 = arith.constant 0 : index
    %555 = vector.load %arg13[%c1_247, %c0_248, %c0_249] : memref<2x32x32xf32, #tpu.memory_space<vmem>>, vector<1x32x32xf32>
    %556 = vector.shape_cast %555 : vector<1x32x32xf32> to vector<32x32xf32>
    %c1_250 = arith.constant 1 : index
    %c0_251 = arith.constant 0 : index
    %c0_252 = arith.constant 0 : index
    %557 = vector.load %arg14[%c1_250, %c0_251, %c0_252] : memref<2x1x32xf32, #tpu.memory_space<vmem>>, vector<1x1x32xf32>
    %558 = vector.shape_cast %557 : vector<1x1x32xf32> to vector<1x32xf32>
    %cst_253 = arith.constant dense<0.000000e+00> : vector<1x32xf32>
    %559 = tpu.matmul %548, %550, %cst_253 {dimension_numbers = #tpu.dot_dimension_numbers<[1], [0], [0], [1], [0, 0, 1, 1], [], []>} : vector<1x32xf32>, vector<32x32xf32>, vector<1x32xf32> -> vector<1x32xf32>
    %cst_254 = arith.constant dense<0.000000e+00> : vector<8x32xf32>
    %560 = tpu.matmul %1, %552, %cst_254 {dimension_numbers = #tpu.dot_dimension_numbers<[1], [0], [0], [1], [0, 0, 1, 1], [], []>} : vector<8x32xf32>, vector<32x32xf32>, vector<8x32xf32> -> vector<8x32xf32>
    %cst_255 = arith.constant dense<0.000000e+00> : vector<8x32xf32>
    %561 = tpu.matmul %1, %554, %cst_255 {dimension_numbers = #tpu.dot_dimension_numbers<[1], [0], [0], [1], [0, 0, 1, 1], [], []>} : vector<8x32xf32>, vector<32x32xf32>, vector<8x32xf32> -> vector<8x32xf32>
    %562 = vector.extract_strided_slice %559 {offsets = [0, 0], sizes = [1, 4], strides = [1, 1]} : vector<1x32xf32> to vector<1x4xf32>
    %563 = vector.extract_strided_slice %560 {offsets = [0, 0], sizes = [8, 4], strides = [1, 1]} : vector<8x32xf32> to vector<8x4xf32>
    %564 = vector.extract_strided_slice %561 {offsets = [0, 0], sizes = [8, 4], strides = [1, 1]} : vector<8x32xf32> to vector<8x4xf32>
    %cst_256 = arith.constant dense<0.000000e+00> : vector<1x8xf32>
    %565 = tpu.matmul %562, %563, %cst_256 {dimension_numbers = #tpu.dot_dimension_numbers<[1], [1], [0], [0], [0, 0, 1, 0], [], []>} : vector<1x4xf32>, vector<8x4xf32>, vector<1x8xf32> -> vector<1x8xf32>
    %cst_257 = arith.constant 5.000000e-01 : f32
    %566 = vector.broadcast %cst_257 : f32 to vector<1x8xf32>
    %567 = arith.mulf %565, %566 : vector<1x8xf32>
    %cst_258 = arith.constant dense<0xFF800000> : vector<1xf32>
    %568 = vector.multi_reduction <maximumf>, %567, %cst_258 [1] : vector<1x8xf32> to vector<1xf32>
    %569 = vector.shape_cast %568 : vector<1xf32> to vector<1x1xf32>
    %570 = vector.broadcast %569 : vector<1x1xf32> to vector<1x8xf32>
    %571 = arith.subf %567, %570 : vector<1x8xf32>
    %572 = math.exp %571 : vector<1x8xf32>
    %cst_259 = arith.constant dense<0.000000e+00> : vector<1xf32>
    %573 = vector.multi_reduction <add>, %572, %cst_259 [1] : vector<1x8xf32> to vector<1xf32>
    %574 = vector.shape_cast %573 : vector<1xf32> to vector<1x1xf32>
    %575 = tpu.reciprocal %574 {approx = true} : vector<1x1xf32> -> vector<1x1xf32>
    %576 = vector.broadcast %575 : vector<1x1xf32> to vector<1x8xf32>
    %577 = arith.mulf %572, %576 : vector<1x8xf32>
    %cst_260 = arith.constant dense<0.000000e+00> : vector<1x4xf32>
    %578 = tpu.matmul %577, %564, %cst_260 {dimension_numbers = #tpu.dot_dimension_numbers<[1], [0], [0], [1], [0, 0, 1, 1], [], []>} : vector<1x8xf32>, vector<8x4xf32>, vector<1x4xf32> -> vector<1x4xf32>
    %579 = vector.extract_strided_slice %559 {offsets = [0, 4], sizes = [1, 4], strides = [1, 1]} : vector<1x32xf32> to vector<1x4xf32>
    %580 = vector.extract_strided_slice %560 {offsets = [0, 4], sizes = [8, 4], strides = [1, 1]} : vector<8x32xf32> to vector<8x4xf32>
    %581 = vector.extract_strided_slice %561 {offsets = [0, 4], sizes = [8, 4], strides = [1, 1]} : vector<8x32xf32> to vector<8x4xf32>
    %cst_261 = arith.constant dense<0.000000e+00> : vector<1x8xf32>
    %582 = tpu.matmul %579, %580, %cst_261 {dimension_numbers = #tpu.dot_dimension_numbers<[1], [1], [0], [0], [0, 0, 1, 0], [], []>} : vector<1x4xf32>, vector<8x4xf32>, vector<1x8xf32> -> vector<1x8xf32>
    %cst_262 = arith.constant 5.000000e-01 : f32
    %583 = vector.broadcast %cst_262 : f32 to vector<1x8xf32>
    %584 = arith.mulf %582, %583 : vector<1x8xf32>
    %cst_263 = arith.constant dense<0xFF800000> : vector<1xf32>
    %585 = vector.multi_reduction <maximumf>, %584, %cst_263 [1] : vector<1x8xf32> to vector<1xf32>
    %586 = vector.shape_cast %585 : vector<1xf32> to vector<1x1xf32>
    %587 = vector.broadcast %586 : vector<1x1xf32> to vector<1x8xf32>
    %588 = arith.subf %584, %587 : vector<1x8xf32>
    %589 = math.exp %588 : vector<1x8xf32>
    %cst_264 = arith.constant dense<0.000000e+00> : vector<1xf32>
    %590 = vector.multi_reduction <add>, %589, %cst_264 [1] : vector<1x8xf32> to vector<1xf32>
    %591 = vector.shape_cast %590 : vector<1xf32> to vector<1x1xf32>
    %592 = tpu.reciprocal %591 {approx = true} : vector<1x1xf32> -> vector<1x1xf32>
    %593 = vector.broadcast %592 : vector<1x1xf32> to vector<1x8xf32>
    %594 = arith.mulf %589, %593 : vector<1x8xf32>
    %cst_265 = arith.constant dense<0.000000e+00> : vector<1x4xf32>
    %595 = tpu.matmul %594, %581, %cst_265 {dimension_numbers = #tpu.dot_dimension_numbers<[1], [0], [0], [1], [0, 0, 1, 1], [], []>} : vector<1x8xf32>, vector<8x4xf32>, vector<1x4xf32> -> vector<1x4xf32>
    %596 = vector.extract_strided_slice %559 {offsets = [0, 8], sizes = [1, 4], strides = [1, 1]} : vector<1x32xf32> to vector<1x4xf32>
    %597 = vector.extract_strided_slice %560 {offsets = [0, 8], sizes = [8, 4], strides = [1, 1]} : vector<8x32xf32> to vector<8x4xf32>
    %598 = vector.extract_strided_slice %561 {offsets = [0, 8], sizes = [8, 4], strides = [1, 1]} : vector<8x32xf32> to vector<8x4xf32>
    %cst_266 = arith.constant dense<0.000000e+00> : vector<1x8xf32>
    %599 = tpu.matmul %596, %597, %cst_266 {dimension_numbers = #tpu.dot_dimension_numbers<[1], [1], [0], [0], [0, 0, 1, 0], [], []>} : vector<1x4xf32>, vector<8x4xf32>, vector<1x8xf32> -> vector<1x8xf32>
    %cst_267 = arith.constant 5.000000e-01 : f32
    %600 = vector.broadcast %cst_267 : f32 to vector<1x8xf32>
    %601 = arith.mulf %599, %600 : vector<1x8xf32>
    %cst_268 = arith.constant dense<0xFF800000> : vector<1xf32>
    %602 = vector.multi_reduction <maximumf>, %601, %cst_268 [1] : vector<1x8xf32> to vector<1xf32>
    %603 = vector.shape_cast %602 : vector<1xf32> to vector<1x1xf32>
    %604 = vector.broadcast %603 : vector<1x1xf32> to vector<1x8xf32>
    %605 = arith.subf %601, %604 : vector<1x8xf32>
    %606 = math.exp %605 : vector<1x8xf32>
    %cst_269 = arith.constant dense<0.000000e+00> : vector<1xf32>
    %607 = vector.multi_reduction <add>, %606, %cst_269 [1] : vector<1x8xf32> to vector<1xf32>
    %608 = vector.shape_cast %607 : vector<1xf32> to vector<1x1xf32>
    %609 = tpu.reciprocal %608 {approx = true} : vector<1x1xf32> -> vector<1x1xf32>
    %610 = vector.broadcast %609 : vector<1x1xf32> to vector<1x8xf32>
    %611 = arith.mulf %606, %610 : vector<1x8xf32>
    %cst_270 = arith.constant dense<0.000000e+00> : vector<1x4xf32>
    %612 = tpu.matmul %611, %598, %cst_270 {dimension_numbers = #tpu.dot_dimension_numbers<[1], [0], [0], [1], [0, 0, 1, 1], [], []>} : vector<1x8xf32>, vector<8x4xf32>, vector<1x4xf32> -> vector<1x4xf32>
    %613 = vector.extract_strided_slice %559 {offsets = [0, 12], sizes = [1, 4], strides = [1, 1]} : vector<1x32xf32> to vector<1x4xf32>
    %614 = vector.extract_strided_slice %560 {offsets = [0, 12], sizes = [8, 4], strides = [1, 1]} : vector<8x32xf32> to vector<8x4xf32>
    %615 = vector.extract_strided_slice %561 {offsets = [0, 12], sizes = [8, 4], strides = [1, 1]} : vector<8x32xf32> to vector<8x4xf32>
    %cst_271 = arith.constant dense<0.000000e+00> : vector<1x8xf32>
    %616 = tpu.matmul %613, %614, %cst_271 {dimension_numbers = #tpu.dot_dimension_numbers<[1], [1], [0], [0], [0, 0, 1, 0], [], []>} : vector<1x4xf32>, vector<8x4xf32>, vector<1x8xf32> -> vector<1x8xf32>
    %cst_272 = arith.constant 5.000000e-01 : f32
    %617 = vector.broadcast %cst_272 : f32 to vector<1x8xf32>
    %618 = arith.mulf %616, %617 : vector<1x8xf32>
    %cst_273 = arith.constant dense<0xFF800000> : vector<1xf32>
    %619 = vector.multi_reduction <maximumf>, %618, %cst_273 [1] : vector<1x8xf32> to vector<1xf32>
    %620 = vector.shape_cast %619 : vector<1xf32> to vector<1x1xf32>
    %621 = vector.broadcast %620 : vector<1x1xf32> to vector<1x8xf32>
    %622 = arith.subf %618, %621 : vector<1x8xf32>
    %623 = math.exp %622 : vector<1x8xf32>
    %cst_274 = arith.constant dense<0.000000e+00> : vector<1xf32>
    %624 = vector.multi_reduction <add>, %623, %cst_274 [1] : vector<1x8xf32> to vector<1xf32>
    %625 = vector.shape_cast %624 : vector<1xf32> to vector<1x1xf32>
    %626 = tpu.reciprocal %625 {approx = true} : vector<1x1xf32> -> vector<1x1xf32>
    %627 = vector.broadcast %626 : vector<1x1xf32> to vector<1x8xf32>
    %628 = arith.mulf %623, %627 : vector<1x8xf32>
    %cst_275 = arith.constant dense<0.000000e+00> : vector<1x4xf32>
    %629 = tpu.matmul %628, %615, %cst_275 {dimension_numbers = #tpu.dot_dimension_numbers<[1], [0], [0], [1], [0, 0, 1, 1], [], []>} : vector<1x8xf32>, vector<8x4xf32>, vector<1x4xf32> -> vector<1x4xf32>
    %630 = vector.extract_strided_slice %559 {offsets = [0, 16], sizes = [1, 4], strides = [1, 1]} : vector<1x32xf32> to vector<1x4xf32>
    %631 = vector.extract_strided_slice %560 {offsets = [0, 16], sizes = [8, 4], strides = [1, 1]} : vector<8x32xf32> to vector<8x4xf32>
    %632 = vector.extract_strided_slice %561 {offsets = [0, 16], sizes = [8, 4], strides = [1, 1]} : vector<8x32xf32> to vector<8x4xf32>
    %cst_276 = arith.constant dense<0.000000e+00> : vector<1x8xf32>
    %633 = tpu.matmul %630, %631, %cst_276 {dimension_numbers = #tpu.dot_dimension_numbers<[1], [1], [0], [0], [0, 0, 1, 0], [], []>} : vector<1x4xf32>, vector<8x4xf32>, vector<1x8xf32> -> vector<1x8xf32>
    %cst_277 = arith.constant 5.000000e-01 : f32
    %634 = vector.broadcast %cst_277 : f32 to vector<1x8xf32>
    %635 = arith.mulf %633, %634 : vector<1x8xf32>
    %cst_278 = arith.constant dense<0xFF800000> : vector<1xf32>
    %636 = vector.multi_reduction <maximumf>, %635, %cst_278 [1] : vector<1x8xf32> to vector<1xf32>
    %637 = vector.shape_cast %636 : vector<1xf32> to vector<1x1xf32>
    %638 = vector.broadcast %637 : vector<1x1xf32> to vector<1x8xf32>
    %639 = arith.subf %635, %638 : vector<1x8xf32>
    %640 = math.exp %639 : vector<1x8xf32>
    %cst_279 = arith.constant dense<0.000000e+00> : vector<1xf32>
    %641 = vector.multi_reduction <add>, %640, %cst_279 [1] : vector<1x8xf32> to vector<1xf32>
    %642 = vector.shape_cast %641 : vector<1xf32> to vector<1x1xf32>
    %643 = tpu.reciprocal %642 {approx = true} : vector<1x1xf32> -> vector<1x1xf32>
    %644 = vector.broadcast %643 : vector<1x1xf32> to vector<1x8xf32>
    %645 = arith.mulf %640, %644 : vector<1x8xf32>
    %cst_280 = arith.constant dense<0.000000e+00> : vector<1x4xf32>
    %646 = tpu.matmul %645, %632, %cst_280 {dimension_numbers = #tpu.dot_dimension_numbers<[1], [0], [0], [1], [0, 0, 1, 1], [], []>} : vector<1x8xf32>, vector<8x4xf32>, vector<1x4xf32> -> vector<1x4xf32>
    %647 = vector.extract_strided_slice %559 {offsets = [0, 20], sizes = [1, 4], strides = [1, 1]} : vector<1x32xf32> to vector<1x4xf32>
    %648 = vector.extract_strided_slice %560 {offsets = [0, 20], sizes = [8, 4], strides = [1, 1]} : vector<8x32xf32> to vector<8x4xf32>
    %649 = vector.extract_strided_slice %561 {offsets = [0, 20], sizes = [8, 4], strides = [1, 1]} : vector<8x32xf32> to vector<8x4xf32>
    %cst_281 = arith.constant dense<0.000000e+00> : vector<1x8xf32>
    %650 = tpu.matmul %647, %648, %cst_281 {dimension_numbers = #tpu.dot_dimension_numbers<[1], [1], [0], [0], [0, 0, 1, 0], [], []>} : vector<1x4xf32>, vector<8x4xf32>, vector<1x8xf32> -> vector<1x8xf32>
    %cst_282 = arith.constant 5.000000e-01 : f32
    %651 = vector.broadcast %cst_282 : f32 to vector<1x8xf32>
    %652 = arith.mulf %650, %651 : vector<1x8xf32>
    %cst_283 = arith.constant dense<0xFF800000> : vector<1xf32>
    %653 = vector.multi_reduction <maximumf>, %652, %cst_283 [1] : vector<1x8xf32> to vector<1xf32>
    %654 = vector.shape_cast %653 : vector<1xf32> to vector<1x1xf32>
    %655 = vector.broadcast %654 : vector<1x1xf32> to vector<1x8xf32>
    %656 = arith.subf %652, %655 : vector<1x8xf32>
    %657 = math.exp %656 : vector<1x8xf32>
    %cst_284 = arith.constant dense<0.000000e+00> : vector<1xf32>
    %658 = vector.multi_reduction <add>, %657, %cst_284 [1] : vector<1x8xf32> to vector<1xf32>
    %659 = vector.shape_cast %658 : vector<1xf32> to vector<1x1xf32>
    %660 = tpu.reciprocal %659 {approx = true} : vector<1x1xf32> -> vector<1x1xf32>
    %661 = vector.broadcast %660 : vector<1x1xf32> to vector<1x8xf32>
    %662 = arith.mulf %657, %661 : vector<1x8xf32>
    %cst_285 = arith.constant dense<0.000000e+00> : vector<1x4xf32>
    %663 = tpu.matmul %662, %649, %cst_285 {dimension_numbers = #tpu.dot_dimension_numbers<[1], [0], [0], [1], [0, 0, 1, 1], [], []>} : vector<1x8xf32>, vector<8x4xf32>, vector<1x4xf32> -> vector<1x4xf32>
    %664 = vector.extract_strided_slice %559 {offsets = [0, 24], sizes = [1, 4], strides = [1, 1]} : vector<1x32xf32> to vector<1x4xf32>
    %665 = vector.extract_strided_slice %560 {offsets = [0, 24], sizes = [8, 4], strides = [1, 1]} : vector<8x32xf32> to vector<8x4xf32>
    %666 = vector.extract_strided_slice %561 {offsets = [0, 24], sizes = [8, 4], strides = [1, 1]} : vector<8x32xf32> to vector<8x4xf32>
    %cst_286 = arith.constant dense<0.000000e+00> : vector<1x8xf32>
    %667 = tpu.matmul %664, %665, %cst_286 {dimension_numbers = #tpu.dot_dimension_numbers<[1], [1], [0], [0], [0, 0, 1, 0], [], []>} : vector<1x4xf32>, vector<8x4xf32>, vector<1x8xf32> -> vector<1x8xf32>
    %cst_287 = arith.constant 5.000000e-01 : f32
    %668 = vector.broadcast %cst_287 : f32 to vector<1x8xf32>
    %669 = arith.mulf %667, %668 : vector<1x8xf32>
    %cst_288 = arith.constant dense<0xFF800000> : vector<1xf32>
    %670 = vector.multi_reduction <maximumf>, %669, %cst_288 [1] : vector<1x8xf32> to vector<1xf32>
    %671 = vector.shape_cast %670 : vector<1xf32> to vector<1x1xf32>
    %672 = vector.broadcast %671 : vector<1x1xf32> to vector<1x8xf32>
    %673 = arith.subf %669, %672 : vector<1x8xf32>
    %674 = math.exp %673 : vector<1x8xf32>
    %cst_289 = arith.constant dense<0.000000e+00> : vector<1xf32>
    %675 = vector.multi_reduction <add>, %674, %cst_289 [1] : vector<1x8xf32> to vector<1xf32>
    %676 = vector.shape_cast %675 : vector<1xf32> to vector<1x1xf32>
    %677 = tpu.reciprocal %676 {approx = true} : vector<1x1xf32> -> vector<1x1xf32>
    %678 = vector.broadcast %677 : vector<1x1xf32> to vector<1x8xf32>
    %679 = arith.mulf %674, %678 : vector<1x8xf32>
    %cst_290 = arith.constant dense<0.000000e+00> : vector<1x4xf32>
    %680 = tpu.matmul %679, %666, %cst_290 {dimension_numbers = #tpu.dot_dimension_numbers<[1], [0], [0], [1], [0, 0, 1, 1], [], []>} : vector<1x8xf32>, vector<8x4xf32>, vector<1x4xf32> -> vector<1x4xf32>
    %681 = vector.extract_strided_slice %559 {offsets = [0, 28], sizes = [1, 4], strides = [1, 1]} : vector<1x32xf32> to vector<1x4xf32>
    %682 = vector.extract_strided_slice %560 {offsets = [0, 28], sizes = [8, 4], strides = [1, 1]} : vector<8x32xf32> to vector<8x4xf32>
    %683 = vector.extract_strided_slice %561 {offsets = [0, 28], sizes = [8, 4], strides = [1, 1]} : vector<8x32xf32> to vector<8x4xf32>
    %cst_291 = arith.constant dense<0.000000e+00> : vector<1x8xf32>
    %684 = tpu.matmul %681, %682, %cst_291 {dimension_numbers = #tpu.dot_dimension_numbers<[1], [1], [0], [0], [0, 0, 1, 0], [], []>} : vector<1x4xf32>, vector<8x4xf32>, vector<1x8xf32> -> vector<1x8xf32>
    %cst_292 = arith.constant 5.000000e-01 : f32
    %685 = vector.broadcast %cst_292 : f32 to vector<1x8xf32>
    %686 = arith.mulf %684, %685 : vector<1x8xf32>
    %cst_293 = arith.constant dense<0xFF800000> : vector<1xf32>
    %687 = vector.multi_reduction <maximumf>, %686, %cst_293 [1] : vector<1x8xf32> to vector<1xf32>
    %688 = vector.shape_cast %687 : vector<1xf32> to vector<1x1xf32>
    %689 = vector.broadcast %688 : vector<1x1xf32> to vector<1x8xf32>
    %690 = arith.subf %686, %689 : vector<1x8xf32>
    %691 = math.exp %690 : vector<1x8xf32>
    %cst_294 = arith.constant dense<0.000000e+00> : vector<1xf32>
    %692 = vector.multi_reduction <add>, %691, %cst_294 [1] : vector<1x8xf32> to vector<1xf32>
    %693 = vector.shape_cast %692 : vector<1xf32> to vector<1x1xf32>
    %694 = tpu.reciprocal %693 {approx = true} : vector<1x1xf32> -> vector<1x1xf32>
    %695 = vector.broadcast %694 : vector<1x1xf32> to vector<1x8xf32>
    %696 = arith.mulf %691, %695 : vector<1x8xf32>
    %cst_295 = arith.constant dense<0.000000e+00> : vector<1x4xf32>
    %697 = tpu.matmul %696, %683, %cst_295 {dimension_numbers = #tpu.dot_dimension_numbers<[1], [0], [0], [1], [0, 0, 1, 1], [], []>} : vector<1x8xf32>, vector<8x4xf32>, vector<1x4xf32> -> vector<1x4xf32>
    %698 = tpu.concatenate %578, %595, %612, %629, %646, %663, %680, %697 in 1 : vector<1x4xf32>, vector<1x4xf32>, vector<1x4xf32>, vector<1x4xf32>, vector<1x4xf32>, vector<1x4xf32>, vector<1x4xf32>, vector<1x4xf32> -> vector<1x32xf32>
    %cst_296 = arith.constant dense<0.000000e+00> : vector<1x32xf32>
    %699 = tpu.matmul %698, %556, %cst_296 {dimension_numbers = #tpu.dot_dimension_numbers<[1], [0], [0], [1], [0, 0, 1, 1], [], []>} : vector<1x32xf32>, vector<32x32xf32>, vector<1x32xf32> -> vector<1x32xf32>
    %700 = arith.addf %699, %558 : vector<1x32xf32>
    %701 = arith.addf %700, %548 : vector<1x32xf32>
    %c1_297 = arith.constant 1 : index
    %c0_298 = arith.constant 0 : index
    %c0_299 = arith.constant 0 : index
    %702 = vector.load %arg15[%c1_297, %c0_298, %c0_299] : memref<2x1x32xf32, #tpu.memory_space<vmem>>, vector<1x1x32xf32>
    %703 = vector.shape_cast %702 : vector<1x1x32xf32> to vector<1x32xf32>
    %c1_300 = arith.constant 1 : index
    %c0_301 = arith.constant 0 : index
    %c0_302 = arith.constant 0 : index
    %704 = vector.load %arg16[%c1_300, %c0_301, %c0_302] : memref<2x1x32xf32, #tpu.memory_space<vmem>>, vector<1x1x32xf32>
    %705 = vector.shape_cast %704 : vector<1x1x32xf32> to vector<1x32xf32>
    %cst_303 = arith.constant dense<0.000000e+00> : vector<1xf32>
    %706 = vector.multi_reduction <add>, %701, %cst_303 [1] : vector<1x32xf32> to vector<1xf32>
    %707 = vector.shape_cast %706 : vector<1xf32> to vector<1x1xf32>
    %cst_304 = arith.constant 3.200000e+01 : f32
    %708 = vector.broadcast %cst_304 : f32 to vector<1x1xf32>
    %709 = arith.divf %707, %708 : vector<1x1xf32>
    %710 = vector.broadcast %709 : vector<1x1xf32> to vector<1x32xf32>
    %711 = arith.subf %701, %710 : vector<1x32xf32>
    %712 = vector.broadcast %709 : vector<1x1xf32> to vector<1x32xf32>
    %713 = arith.subf %701, %712 : vector<1x32xf32>
    %714 = arith.mulf %711, %713 : vector<1x32xf32>
    %cst_305 = arith.constant dense<0.000000e+00> : vector<1xf32>
    %715 = vector.multi_reduction <add>, %714, %cst_305 [1] : vector<1x32xf32> to vector<1xf32>
    %716 = vector.shape_cast %715 : vector<1xf32> to vector<1x1xf32>
    %cst_306 = arith.constant 3.200000e+01 : f32
    %717 = vector.broadcast %cst_306 : f32 to vector<1x1xf32>
    %718 = arith.divf %716, %717 : vector<1x1xf32>
    %719 = vector.broadcast %709 : vector<1x1xf32> to vector<1x32xf32>
    %720 = arith.subf %701, %719 : vector<1x32xf32>
    %cst_307 = arith.constant 9.99999974E-6 : f32
    %721 = vector.broadcast %cst_307 : f32 to vector<1x1xf32>
    %722 = arith.addf %718, %721 : vector<1x1xf32>
    %723 = math.rsqrt %722 : vector<1x1xf32>
    %724 = vector.broadcast %723 : vector<1x1xf32> to vector<1x32xf32>
    %725 = arith.mulf %720, %724 : vector<1x32xf32>
    %726 = arith.mulf %725, %703 : vector<1x32xf32>
    %727 = arith.addf %726, %705 : vector<1x32xf32>
    %c1_308 = arith.constant 1 : index
    %c0_309 = arith.constant 0 : index
    %c0_310 = arith.constant 0 : index
    %728 = vector.load %arg17[%c1_308, %c0_309, %c0_310] : memref<2x32x128xf32, #tpu.memory_space<vmem>>, vector<1x32x128xf32>
    %729 = vector.shape_cast %728 : vector<1x32x128xf32> to vector<32x128xf32>
    %cst_311 = arith.constant dense<0.000000e+00> : vector<1x128xf32>
    %730 = tpu.matmul %727, %729, %cst_311 {dimension_numbers = #tpu.dot_dimension_numbers<[1], [0], [0], [1], [0, 0, 1, 1], [], []>} : vector<1x32xf32>, vector<32x128xf32>, vector<1x128xf32> -> vector<1x128xf32>
    %c1_312 = arith.constant 1 : index
    %c0_313 = arith.constant 0 : index
    %c0_314 = arith.constant 0 : index
    %731 = vector.load %arg18[%c1_312, %c0_313, %c0_314] : memref<2x1x128xf32, #tpu.memory_space<vmem>>, vector<1x1x128xf32>
    %732 = vector.shape_cast %731 : vector<1x1x128xf32> to vector<1x128xf32>
    %733 = arith.addf %730, %732 : vector<1x128xf32>
    %cst_315 = arith.constant 0.000000e+00 : f32
    %734 = vector.broadcast %cst_315 : f32 to vector<1x128xf32>
    %735 = arith.maximumf %733, %734 : vector<1x128xf32>
    %c1_316 = arith.constant 1 : index
    %c0_317 = arith.constant 0 : index
    %c0_318 = arith.constant 0 : index
    %736 = vector.load %arg19[%c1_316, %c0_317, %c0_318] : memref<2x128x32xf32, #tpu.memory_space<vmem>>, vector<1x128x32xf32>
    %737 = vector.shape_cast %736 : vector<1x128x32xf32> to vector<128x32xf32>
    %cst_319 = arith.constant dense<0.000000e+00> : vector<1x32xf32>
    %738 = tpu.matmul %735, %737, %cst_319 {dimension_numbers = #tpu.dot_dimension_numbers<[1], [0], [0], [1], [0, 0, 1, 1], [], []>} : vector<1x128xf32>, vector<128x32xf32>, vector<1x32xf32> -> vector<1x32xf32>
    %c1_320 = arith.constant 1 : index
    %c0_321 = arith.constant 0 : index
    %c0_322 = arith.constant 0 : index
    %739 = vector.load %arg20[%c1_320, %c0_321, %c0_322] : memref<2x1x32xf32, #tpu.memory_space<vmem>>, vector<1x1x32xf32>
    %740 = vector.shape_cast %739 : vector<1x1x32xf32> to vector<1x32xf32>
    %741 = arith.addf %738, %740 : vector<1x32xf32>
    %742 = arith.addf %741, %727 : vector<1x32xf32>
    %c1_323 = arith.constant 1 : index
    %c0_324 = arith.constant 0 : index
    %c0_325 = arith.constant 0 : index
    %743 = vector.load %arg21[%c1_323, %c0_324, %c0_325] : memref<2x1x32xf32, #tpu.memory_space<vmem>>, vector<1x1x32xf32>
    %744 = vector.shape_cast %743 : vector<1x1x32xf32> to vector<1x32xf32>
    %c1_326 = arith.constant 1 : index
    %c0_327 = arith.constant 0 : index
    %c0_328 = arith.constant 0 : index
    %745 = vector.load %arg22[%c1_326, %c0_327, %c0_328] : memref<2x1x32xf32, #tpu.memory_space<vmem>>, vector<1x1x32xf32>
    %746 = vector.shape_cast %745 : vector<1x1x32xf32> to vector<1x32xf32>
    %cst_329 = arith.constant dense<0.000000e+00> : vector<1xf32>
    %747 = vector.multi_reduction <add>, %742, %cst_329 [1] : vector<1x32xf32> to vector<1xf32>
    %748 = vector.shape_cast %747 : vector<1xf32> to vector<1x1xf32>
    %cst_330 = arith.constant 3.200000e+01 : f32
    %749 = vector.broadcast %cst_330 : f32 to vector<1x1xf32>
    %750 = arith.divf %748, %749 : vector<1x1xf32>
    %751 = vector.broadcast %750 : vector<1x1xf32> to vector<1x32xf32>
    %752 = arith.subf %742, %751 : vector<1x32xf32>
    %753 = vector.broadcast %750 : vector<1x1xf32> to vector<1x32xf32>
    %754 = arith.subf %742, %753 : vector<1x32xf32>
    %755 = arith.mulf %752, %754 : vector<1x32xf32>
    %cst_331 = arith.constant dense<0.000000e+00> : vector<1xf32>
    %756 = vector.multi_reduction <add>, %755, %cst_331 [1] : vector<1x32xf32> to vector<1xf32>
    %757 = vector.shape_cast %756 : vector<1xf32> to vector<1x1xf32>
    %cst_332 = arith.constant 3.200000e+01 : f32
    %758 = vector.broadcast %cst_332 : f32 to vector<1x1xf32>
    %759 = arith.divf %757, %758 : vector<1x1xf32>
    %760 = vector.broadcast %750 : vector<1x1xf32> to vector<1x32xf32>
    %761 = arith.subf %742, %760 : vector<1x32xf32>
    %cst_333 = arith.constant 9.99999974E-6 : f32
    %762 = vector.broadcast %cst_333 : f32 to vector<1x1xf32>
    %763 = arith.addf %759, %762 : vector<1x1xf32>
    %764 = math.rsqrt %763 : vector<1x1xf32>
    %765 = vector.broadcast %764 : vector<1x1xf32> to vector<1x32xf32>
    %766 = arith.mulf %761, %765 : vector<1x32xf32>
    %767 = arith.mulf %766, %744 : vector<1x32xf32>
    %768 = arith.addf %767, %746 : vector<1x32xf32>
    %c0_334 = arith.constant 0 : index
    %c0_335 = arith.constant 0 : index
    %769 = vector.load %arg23[%c0_334, %c0_335] : memref<32x1xf32, #tpu.memory_space<vmem>>, vector<32x1xf32>
    %cst_336 = arith.constant dense<0.000000e+00> : vector<1x1xf32>
    %770 = tpu.matmul %768, %769, %cst_336 {dimension_numbers = #tpu.dot_dimension_numbers<[1], [0], [0], [1], [0, 0, 1, 1], [], []>} : vector<1x32xf32>, vector<32x1xf32>, vector<1x1xf32> -> vector<1x1xf32>
    %c0_337 = arith.constant 0 : index
    %c0_338 = arith.constant 0 : index
    %771 = vector.load %arg24[%c0_337, %c0_338] : memref<1x1xf32, #tpu.memory_space<vmem>>, vector<1x1xf32>
    %772 = arith.addf %770, %771 : vector<1x1xf32>
    %c0_339 = arith.constant 0 : index
    %c0_340 = arith.constant 0 : index
    %c0_341 = arith.constant 0 : index
    %773 = vector.load %arg25[%c0_339, %c0_340, %c0_341] : memref<1x1x1xf32, #tpu.memory_space<vmem>>, vector<1x1x1xf32>
    %774 = vector.shape_cast %773 : vector<1x1x1xf32> to vector<1x1xf32>
    %775 = vector.shape_cast %772 : vector<1x1xf32> to vector<1x1x1xf32>
    tpu.vector_store %arg25[%c0_339, %c0_340, %c0_341], %775 {strides = array<i32>} : memref<1x1x1xf32, #tpu.memory_space<vmem>>, vector<1x1x1xf32>,
    return
  }
  func.func @transform_0(%arg0: i32) -> (i32, i32, i32) {
    %c0_i32 = arith.constant 0 : i32
    %c0_i32_0 = arith.constant 0 : i32
    %c0_i32_1 = arith.constant 0 : i32
    return %arg0, %c0_i32, %c0_i32_0 : i32, i32, i32
  }
  func.func @transform_1(%arg0: i32) -> (i32, i32) {
    %c0_i32 = arith.constant 0 : i32
    %c0_i32_0 = arith.constant 0 : i32
    %c0_i32_1 = arith.constant 0 : i32
    return %c0_i32, %c0_i32_0 : i32, i32
  }
  func.func @transform_2(%arg0: i32) -> (i32, i32, i32) {
    %c0_i32 = arith.constant 0 : i32
    %c0_i32_0 = arith.constant 0 : i32
    %c0_i32_1 = arith.constant 0 : i32
    %c0_i32_2 = arith.constant 0 : i32
    return %c0_i32, %c0_i32_0, %c0_i32_1 : i32, i32, i32
  }
  func.func @transform_3(%arg0: i32) -> (i32, i32, i32) {
    %c0_i32 = arith.constant 0 : i32
    %c0_i32_0 = arith.constant 0 : i32
    %c0_i32_1 = arith.constant 0 : i32
    %c0_i32_2 = arith.constant 0 : i32
    return %c0_i32, %c0_i32_0, %c0_i32_1 : i32, i32, i32
  }
  func.func @transform_4(%arg0: i32) -> (i32, i32, i32) {
    %c0_i32 = arith.constant 0 : i32
    %c0_i32_0 = arith.constant 0 : i32
    %c0_i32_1 = arith.constant 0 : i32
    %c0_i32_2 = arith.constant 0 : i32
    return %c0_i32, %c0_i32_0, %c0_i32_1 : i32, i32, i32
  }
  func.func @transform_5(%arg0: i32) -> (i32, i32, i32) {
    %c0_i32 = arith.constant 0 : i32
    %c0_i32_0 = arith.constant 0 : i32
    %c0_i32_1 = arith.constant 0 : i32
    %c0_i32_2 = arith.constant 0 : i32
    return %c0_i32, %c0_i32_0, %c0_i32_1 : i32, i32, i32
  }
  func.func @transform_6(%arg0: i32) -> (i32, i32, i32) {
    %c0_i32 = arith.constant 0 : i32
    %c0_i32_0 = arith.constant 0 : i32
    %c0_i32_1 = arith.constant 0 : i32
    %c0_i32_2 = arith.constant 0 : i32
    return %c0_i32, %c0_i32_0, %c0_i32_1 : i32, i32, i32
  }
  func.func @transform_7(%arg0: i32) -> (i32, i32, i32) {
    %c0_i32 = arith.constant 0 : i32
    %c0_i32_0 = arith.constant 0 : i32
    %c0_i32_1 = arith.constant 0 : i32
    %c0_i32_2 = arith.constant 0 : i32
    return %c0_i32, %c0_i32_0, %c0_i32_1 : i32, i32, i32
  }
  func.func @transform_8(%arg0: i32) -> (i32, i32, i32) {
    %c0_i32 = arith.constant 0 : i32
    %c0_i32_0 = arith.constant 0 : i32
    %c0_i32_1 = arith.constant 0 : i32
    %c0_i32_2 = arith.constant 0 : i32
    return %c0_i32, %c0_i32_0, %c0_i32_1 : i32, i32, i32
  }
  func.func @transform_9(%arg0: i32) -> (i32, i32, i32) {
    %c0_i32 = arith.constant 0 : i32
    %c0_i32_0 = arith.constant 0 : i32
    %c0_i32_1 = arith.constant 0 : i32
    %c0_i32_2 = arith.constant 0 : i32
    return %c0_i32, %c0_i32_0, %c0_i32_1 : i32, i32, i32
  }
  func.func @transform_10(%arg0: i32) -> (i32, i32, i32) {
    %c0_i32 = arith.constant 0 : i32
    %c0_i32_0 = arith.constant 0 : i32
    %c0_i32_1 = arith.constant 0 : i32
    %c0_i32_2 = arith.constant 0 : i32
    return %c0_i32, %c0_i32_0, %c0_i32_1 : i32, i32, i32
  }
  func.func @transform_11(%arg0: i32) -> (i32, i32, i32) {
    %c0_i32 = arith.constant 0 : i32
    %c0_i32_0 = arith.constant 0 : i32
    %c0_i32_1 = arith.constant 0 : i32
    %c0_i32_2 = arith.constant 0 : i32
    return %c0_i32, %c0_i32_0, %c0_i32_1 : i32, i32, i32
  }
  func.func @transform_12(%arg0: i32) -> (i32, i32, i32) {
    %c0_i32 = arith.constant 0 : i32
    %c0_i32_0 = arith.constant 0 : i32
    %c0_i32_1 = arith.constant 0 : i32
    %c0_i32_2 = arith.constant 0 : i32
    return %c0_i32, %c0_i32_0, %c0_i32_1 : i32, i32, i32
  }
  func.func @transform_13(%arg0: i32) -> (i32, i32, i32) {
    %c0_i32 = arith.constant 0 : i32
    %c0_i32_0 = arith.constant 0 : i32
    %c0_i32_1 = arith.constant 0 : i32
    %c0_i32_2 = arith.constant 0 : i32
    return %c0_i32, %c0_i32_0, %c0_i32_1 : i32, i32, i32
  }
  func.func @transform_14(%arg0: i32) -> (i32, i32, i32) {
    %c0_i32 = arith.constant 0 : i32
    %c0_i32_0 = arith.constant 0 : i32
    %c0_i32_1 = arith.constant 0 : i32
    %c0_i32_2 = arith.constant 0 : i32
    return %c0_i32, %c0_i32_0, %c0_i32_1 : i32, i32, i32
  }
  func.func @transform_15(%arg0: i32) -> (i32, i32, i32) {
    %c0_i32 = arith.constant 0 : i32
    %c0_i32_0 = arith.constant 0 : i32
    %c0_i32_1 = arith.constant 0 : i32
    %c0_i32_2 = arith.constant 0 : i32
    return %c0_i32, %c0_i32_0, %c0_i32_1 : i32, i32, i32
  }
  func.func @transform_16(%arg0: i32) -> (i32, i32, i32) {
    %c0_i32 = arith.constant 0 : i32
    %c0_i32_0 = arith.constant 0 : i32
    %c0_i32_1 = arith.constant 0 : i32
    %c0_i32_2 = arith.constant 0 : i32
    return %c0_i32, %c0_i32_0, %c0_i32_1 : i32, i32, i32
  }
  func.func @transform_17(%arg0: i32) -> (i32, i32, i32) {
    %c0_i32 = arith.constant 0 : i32
    %c0_i32_0 = arith.constant 0 : i32
    %c0_i32_1 = arith.constant 0 : i32
    %c0_i32_2 = arith.constant 0 : i32
    return %c0_i32, %c0_i32_0, %c0_i32_1 : i32, i32, i32
  }
  func.func @transform_18(%arg0: i32) -> (i32, i32, i32) {
    %c0_i32 = arith.constant 0 : i32
    %c0_i32_0 = arith.constant 0 : i32
    %c0_i32_1 = arith.constant 0 : i32
    %c0_i32_2 = arith.constant 0 : i32
    return %c0_i32, %c0_i32_0, %c0_i32_1 : i32, i32, i32
  }
  func.func @transform_19(%arg0: i32) -> (i32, i32, i32) {
    %c0_i32 = arith.constant 0 : i32
    %c0_i32_0 = arith.constant 0 : i32
    %c0_i32_1 = arith.constant 0 : i32
    %c0_i32_2 = arith.constant 0 : i32
    return %c0_i32, %c0_i32_0, %c0_i32_1 : i32, i32, i32
  }
  func.func @transform_20(%arg0: i32) -> (i32, i32, i32) {
    %c0_i32 = arith.constant 0 : i32
    %c0_i32_0 = arith.constant 0 : i32
    %c0_i32_1 = arith.constant 0 : i32
    %c0_i32_2 = arith.constant 0 : i32
    return %c0_i32, %c0_i32_0, %c0_i32_1 : i32, i32, i32
  }
  func.func @transform_21(%arg0: i32) -> (i32, i32, i32) {
    %c0_i32 = arith.constant 0 : i32
    %c0_i32_0 = arith.constant 0 : i32
    %c0_i32_1 = arith.constant 0 : i32
    %c0_i32_2 = arith.constant 0 : i32
    return %c0_i32, %c0_i32_0, %c0_i32_1 : i32, i32, i32
  }
  func.func @transform_22(%arg0: i32) -> (i32, i32) {
    %c0_i32 = arith.constant 0 : i32
    %c0_i32_0 = arith.constant 0 : i32
    %c0_i32_1 = arith.constant 0 : i32
    return %c0_i32, %c0_i32_0 : i32, i32
  }
  func.func @transform_23(%arg0: i32) -> (i32, i32) {
    %c0_i32 = arith.constant 0 : i32
    %c0_i32_0 = arith.constant 0 : i32
    %c0_i32_1 = arith.constant 0 : i32
    return %c0_i32, %c0_i32_0 : i32, i32
  }
  func.func @transform_24(%arg0: i32) -> (i32, i32, i32) {
    %c0_i32 = arith.constant 0 : i32
    %c0_i32_0 = arith.constant 0 : i32
    %c0_i32_1 = arith.constant 0 : i32
    return %arg0, %c0_i32, %c0_i32_0 : i32, i32, i32
  }
}

</mosaic_0001>

<bundles_post_ra>
// kernel: tpu_custom_call.1
= control target key start
LH: loop header
LB: loop body
LE: loop exit
PB: predicated region body
PF: predicated region fallthrough
CT: control target
= control target key end

     0   :  { %s9694_s0 = inlined_call_operand.hbm [shape: f32[2,8,32], index: 0, kind: input, shape index: {}]   ;;  %s9695_s1 = inlined_call_operand.hbm [shape: f32[1,32], index: 1, kind: input, shape index: {}]   ;;  %s9696_s2 = inlined_call_operand.vmem [shape: f32[2,32,32], index: 2, kind: input, shape index: {}]   ;;  %s9697_s3 = inlined_call_operand.vmem [shape: f32[2,32,32], index: 3, kind: input, shape index: {}]   ;;  %s9698_s4 = inlined_call_operand.vmem [shape: f32[2,32,32], index: 4, kind: input, shape index: {}]   ;;  %s9699_s5 = inlined_call_operand.vmem [shape: f32[2,32,32], index: 5, kind: input, shape index: {}]   ;;  %s9700_s6 = inlined_call_operand.vmem [shape: f32[2,1,32], index: 6, kind: input, shape index: {}]   ;;  %s9701_s7 = inlined_call_operand.vmem [shape: f32[2,1,32], index: 7, kind: input, shape index: {}]   ;;  %s9702_s8 = inlined_call_operand.vmem [shape: f32[2,1,32], index: 8, kind: input, shape index: {}]   ;;  %s9703_s9 = inlined_call_operand.vmem [shape: f32[2,32,32], index: 9, kind: input, shape index: {}]   ;;  %s9704_s10 = inlined_call_operand.vmem [shape: f32[2,32,32], index: 10, kind: input, shape index: {}]   ;;  %s9705_s11 = inlined_call_operand.hbm [shape: f32[2,32,32], index: 11, kind: input, shape index: {}]   ;;  %s9706_s12 = inlined_call_operand.hbm [shape: f32[2,32,32], index: 12, kind: input, shape index: {}]   ;;  %s9707_s13 = inlined_call_operand.vmem [shape: f32[2,1,32], index: 13, kind: input, shape index: {}]   ;;  %s9708_s14 = inlined_call_operand.vmem [shape: f32[2,1,32], index: 14, kind: input, shape index: {}]   ;;  %s9709_s15 = inlined_call_operand.vmem [shape: f32[2,1,32], index: 15, kind: input, shape index: {}]   ;;  %s9710_s16 = inlined_call_operand.hbm [shape: f32[2,32,128], index: 16, kind: input, shape index: {}]   ;;  %s9711_s17 = inlined_call_operand.vmem [shape: f32[2,1,128], index: 17, kind: input, shape index: {}]   ;;  %s9712_s18 = inlined_call_operand.vmem [shape: f32[2,128,32], index: 18, kind: input, shape index: {}]   ;;  %s9713_s19 = inlined_call_operand.vmem [shape: f32[2,1,32], index: 19, kind: input, shape index: {}]   ;;  %s9714_s20 = inlined_call_operand.vmem [shape: f32[2,1,32], index: 20, kind: input, shape index: {}]   ;;  %s9715_s21 = inlined_call_operand.vmem [shape: f32[2,1,32], index: 21, kind: input, shape index: {}]   ;;  %s9716_s22 = inlined_call_operand.vmem [shape: f32[32,1], index: 22, kind: input, shape index: {}]   ;;  %s9717_s23 = inlined_call_operand.<no memory space> [shape: f32[1,1], index: 23, kind: input, shape index: {}]   ;;  %s9718_s24 = inlined_call_operand.vmem [shape: f32[2,1,1], index: 24, kind: output, shape index: {}]  }
   0x1   :  { %9774 = sst [smem:[#allocation20_spill]] %s9694_s0  ;;  %v29_v0 = vstv %s9717_s23 }
   0x2   :  { %9775 = sst [smem:[#allocation21_spill]] %s9695_s1  ;;  %30 = vst [vmem:[#allocation2] sm:$0x1] %v29_v0 }
   0x3   :  { %9776 = sst [smem:[#allocation22_spill]] %s9696_s2 }
   0x4   :  { %9777 = sst [smem:[#allocation23_spill]] %s9697_s3 }
   0x5   :  { %9778 = sst [smem:[#allocation24_spill]] %s9698_s4 }
   0x6   :  { %9779 = sst [smem:[#allocation25_spill]] %s9699_s5 }
   0x7   :  { %9780 = sst [smem:[#allocation26_spill]] %s9700_s6 }
   0x8   :  { %9781 = sst [smem:[#allocation27_spill]] %s9701_s7 }
   0x9   :  { %9782 = sst [smem:[#allocation28_spill]] %s9702_s8 }
   0xa   :  { %9783 = sst [smem:[#allocation29_spill]] %s9703_s9 }
   0xb   :  { %9784 = sst [smem:[#allocation30_spill]] %s9704_s10 }
   0xc   :  { %9785 = sst [smem:[#allocation31_spill]] %s9705_s11 }
   0xd   :  { %9786 = sst [smem:[#allocation32_spill]] %s9706_s12 }
   0xe   :  { %9787 = sst [smem:[#allocation33_spill]] %s9707_s13 }
   0xf   :  { %9788 = sst [smem:[#allocation34_spill]] %s9709_s15 }
  0x10   :  { %9789 = sst [smem:[#allocation35_spill]] %s9710_s16 }
  0x11   :  { %9790 = sst [smem:[#allocation36_spill]] %s9711_s17 }
  0x12   :  { %9791 = sst [smem:[#allocation37_spill]] %s9713_s19 }
  0x13   :  { %9792 = sst [smem:[#allocation38_spill]] %s9714_s20 }
  0x14   :  { %9793 = sst [smem:[#allocation39_spill]] %s9715_s21 }
  0x15   :  { %9794 = sst [smem:[#allocation40_spill]] %s9716_s22 }
  0x16   :  { %9795 = sst [smem:[#allocation41_spill]] %s9718_s24 }
  0x17   :  { %31 = vsyncpa [#allocation4], 0 }
  0x18   :  { %33 = vsyncpa [#allocation4 + $0x1], 0 }
  0x19   :  { %34 = vsyncpa [#allocation6], 0 }
  0x1a   :  { %35 = vsyncpa [#allocation9], 0  ;;  %s8551_s27 = smov 0   ;;  %s8553_s28 = smov 0  }
  0x1b   :  { %s8555_s6 = smov 0   ;;  %s8557_s2 = smov 0  }
  0x1c LB: > { %9796 = sst [smem:[#allocation14_spill]] %s8389_s28  ;;  %s8399_s23 = smov [#allocation5]   ;;  %s8397_s2 = sphi %s8557_s2, %s9863_s2   ;;  %s8393_s6 = sphi %s8555_s6, %s9866_s6   ;;  %s8389_s28 = sphi %s8553_s28, %s9865_s28   ;;  %s8385_s27 = sphi %s8551_s27, %s9864_s27  }
  0x1d   : > { %9797 = sst [smem:[#allocation15_spill]] %s8393_s6  ;;  %s594_s29 = sshll.u32 %s8399_s23, 4  ;;  %s595_s29 = int_to_ptr.vmem [resolvable:$true] %s594_s29 }
  0x1e   : > { %s8572_s0 = sadd.s32 4294967295, %s8397_s2   ;;  %p6902_p0 = scmp.ge.s32.totalorder %s8397_s2, 1 }
  0x1f   : > { %9798 = sst [smem:[#allocation16_spill]] %s8572_s0  ;;  %p9730_p1 = scmp.eq.s32.totalorder %s8572_s0, 0 }
  0x20   : > { %p581_p2 = scmp.lt.s32.totalorder %s8397_s2, 3  ;;  %s8400_s30 = smov [#allocation8]  }
  0x21   : > { %s644_s3 = sshll.u32 %s8400_s30, 4  ;;  %s8401_s8 = smov [#allocation7]   ;;  %s8589_s3 = int_to_ptr.vmem [resolvable:$true] %s644_s3 }
  0x22   : > { %p8577_p3 = pnand %p6902_p0, %p581_p2  ;;  %s631_s4 = sshll.u32 %s8401_s8, 4  ;;  %s8591_s4 = int_to_ptr.vmem [resolvable:$true] %s631_s4 }
  0x23   : > { %s9801_s26 = sld [smem:[#allocation21_spill]] }
  0x24   : > { %s9799_s7 = scalar_select %p8577_p3, 1, 0 }
  0x25   : > { %p7991_p4 = pneg %p8577_p3 }
  0x27   : > { %p8585_p5 = pnand %p7991_p4, %p9730_p1 }
  0x29   : > { %s8213_s23 = scalar_lea.hbm %s9801_s26, 16  ;;  %p8601_p7 = pneg %p8585_p5 }
  0x2a   : > { %p8214_p6 = scmp.ne.s32.totalorder %s9801_s26, %s8213_s23  ;;  %p8220_p10 = scmp.lt.u32.totalorder %s8213_s23, %s9801_s26 }
  0x2c   : > { %p8216_p8 = pnand %p8601_p7, %p8214_p6 }
  0x2e   : > { %p8217_p9 = pneg %p8216_p8 }
  0x30   : > { %p8222_p11 = pnand %p8220_p10, %p8217_p9 }
  0x32   : > { %8225 = shalt.err (!%p8222_p11)
}
  0x33   : > { %s8226_s1 = scalar_lea.vmem %s595_s29, 16  ;;  %s8233_s22 = scalar_lea.vmem %s595_s29, 32 }
  0x34   : > { %p8227_p12 = scmp.ne.s32.totalorder %s595_s29, %s8226_s1  ;;  %p8234_p2 = scmp.lt.s32.totalorder %s595_s29, %s595_s29 }
  0x35   : > { %p8235_p4 = scmp.lt.s32.totalorder %s8233_s22, %s8226_s1 }
  0x36   : > { %p8229_p13 = pnand %p8227_p12, %p8601_p7 }
  0x37   : > { %p8236_p1 = por %p8235_p4, %p8234_p2 }
  0x38   : > { %p8230_p0 = pneg %p8229_p13 }
  0x3a   : > { %p8237_p3 = pnand %p8236_p1, %p8230_p0 }
  0x3c   : > { %8240 = shalt.err (!%p8237_p3)
}
  0x3d   : > { %7994 = dma.hbm_to_vmem [thread:$0]  (!%p8585_p5), %s9801_s26, 16, %s595_s29, [#allocation6]  }
  0x3e   : > { %s9803_s12 = sld [smem:[#allocation32_spill]] }
  0x44   : > { %s8241_s8 = scalar_lea.hbm %s9803_s12, 1024 }
  0x45   : > { %p8242_p6 = scmp.ne.s32.totalorder %s9803_s12, %s8241_s8  ;;  %p8248_p1 = scmp.lt.u32.totalorder %s8241_s8, %s9803_s12 }
  0x47   : > { %p8244_p8 = pnand %p8242_p6, %p8601_p7 }
  0x49   : > { %p8245_p9 = pneg %p8244_p8 }
  0x4b   : > { %p8250_p3 = pnand %p8248_p1, %p8245_p9 }
  0x4d   : > { %8253 = shalt.err (!%p8250_p3)
}
  0x4e   : > { %s8254_s29 = scalar_lea.vmem %s8589_s3, 1024  ;;  %p8262_p13 = scmp.lt.s32.totalorder %s8589_s3, %s8589_s3 }
  0x4f   : > { %p8255_p10 = scmp.ne.s32.totalorder %s8589_s3, %s8254_s29  ;;  %p8263_p0 = scmp.lt.s32.totalorder %s8254_s29, %s8254_s29 }
  0x51   : > { %p8257_p11 = pnand %p8255_p10, %p8601_p7  ;;  %p8264_p2 = por %p8263_p0, %p8262_p13 }
  0x53   : > { %p8258_p12 = pneg %p8257_p11 }
  0x55   : > { %p8265_p4 = pnand %p8264_p2, %p8258_p12 }
  0x57   : > { %8268 = shalt.err (!%p8265_p4)
}
  0x58   : > { %s8402_s19 = smov 128   ;;  %s8403_s20 = smov 8  }
  0x59   : > { %8000 = dma.hbm_to_vmem [thread:$0]  (!%p8585_p5), %s9803_s12, 1024, %s8589_s3, [#allocation9], %s8402_s19, %s8402_s19, %s8403_s20  }
  0x5a   : > { %s9804_s11 = sld [smem:[#allocation31_spill]] }
  0x60   : > { %s8269_s8 = scalar_lea.hbm %s9804_s11, 1024 }
  0x61   : > { %p8270_p6 = scmp.ne.s32.totalorder %s9804_s11, %s8269_s8  ;;  %p8276_p1 = scmp.lt.u32.totalorder %s8269_s8, %s9804_s11 }
  0x63   : > { %p8272_p8 = pnand %p8270_p6, %p8601_p7 }
  0x65   : > { %p8273_p9 = pneg %p8272_p8 }
  0x67   : > { %p8278_p3 = pnand %p8276_p1, %p8273_p9 }
  0x69   : > { %8281 = shalt.err (!%p8278_p3)
}
  0x6a   : > { %s8282_s3 = scalar_lea.vmem %s8591_s4, 1024  ;;  %p8290_p13 = scmp.lt.s32.totalorder %s8591_s4, %s8591_s4 }
  0x6b   : > { %p8283_p10 = scmp.ne.s32.totalorder %s8591_s4, %s8282_s3  ;;  %p8291_p0 = scmp.lt.s32.totalorder %s8282_s3, %s8282_s3 }
  0x6d   : > { %p8285_p11 = pnand %p8283_p10, %p8601_p7  ;;  %p8292_p2 = por %p8291_p0, %p8290_p13 }
  0x6f   : > { %p8286_p12 = pneg %p8285_p11 }
  0x71   : > { %p8293_p4 = pnand %p8292_p2, %p8286_p12 }
  0x73   : > { %8296 = shalt.err (!%p8293_p4)
}
  0x74   : > { %7997 = dma.hbm_to_vmem [thread:$0]  (!%p8585_p5), %s9804_s11, 1024, %s8591_s4, [#allocation6], %s8402_s19, %s8402_s19, %s8403_s20  }
  0x75   : > { %s8404_s5 = smov [#allocation10]   ;;  %s9805_s16 = sld [smem:[#allocation35_spill]] }
  0x76   : > { %s666_s21 = sshll.u32 %s8404_s5, 4  ;;  %s667_s21 = int_to_ptr.vmem [resolvable:$true] %s666_s21 }
  0x7b   : > { %s8297_s1 = scalar_lea.hbm %s9805_s16, 1024 }
  0x7c   : > { %p8298_p6 = scmp.ne.s32.totalorder %s9805_s16, %s8297_s1  ;;  %p8304_p1 = scmp.lt.u32.totalorder %s8297_s1, %s9805_s16 }
  0x7e   : > { %p8300_p8 = pnand %p8298_p6, %p8601_p7 }
  0x80   : > { %p8301_p9 = pneg %p8300_p8 }
  0x82   : > { %p8306_p3 = pnand %p8304_p1, %p8301_p9 }
  0x84   : > { %8309 = shalt.err (!%p8306_p3)
}
  0x85   : > { %s8310_s4 = scalar_lea.vmem %s667_s21, 1024  ;;  %p8318_p13 = scmp.lt.s32.totalorder %s667_s21, %s667_s21 }
  0x86   : > { %p8311_p10 = scmp.ne.s32.totalorder %s667_s21, %s8310_s4  ;;  %p8319_p0 = scmp.lt.s32.totalorder %s8310_s4, %s8310_s4 }
  0x88   : > { %p8313_p11 = pnand %p8311_p10, %p8601_p7  ;;  %p8320_p2 = por %p8319_p0, %p8318_p13 }
  0x8a   : > { %p8314_p12 = pneg %p8313_p11 }
  0x8c   : > { %p8321_p4 = pnand %p8320_p2, %p8314_p12 }
  0x8e   : > { %8324 = shalt.err (!%p8321_p4)
}
  0x8f   : > { %8003 = dma.hbm_to_vmem [thread:$0]  (!%p8585_p5), %s9805_s16, 1024, %s667_s21, [#allocation9], %s8402_s19, %s8402_s19, %s8403_s20  }
  0x90   : > { %s8691_s25 = sadd.s32 1, %s8397_s2   ;;  %s48_s30 = sadd.s32 1, %s8393_s6 }
  0x91   : > { %9806 = sst [smem:[#allocation17_spill]] %s8691_s25  ;;  %s45_s24 = ssub.s32 %s8397_s2, %s8691_s25 }
  0x92   : > { %p55_p7 = scmp.ne.s32.totalorder %s8393_s6, %s8389_s28  ;;  %p46_p6 = scmp.eq.s32.totalorder %s45_s24, 0 }
  0x93   : > { %p56_p8 = scmp.eq.s32.totalorder %s8397_s2, 0  ;;  %p61_p9 = scmp.ne.s32.totalorder %s8389_s28, %s8385_s27 }
  0x94   : > { %p8012_p1 = scmp.lt.s32.totalorder %s8397_s2, 2  ;;  %p9808_p10 = scmp.eq.s32.totalorder %s8572_s0, 0 }
  0x95   : > { %s8703_s5 = scalar_select %p46_p6, %s8393_s6, %s48_s30  }
  0x96   : > { %p57_p3 = por %p56_p8, %p55_p7  ;;  %p8707_p11 = por %p9808_p10, %p61_p9 }
  0x97   : > { %9807 = sst [smem:[#allocation18_spill]] %s8703_s5  ;;  %s701_s8 = sand.u32 1, %s8393_s6  }
  0x98   : > { %s6909_s19 = sshll.u32 %s8397_s2, 7  ;;  %s6908_s20 = sshll.u32 %s701_s8, 3 }
  0x99   : > { %s9810_s22 = sld [smem:[#allocation20_spill]]  ;;  %s705_s27 = scalar_lea.vmem [#allocation3], %s6908_s20 }
  0x9a   : > { %s712_s3 = sshll.u32 %s705_s27, 4  ;;  %p8718_p5 = pnand %p8012_p1, %p57_p3  ;;  %s8722_s3 = int_to_ptr.vmem [resolvable:$true] %s712_s3 }
  0x9b   : > { %s702_s2 = scalar_lea.sflag [#allocation4], %s701_s8 }
  0x9c   : > { %p8327_p13 = pneg %p8718_p5 }
  0x9f   : > { %s8716_s29 = scalar_lea.hbm %s9810_s22, %s6909_s19  ;;  %s8330_s24 = scalar_lea.hbm %s9810_s22, 256 }
  0xa0   : > { %s8325_s12 = scalar_lea.hbm %s8716_s29, 128  ;;  %p8331_p4 = scmp.lt.u32.totalorder %s8716_s29, %s9810_s22 }
  0xa1   : > { %p8326_p12 = scmp.ne.s32.totalorder %s8716_s29, %s8325_s12  ;;  %p8332_p7 = scmp.lt.u32.totalorder %s8330_s24, %s8325_s12 }
  0xa2   : > { %p8334_p8 = scmp.lt.u32.totalorder %s8325_s12, %s8716_s29 }
  0xa3   : > { %p8328_p0 = pnand %p8327_p13, %p8326_p12  ;;  %p8333_p6 = por %p8332_p7, %p8331_p4 }
  0xa5   : > { %p8329_p2 = pneg %p8328_p0  ;;  %p8335_p9 = por %p8334_p8, %p8333_p6 }
  0xa7   : > { %p8336_p1 = pnand %p8335_p9, %p8329_p2 }
  0xa9   : > { %8339 = shalt.err (!%p8336_p1)
}
  0xaa   : > { %s8340_s8 = scalar_lea.vmem %s8722_s3, 128  ;;  %s8405_s21 = smov [#allocation3]  }
  0xab   : > { %p8341_p3 = scmp.ne.s32.totalorder %s8722_s3, %s8340_s8  ;;  %s8345_s1 = sshll.u32 %s8405_s21, 4  ;;  %s8346_s1 = int_to_ptr.vmem [resolvable:$false] %s8345_s1 }
  0xac   : > { %s8347_s27 = scalar_lea.vmem %s8346_s1, 256  ;;  %p8348_p0 = scmp.lt.s32.totalorder %s8722_s3, %s8346_s1 }
  0xad   : > { %p8343_p10 = pnand %p8341_p3, %p8327_p13  ;;  %p8349_p4 = scmp.lt.s32.totalorder %s8347_s27, %s8340_s8 }
  0xaf   : > { %p8344_p12 = pneg %p8343_p10  ;;  %p8350_p7 = por %p8349_p4, %p8348_p0 }
  0xb1   : > { %p8351_p6 = pnand %p8350_p7, %p8344_p12 }
  0xb3   : > { %8354 = shalt.err (!%p8351_p6)
}
  0xb4   : > { %8007 = dma.hbm_to_vmem [thread:$0]  (!%p8718_p5), %s8716_s29, 128, %s8722_s3, %s702_s2  }
  0xb5   : > { %p9812_p2 = scmp.ne.s32.totalorder %s9799_s7, 0 }
  0xb7   : > { %721 = sbr.rel (%p9812_p2) target bundleno = 8295 (0x2067), region = 116 }
  0xbe   : > { %s723_s12 = sand.u32 1, %s8389_s28  }
  0xbf   : > { %s8752_s26 = sshll.u32 %s723_s12, 3  ;;  %s724_s30 = scalar_lea.sflag [#allocation4], %s723_s12 }
  0xc0   : > { %9813 = sst [smem:[#allocation19_spill]] %s8752_s26 }
  0xc1   : > { %8372 = dma.done.wait (%p8707_p11), %s724_s30, 128  }
  0xc2   : > { %8374 = vsyncadd (%p8707_p11), %s724_s30, 4294967168  ;;  %p9814_p13 = scmp.eq.s32.totalorder %s8572_s0, 0 }
  0xc4   : > { %8376 = dma.done.wait (%p9814_p13), [#allocation6], 1040   ;;  %p9815_p5 = pmov %p9814_p13 }
  0xc6   : > { %8378 = vsyncadd (%p9815_p5), [#allocation6], 4294966256  ;;  %p9816_p8 = pmov %p9815_p5 }
  0xc7   : > { %p9817_p9 = pmov %p9815_p5 }
  0xc8   : > { %8380 = dma.done.wait (%p9816_p8), [#allocation9], 2048  }
  0xc9   : > { %8382 = vsyncadd (%p9817_p9), [#allocation9], 4294965248  ;;  %v8406_v1 = vmov 0.0|0.0   ;;  %vm8407_vm0 = vmmov 0   ;;  %v8408_v2 = vmov 0.0   ;;  %s9818_s29 = sld [smem:[#allocation22_spill]] }
  0xca   : > { %7811 = vmatprep.subr.bf16.mxu1 %v8406_v1  ;;  %7300 = vmatprep.mubr.msk.f32.mxu1 %vm8407_vm0, %v8408_v2  ;;  %s9819_s27 = sld [smem:[#allocation24_spill]]  ;;  %s9821_s19 = sld [smem:[#allocation23_spill]]  ;;  %v8804_v17 = vld [vmem:[#allocation5] sm:$0x1]  ;;  %vm828_vm1 = vcmask 261120   ;;  %vm1058_vm2 = vcmask 1040384  }
  0xcb   : > { %7823 = vmatprep.subr.bf16.mxu0 %v8406_v1  ;;  %7322 = vmatprep.mubr.msk.f32.mxu0 %vm8407_vm0, %v8408_v2  ;;  %s9745_s3 = smov 116   ;;  %s9751_s4 = smov 124   ;;  %vm1043_vm3 = vcmask 24576   ;;  %vm1054_vm4 = vcmask 7168   ;;  %vm1791_vm5 = vcmask 31744   ;;  %vm1793_vm6 = vcmask 64512  }
  0xcc   : > { %s9743_s2 = smov 112   ;;  %s9747_s20 = smov 120   ;;  %vm1795_vm7 = vcmask 97280   ;;  %vm1797_vm8 = vcmask 130048   ;;  %vm1799_vm9 = vcmask 162816   ;;  %vm1801_vm10 = vcmask 195584  }
  0xcd   : > { %s9737_s8 = smov 104   ;;  %s9739_s21 = smov 108   ;;  %vm1803_vm11 = vcmask 228352   ;;  %vm1881_vm12 = vcmask 253952   ;;  %vm2208_vm13 = vcmask 57344   ;;  %vm6802_vm14 = vcmask 0  }
  0xce   : > { %s9735_s1 = smov 100   ;;  %s9749_s30 = smov 16  }
  0xcf   : > { %v811_v3 = vld [vmem:[%s9818_s29] sm:$0xff]  ;;  %v812_v4 = vld [vmem:[%s9818_s29 + $0x8] sm:$0xff]  ;;  %v813_v5 = vld [vmem:[%s9818_s29 + $0x10] sm:$0xff]  ;;  %s9761_s7 = smov 8   ;;  %s9755_s23 = smov 24  }
  0xd0   : > { %v7812_v6 = vpack.c.bf16 %v812_v4, %v811_v3  ;;  %v814_v7 = vld [vmem:[%s9818_s29 + $0x18] sm:$0xff]  ;;  %s9820_s12 = smov %s9819_s27  ;;  %v819_v9 = vld [vmem:[%s9819_s27] sm:$0xff]  ;;  %v816_v13 = vld [vmem:[%s9821_s19 + $0x8] sm:$0xff]  ;;  %s9741_s27 = smov 4  }
  0xd1   : > { %v7815_v8 = vpack.c.bf16 %v814_v7, %v813_v5  ;;  %v820_v10 = vld [vmem:[%s9820_s12 + $0x8] sm:$0xff]  ;;  %v821_v11 = vld [vmem:[%s9820_s12 + $0x10] sm:$0xff]  ;;  %v815_v12 = vld [vmem:[%s9821_s19] sm:$0xff]  ;;  %s9824_s10 = sld [smem:[#allocation30_spill]]  ;;  %s9825_s9 = sld [smem:[#allocation29_spill]] }
  0xd2   : > { %7813 = vmatpush3.bf16.msra.mxu1 %v7812_v6  ;;  %v7824_v14 = vpack.c.bf16 %v820_v10, %v819_v9  ;;  %v822_v15 = vld [vmem:[%s9820_s12 + $0x18] sm:$0xff]  ;;  %v7818_v18 = vpack.c.bf16 %v816_v13, %v815_v12  ;;  %v817_v19 = vld [vmem:[%s9821_s19 + $0x10] sm:$0xff]  ;;  %s9832_s24 = smov 112   ;;  %s9837_s11 = smov 8  }
  0xd3   : > { %7814 = vmatprep.subr.bf16.mxu1 %v8406_v1  ;;  %v7827_v16 = vpack.c.bf16 %v822_v15, %v821_v11  ;;  %v818_v20 = vld [vmem:[%s9821_s19 + $0x18] sm:$0xff]  ;;  %s9838_s16 = smov 12   ;;  %s9839_s22 = smov 16  }
  0xd4   : > { %7825 = vmatpush3.bf16.msra.mxu0 %v7824_v14  ;;  %v7821_v21 = vpack.c.bf16 %v818_v20, %v817_v19  ;;  %s9840_s5 = smov 20   ;;  %s9841_s6 = smov 24  }
  0xd5   : > { %7826 = vmatprep.subr.bf16.mxu0 %v8406_v1  ;;  %s9842_s28 = smov 28   ;;  %s9843_s13 = sld [smem:[#allocation33_spill]] }
  0xd6   : > { %7816 = vmatpush3.bf16.msra.mxu1 %v7815_v8  ;;  %s9844_s15 = sld [smem:[#allocation34_spill]]  ;;  %s9845_s17 = sld [smem:[#allocation36_spill]] }
  0xd7   : > { %7817 = vmatprep.subr.bf16.mxu1 %v8406_v1  ;;  %s9846_s0 = sld [smem:[#allocation37_spill]]  ;;  %s9849_s25 = sld [smem:[#allocation19_spill]] }
  0xd8   : > { %7828 = vmatpush3.bf16.msra.mxu0 %v7827_v16 }
  0xd9   : > { %7301 = vmatmul.mubr.msk.f32.vlgmr.msra.gmra.mrb[0].mxu1 %vm828_vm1, %v8804_v17  ;;  %7345 = vmatprep.subr.mxu0 %v8408_v2 }
  0xda   : > { %7819 = vmatpush3.bf16.msra.mxu1 %v7818_v18  ;;  %7311 = vmatprep.mubr.msk.f32.mxu1 %vm8407_vm0, %v8408_v2 }
  0xdb   : > { %7820 = vmatprep.subr.bf16.mxu1 %v8406_v1  ;;  %7323 = vmatmul.mubr.msk.f32.vlgmr.msra.gmra.mrb[0].mxu0 %vm828_vm1, %v8804_v17 }
  0xdc   : > { %7347 = vmatprep.mubr.msk.f32.mxu0 %vm8407_vm0, %v8408_v2 }
  0xde   : > { %7822 = vmatpush3.bf16.msra.mxu1 %v7821_v21 }
  0xdf   : > { %7325 = vmatprep.subr.mxu1 %v8408_v2 }
  0xe1   : > { %7312 = vmatmul.mubr.msk.f32.vlgmr.msra.gmra.mrb[2].mxu1 %vm828_vm1, %v8804_v17 }
  0xe2   : > { %7327 = vmatprep.mubr.msk.f32.mxu1 %vm8407_vm0, %v8408_v2 }
 0x1ac   : > { %v898_v22 = vpop.f32.mrb[0].mxu1 }
 0x1ad   : > { %v7302_v23 = vpop.f32.mrb[1].mxu1 }
 0x1ae   : > { %v1038_v27 = vpop.f32.mrb[0].mxu0 }
 0x1af   : > { %v7324_v28 = vpop.f32.mrb[1].mxu0  ;;  %7326 = vmatpush3.msk.msra.mxu1 %vm1058_vm2, %v1038_v27 }
 0x1b0   : > { %7330 = vmatprep.subr.mxu1 %v8408_v2 }
 0x1b4   : > { %v968_v24 = vpop.f32.mrb[2].mxu1 }
 0x1b5   : > { %v1042_v25 = vmul.f32 %v968_v24, %v898_v22  ;;  %v7313_v26 = vpop.f32.mrb[3].mxu1 }
 0x1b7   : > { %1313 = vrot.lane.b32.xlu1 %v1042_v25, %s9745_s3  ;;  %1133 = vrot.lane.b32.xlu0 %v1042_v25, %s9751_s4  ;;  %v1044_v29 = vsel %vm1043_vm3, %v1042_v25, 0.0 }
 0x1bb   : > { %1403 = vrot.lane.b32.xlu1 %v1042_v25, %s9743_s2  ;;  %1223 = vrot.lane.b32.xlu0 %v1042_v25, %s9747_s20 }
 0x1bf   : > { %1583 = vrot.lane.b32.xlu1 %v1042_v25, %s9737_s8  ;;  %1493 = vrot.lane.b32.xlu0 %v1042_v25, %s9739_s21 }
 0x1c3   : > { %1673 = vrot.lane.b32.xlu0 %v1042_v25, %s9735_s1 }
 0x1e3   : > { %1045 = vadd.xlane.f32.xlu1 %v1044_v29 }
 0x229   : > { %v1314_v30 = vpop.permute.xlu1 %1313  ;;  %v1134_v31 = vpop.permute.xlu0 %1133 }
 0x22a   : > { %v1136_v32 = vsel %vm1043_vm3, %v1134_v31, 0.0  ;;  %v1316_v33 = vsel %vm1043_vm3, %v1314_v30, 0.0 }
 0x22b   : > { %1137 = vadd.xlane.f32.xlu0 %v1136_v32  ;;  %1317 = vadd.xlane.f32.xlu1 %v1316_v33 }
 0x22d   : > { %v1404_v34 = vpop.permute.xlu1 %1403  ;;  %v1224_v35 = vpop.permute.xlu0 %1223 }
 0x22e   : > { %v1226_v36 = vsel %vm1043_vm3, %v1224_v35, 0.0  ;;  %v1406_v38 = vsel %vm1043_vm3, %v1404_v34, 0.0 }
 0x22f   : > { %1227 = vadd.xlane.f32.xlu0 %v1226_v36 }
 0x231   : > { %v1494_v37 = vpop.permute.xlu0 %1493  ;;  %v1584_v40 = vpop.permute.xlu1 %1583 }
 0x232   : > { %v1496_v39 = vsel %vm1043_vm3, %v1494_v37, 0.0  ;;  %v1586_v41 = vsel %vm1043_vm3, %v1584_v40, 0.0 }
 0x233   : > { %1407 = vadd.xlane.f32.xlu0 %v1406_v38  ;;  %1497 = vadd.xlane.f32.xlu1 %v1496_v39 }
 0x235   : > { %v1674_v42 = vpop.permute.xlu0 %1673 }
 0x236   : > { %v1676_v43 = vsel %vm1043_vm3, %v1674_v42, 0.0 }
 0x237   : > { %1587 = vadd.xlane.f32.xlu0 %v1586_v41 }
 0x244   : > { %1236 = vrot.lane.b32.xlu1 %v1038_v27, %s9747_s20  ;;  %s9847_s20 = sld [smem:[#allocation38_spill]] }
 0x24d   : > { %1146 = vrot.lane.b32.xlu0 %v1038_v27, %s9751_s4  ;;  %s9753_s4 = smov 28  }
 0x251   : > { %1416 = vrot.lane.b32.xlu0 %v1038_v27, %s9743_s2  ;;  %s9828_s2 = sld [smem:[#allocation28_spill]] }
 0x255   : > { %1596 = vrot.lane.b32.xlu0 %v1038_v27, %s9737_s8  ;;  %s9759_s8 = smov 12  }
 0x268   : > { %1677 = vadd.xlane.f32.xlu1 %v1676_v43 }
 0x270   : > { %v1046_v44 = vpop.xlane.xlu1 %1045 }
 0x271   : > { %v1047_v45 = vmul.f32 0.5, %v1046_v44 }
 0x273   : > { %v1048_v46 = vsub.f32 %v1047_v45, %v1047_v45 }
 0x275   : > { %v1049_v47 = vmul.f32 1.442695, %v1048_v46 }
 0x277   : > { %8072 = vpow2.f32 %v1049_v47 }
 0x279   : > { %1326 = vrot.lane.b32.xlu1 %v1038_v27, %s9745_s3  ;;  %s9757_s3 = smov 20  }
 0x27d   : > { %1506 = vrot.lane.b32.xlu1 %v1038_v27, %s9739_s21  ;;  %s9822_s21 = sld [smem:[#allocation25_spill]] }
 0x281   : > { %v8073_v48 = vpop.eup %8072  ;;  %1686 = vrot.lane.b32.xlu1 %v1038_v27, %s9735_s1  ;;  %s9823_s1 = sld [smem:[#allocation26_spill]] }
 0x282   : > { %8074 = vrcp.f32 %v8073_v48 }
 0x28c   : > { %v8075_v49 = vpop.eup %8074 }
 0x28d   : > { %v1053_v50 = vmul.f32 %v8075_v49, %v8073_v48 }
 0x28f   : > { %7328 = vmatmul.mubr.msk.f32.vlgmr.msra.gmra.mrb[4].mxu1 %vm1054_vm4, %v1053_v50 }
 0x290   : > { %7332 = vmatprep.mubr.msk.f32.mxu1 %vm8407_vm0, %v8408_v2 }
 0x2b8   : > { %v1138_v51 = vpop.xlane.xlu0 %1137  ;;  %v1318_v9 = vpop.xlane.xlu1 %1317 }
 0x2b9   : > { %v1139_v52 = vmul.f32 0.5, %v1138_v51  ;;  %v1319_v12 = vmul.f32 0.5, %v1318_v9 }
 0x2bb   : > { %v1140_v53 = vsub.f32 %v1139_v52, %v1139_v52  ;;  %v1320_v16 = vsub.f32 %v1319_v12, %v1319_v12 }
 0x2bc   : > { %v1228_v54 = vpop.xlane.xlu0 %1227 }
 0x2bd   : > { %v1141_v55 = vmul.f32 1.442695, %v1140_v53  ;;  %v1229_v56 = vmul.f32 0.5, %v1228_v54  ;;  %v1321_v22 = vmul.f32 1.442695, %v1320_v16 }
 0x2bf   : > { %8076 = vpow2.f32 %v1141_v55  ;;  %v1230_v57 = vsub.f32 %v1229_v56, %v1229_v56  ;;  %v823_v56 = vld [vmem:[%s9822_s21] sm:$0xff] }
 0x2c0   : > { %v1408_v58 = vpop.xlane.xlu0 %1407  ;;  %v1498_v11 = vpop.xlane.xlu1 %1497 }
 0x2c1   : > { %v1231_v59 = vmul.f32 1.442695, %v1230_v57  ;;  %v1409_v60 = vmul.f32 0.5, %v1408_v58  ;;  %v1499_v18 = vmul.f32 0.5, %v1498_v11  ;;  %v824_v57 = vld [vmem:[%s9822_s21 + $0x8] sm:$0xff]  ;;  %v825_v58 = vld [vmem:[%s9822_s21 + $0x10] sm:$0xff] }
 0x2c3   : > { %8078 = vpow2.f32 %v1231_v59  ;;  %v1410_v61 = vsub.f32 %v1409_v60, %v1409_v60  ;;  %v1500_v23 = vsub.f32 %v1499_v18, %v1499_v18  ;;  %v7830_v59 = vpack.c.bf16 %v824_v57, %v823_v56  ;;  %v826_v60 = vld [vmem:[%s9822_s21 + $0x18] sm:$0xff] }
 0x2c4   : > { %v1588_v62 = vpop.xlane.xlu0 %1587  ;;  %v1237_v19 = vpop.permute.xlu1 %1236 }
 0x2c5   : > { %v1411_v63 = vmul.f32 1.442695, %v1410_v61  ;;  %v1589_v0 = vmul.f32 0.5, %v1588_v62  ;;  %v1501_v26 = vmul.f32 1.442695, %v1500_v23  ;;  %v7833_v61 = vpack.c.bf16 %v826_v60, %v825_v58  ;;  %v1906_v58 = vld [vmem:[#allocation7] sm:$0xff] }
 0x2c6   : > { %v1908_v60 = vld [vmem:[#allocation7 + $0x10] sm:$0xff] }
 0x2c7   : > { %8080 = vpow2.f32 %v1411_v63  ;;  %v1590_v3 = vsub.f32 %v1589_v0, %v1589_v0 }
 0x2c8   : > { %v1147_v4 = vpop.permute.xlu0 %1146 }
 0x2c9   : > { %v8077_v5 = vpop.eup %8076  ;;  %v1591_v6 = vmul.f32 1.442695, %v1590_v3  ;;  %7331 = vmatpush3.msk.msra.mxu1 %vm1058_vm2, %v1147_v4 }
 0x2ca   : > { %8082 = vrcp.f32 %v8077_v5  ;;  %7335 = vmatprep.subr.mxu1 %v8408_v2 }
 0x2cb   : > { %8084 = vpow2.f32 %v1591_v6 }
 0x2cc   : > { %v1417_v7 = vpop.permute.xlu0 %1416 }
 0x2cd   : > { %v8079_v8 = vpop.eup %8078  ;;  %7346 = vmatpush3.msk.msra.mxu0 %vm1058_vm2, %v1417_v7 }
 0x2ce   : > { %8086 = vrcp.f32 %v8079_v8  ;;  %7355 = vmatprep.subr.mxu0 %v8408_v2 }
 0x2d0   : > { %v1597_v27 = vpop.permute.xlu0 %1596 }
 0x2d1   : > { %v8081_v10 = vpop.eup %8080 }
 0x2d2   : > { %8088 = vrcp.f32 %v8081_v10 }
 0x2d4   : > { %v8083_v13 = vpop.eup %8082 }
 0x2d5   : > { %v1145_v14 = vmul.f32 %v8083_v13, %v8077_v5  ;;  %v8085_v15 = vpop.eup %8084 }
 0x2d6   : > { %8090 = vrcp.f32 %v8085_v15 }
 0x2d7   : > { %7333 = vmatmul.mubr.msk.f32.vlgmr.msra.gmra.mrb[6].mxu1 %vm1054_vm4, %v1145_v14  ;;  %8092 = vpow2.f32 %v1321_v22 }
 0x2d8   : > { %v8087_v20 = vpop.eup %8086  ;;  %7336 = vmatpush3.msk.msra.mxu1 %vm1058_vm2, %v1237_v19  ;;  %7337 = vmatprep.mubr.msk.f32.mxu1 %vm8407_vm0, %v8408_v2  ;;  %8094 = vpow2.f32 %v1501_v26 }
 0x2d9   : > { %v1235_v21 = vmul.f32 %v8087_v20, %v8079_v8  ;;  %7340 = vmatprep.subr.mxu1 %v8408_v2 }
 0x2db   : > { %7338 = vmatmul.mubr.msk.f32.vlgmr.msra.gmra.mrb[8].mxu1 %vm1054_vm4, %v1235_v21  ;;  %v827_v21 = vld [vmem:[%s9823_s1] sm:$0x1] }
 0x2dc   : > { %v8089_v24 = vpop.eup %8088  ;;  %7342 = vmatprep.mubr.msk.f32.mxu1 %vm8407_vm0, %v8408_v2 }
 0x2dd   : > { %v1415_v25 = vmul.f32 %v8089_v24, %v8081_v10 }
 0x2df   : > { %7348 = vmatmul.mubr.msk.f32.vlgmr.msra.gmra.mrb[2].mxu0 %vm1054_vm4, %v1415_v25 }
 0x2e0   : > { %7356 = vmatpush3.msk.msra.mxu0 %vm1058_vm2, %v1597_v27  ;;  %7357 = vmatprep.mubr.msk.f32.mxu0 %vm8407_vm0, %v8408_v2  ;;  %v8091_v28 = vpop.eup %8090 }
 0x2e1   : > { %7829 = vmatprep.subr.bf16.mxu0 %v8406_v1  ;;  %v1595_v29 = vmul.f32 %v8091_v28, %v8085_v15  ;;  %v8093_v30 = vpop.eup %8092 }
 0x2e2   : > { %8096 = vrcp.f32 %v8093_v30  ;;  %v8095_v31 = vpop.eup %8094 }
 0x2e3   : > { %7358 = vmatmul.mubr.msk.f32.vlgmr.msra.gmra.mrb[4].mxu0 %vm1054_vm4, %v1595_v29  ;;  %8098 = vrcp.f32 %v8095_v31 }
 0x2e4   : > { %7373 = vmatprep.mubr.msk.f32.mxu0 %vm8407_vm0, %v8408_v2  ;;  %7831 = vmatpush3.bf16.msra.mxu0 %v7830_v59  ;;  %v1907_v59 = vld [vmem:[#allocation7 + $0x8] sm:$0xff] }
 0x2e5   : > { %7832 = vmatprep.subr.bf16.mxu0 %v8406_v1 }
 0x2e8   : > { %7834 = vmatpush3.bf16.msra.mxu0 %v7833_v61  ;;  %v7848_v61 = vpack.c.bf16 %v1907_v59, %v1906_v58 }
 0x2e9   : > { %7841 = vmatprep.subr.bf16.mxu0 %v8406_v1 }
 0x2ec   : > { %v8097_v33 = vpop.eup %8096 }
 0x2ed   : > { %v1325_v37 = vmul.f32 %v8097_v33, %v8093_v30  ;;  %v8099_v38 = vpop.eup %8098  ;;  %v1903_v33 = vld [vmem:[%s9824_s10 + $0x8] sm:$0xff] }
 0x2ee   : > { %v1505_v41 = vmul.f32 %v8099_v38, %v8095_v31  ;;  %v1905_v38 = vld [vmem:[%s9824_s10 + $0x18] sm:$0xff] }
 0x2f5   : > { %v1678_v32 = vpop.xlane.xlu1 %1677 }
 0x2f6   : > { %v1679_v34 = vmul.f32 0.5, %v1678_v32  ;;  %v1902_v32 = vld [vmem:[%s9824_s10] sm:$0xff] }
 0x2f8   : > { %v1680_v35 = vsub.f32 %v1679_v34, %v1679_v34  ;;  %v1898_v34 = vld [vmem:[%s9825_s9] sm:$0xff] }
 0x2f9   : > { %v1327_v36 = vpop.permute.xlu1 %1326 }
 0x2fa   : > { %v1681_v39 = vmul.f32 1.442695, %v1680_v35  ;;  %7341 = vmatpush3.msk.msra.mxu1 %vm1058_vm2, %v1327_v36  ;;  %v1899_v35 = vld [vmem:[%s9825_s9 + $0x8] sm:$0xff]  ;;  %v1904_v36 = vld [vmem:[%s9824_s10 + $0x10] sm:$0xff] }
 0x2fb   : > { %7343 = vmatmul.mubr.msk.f32.vlgmr.msra.gmra.mrb[10].mxu1 %vm1054_vm4, %v1325_v37  ;;  %7350 = vmatprep.subr.mxu1 %v8408_v2  ;;  %v7836_v37 = vpack.c.bf16 %v1899_v35, %v1898_v34 }
 0x2fc   : > { %8100 = vpow2.f32 %v1681_v39  ;;  %7352 = vmatprep.mubr.msk.f32.mxu1 %vm8407_vm0, %v8408_v2  ;;  %v7845_v39 = vpack.c.bf16 %v1905_v38, %v1904_v36 }
 0x2fd   : > { %v1507_v40 = vpop.permute.xlu1 %1506 }
 0x2fe   : > { %7351 = vmatpush3.msk.msra.mxu1 %vm1058_vm2, %v1507_v40  ;;  %v1900_v40 = vld [vmem:[%s9825_s9 + $0x10] sm:$0xff] }
 0x2ff   : > { %7353 = vmatmul.mubr.msk.f32.vlgmr.msra.gmra.mrb[12].mxu1 %vm1054_vm4, %v1505_v41  ;;  %7360 = vmatprep.subr.mxu1 %v8408_v2  ;;  %v1901_v41 = vld [vmem:[%s9825_s9 + $0x18] sm:$0xff]  ;;  %s9850_s9 = sld [smem:[#allocation30_spill]] }
 0x300   : > { %7362 = vmatprep.mubr.msk.f32.mxu1 %vm8407_vm0, %v8408_v2 }
 0x301   : > { %v1687_v42 = vpop.permute.xlu1 %1686 }
 0x302   : > { %7361 = vmatpush3.msk.msra.mxu1 %vm1058_vm2, %v1687_v42 }
 0x303   : > { %7835 = vmatprep.subr.bf16.mxu1 %v8406_v1 }
 0x306   : > { %v8101_v43 = vpop.eup %8100 }
 0x307   : > { %8102 = vrcp.f32 %v8101_v43 }
 0x311   : > { %v8103_v44 = vpop.eup %8102 }
 0x312   : > { %v1685_v45 = vmul.f32 %v8103_v44, %v8101_v43  ;;  %v7839_v43 = vpack.c.bf16 %v1901_v41, %v1900_v40 }
 0x314   : > { %7363 = vmatmul.mubr.msk.f32.vlgmr.msra.gmra.mrb[14].mxu1 %vm1054_vm4, %v1685_v45 }
 0x315   : > { %7384 = vmatprep.mubr.msk.f32.mxu1 %vm8407_vm0, %v8408_v2  ;;  %7837 = vmatpush3.bf16.msra.mxu1 %v7836_v37 }
 0x316   : > { %7838 = vmatprep.subr.bf16.mxu1 %v8406_v1 }
 0x319   : > { %7840 = vmatpush3.bf16.msra.mxu1 %v7839_v43 }
 0x31a   : > { %7847 = vmatprep.subr.bf16.mxu1 %v8406_v1 }
 0x362   : > { %v1128_v46 = vpop.f32.mrb[4].mxu1 }
 0x363   : > { %v7329_v47 = vpop.f32.mrb[5].mxu1 }
 0x3aa   : > { %v1219_v48 = vpop.f32.mrb[6].mxu1 }
 0x3ab   : > { %1764 = vrot.lane.b32.xlu0 %v1219_v48, %s9741_s27  ;;  %v7334_v49 = vpop.f32.mrb[7].mxu1  ;;  %s9834_s27 = smov 104  }
 0x3ae   : > { %v1309_v50 = vpop.f32.mrb[8].mxu1 }
 0x3af   : > { %v7339_v51 = vpop.f32.mrb[9].mxu1 }
 0x3b2   : > { %v1489_v52 = vpop.f32.mrb[2].mxu0 }
 0x3b3   : > { %v7349_v53 = vpop.f32.mrb[3].mxu0  ;;  %1776 = vrot.lane.b32.xlu1 %v1489_v52, %s9749_s30  ;;  %s9835_s30 = smov 100  }
 0x3b6   : > { %v1669_v54 = vpop.f32.mrb[4].mxu0 }
 0x3b7   : > { %1768 = vrot.lane.b32.xlu1 %v1309_v50, %s9761_s7  ;;  %v7359_v55 = vpop.f32.mrb[5].mxu0  ;;  %s9826_s7 = scalar_lea.vmem [#allocation3], %s8752_s26  ;;  %v1880_v50 = vld [vmem:[%s9828_s2] sm:$0x1]  ;;  %s9836_s2 = smov 4  }
 0x3b8   : > { %v809_v42 = vld [vmem:[%s9826_s7] sm:$0xff]  ;;  %s9831_s7 = smov 116  }
 0x3bb   : > { %1784 = vrot.lane.b32.xlu1 %v1669_v54, %s9755_s23  ;;  %s9829_s23 = smov 124  }
 0x3ce   : > { %v1399_v62 = vpop.f32.mrb[10].mxu1 }
 0x3cf   : > { %1772 = vrot.lane.b32.xlu0 %v1399_v62, %s9759_s8  ;;  %v7344_v63 = vpop.f32.mrb[11].mxu1  ;;  %s9833_s8 = smov 108   ;;  %v1909_v62 = vld [vmem:[#allocation7 + $0x18] sm:$0xff] }
 0x3d0   : > { %v7851_v63 = vpack.c.bf16 %v1909_v62, %v1908_v60 }
 0x3d2   : > { %v1579_v0 = vpop.f32.mrb[12].mxu1 }
 0x3d3   : > { %1780 = vrot.lane.b32.xlu0 %v1579_v0, %s9757_s3  ;;  %v7354_v3 = vpop.f32.mrb[13].mxu1  ;;  %s9827_s3 = sld [smem:[#allocation27_spill]] }
 0x3d9   : > { %v1879_v48 = vld [vmem:[%s9827_s3] sm:$0x1] }
 0x3e7   : > { %v1759_v4 = vpop.f32.mrb[14].mxu1 }
 0x3e8   : > { %1788 = vrot.lane.b32.xlu0 %v1759_v4, %s9753_s4  ;;  %v7364_v5 = vpop.f32.mrb[15].mxu1  ;;  %s9830_s4 = smov 120  }
 0x41d   : > { %v1765_v7 = vpop.permute.xlu0 %1764 }
 0x41e   : > { %v1792_v10 = vsel %vm1791_vm5, %v1128_v46, %v1765_v7 }
 0x425   : > { %v1777_v6 = vpop.permute.xlu1 %1776 }
 0x429   : > { %v1769_v9 = vpop.permute.xlu1 %1768 }
 0x42a   : > { %v1794_v11 = vsel %vm1793_vm6, %v1792_v10, %v1769_v9 }
 0x42d   : > { %v1785_v16 = vpop.permute.xlu1 %1784 }
 0x441   : > { %v1773_v8 = vpop.permute.xlu0 %1772 }
 0x442   : > { %v1796_v12 = vsel %vm1795_vm7, %v1794_v11, %v1773_v8 }
 0x443   : > { %v1798_v14 = vsel %vm1797_vm8, %v1796_v12, %v1777_v6 }
 0x445   : > { %v1781_v13 = vpop.permute.xlu0 %1780 }
 0x446   : > { %v1800_v15 = vsel %vm1799_vm9, %v1798_v14, %v1781_v13 }
 0x447   : > { %v1802_v18 = vsel %vm1801_vm10, %v1800_v15, %v1785_v16 }
 0x45a   : > { %v1789_v19 = vpop.permute.xlu0 %1788 }
 0x45b   : > { %v1804_v20 = vsel %vm1803_vm11, %v1802_v18, %v1789_v19 }
 0x45c   : > { %7374 = vmatmul.mubr.msk.f32.vlgmr.msra.gmra.mrb[6].mxu0 %vm828_vm1, %v1804_v20 }
 0x45d   : > { %7395 = vmatprep.mubr.msk.f32.mxu0 %vm8407_vm0, %v8408_v2 }
 0x52f   : > { %v1874_v22 = vpop.f32.mrb[6].mxu0 }
 0x530   : > { %v1875_v23 = vadd.f32 %v1874_v22, %v827_v21  ;;  %v7375_v24 = vpop.f32.mrb[7].mxu0 }
 0x532   : > { %v1878_v25 = vadd.f32 %v1875_v23, %v8804_v17  ;;  %v7842_v17 = vpack.c.bf16 %v1903_v33, %v1902_v32 }
 0x534   : > { %v1882_v26 = vsel %vm1881_vm12, %v1878_v25, 0.0  ;;  %7843 = vmatpush3.bf16.msra.mxu0 %v7842_v17 }
 0x535   : > { %1883 = vadd.xlane.f32.xlu1 %v1882_v26  ;;  %7844 = vmatprep.subr.bf16.mxu0 %v8406_v1 }
 0x538   : > { %7846 = vmatpush3.bf16.msra.mxu0 %v7845_v39 }
 0x539   : > { %7409 = vmatprep.subr.mxu0 %v8408_v2 }
 0x53b   : > { %7396 = vmatmul.mubr.msk.f32.vlgmr.msra.gmra.mrb[8].mxu0 %vm828_vm1, %v809_v42 }
 0x53c   : > { %7411 = vmatprep.mubr.msk.f32.mxu0 %vm8407_vm0, %v8408_v2 }
 0x5c2   : > { %v1884_v27 = vpop.xlane.xlu1 %1883 }
 0x5c3   : > { %v1886_v28 = vmul.f32 0.03125, %v1884_v27 }
 0x5c5   : > { %v1887_v29 = vsub.f32 %v1878_v25, %v1886_v28 }
 0x5c7   : > { %v1888_v30 = vmul.f32 %v1887_v29, %v1887_v29 }
 0x5c9   : > { %v1889_v31 = vsel %vm1881_vm12, %v1888_v30, 0.0 }
 0x5ca   : > { %1890 = vadd.xlane.f32.xlu0 %v1889_v31 }
 0x60e   : > { %v2057_v53 = vpop.f32.mrb[8].mxu0 }
 0x60f   : > { %2295 = vrot.lane.b32.xlu0 %v2057_v53, %s9829_s23  ;;  %7410 = vmatpush3.xpose.msk.msra.mxu0 %vm1791_vm5, %v2057_v53  ;;  %v7397_v54 = vpop.f32.mrb[9].mxu0 }
 0x610   : > { %7419 = vmatprep.subr.mxu0 %v8408_v2 }
 0x657   : > { %v1891_v44 = vpop.xlane.xlu0 %1890 }
 0x658   : > { %v1892_v45 = vmul.f32 0.03125, %v1891_v44 }
 0x65a   : > { %v1893_v46 = vadd.f32 1e-05, %v1892_v45 }
 0x65c   : > { %8104 = vrsqrt.f32 %v1893_v46 }
 0x666   : > { %v8105_v47 = vpop.eup %8104 }
 0x667   : > { %v1895_v49 = vmul.f32 %v8105_v47, %v1887_v29 }
 0x669   : > { %v1896_v51 = vmul.f32 %v1895_v49, %v1879_v48 }
 0x66b   : > { %v8967_v52 = vadd.f32 %v1896_v51, %v1880_v50 }
 0x66d   : > { %7385 = vmatmul.mubr.msk.f32.vlgmr.msra.gmra.mrb[16].mxu1 %vm828_vm1, %v8967_v52 }
 0x66e   : > { %7406 = vmatprep.mubr.msk.f32.mxu1 %vm8407_vm0, %v8408_v2  ;;  %7849 = vmatpush3.bf16.msra.mxu1 %v7848_v61 }
 0x66f   : > { %7850 = vmatprep.subr.bf16.mxu1 %v8406_v1 }
 0x672   : > { %7852 = vmatpush3.bf16.msra.mxu1 %v7851_v63 }
 0x673   : > { %7414 = vmatprep.subr.mxu1 %v8408_v2 }
 0x675   : > { %7407 = vmatmul.mubr.msk.f32.vlgmr.msra.gmra.mrb[18].mxu1 %vm828_vm1, %v809_v42 }
 0x676   : > { %7416 = vmatprep.mubr.msk.f32.mxu1 %vm8407_vm0, %v8408_v2 }
 0x681   : > { %v2296_v56 = vpop.permute.xlu0 %2295 }
 0x740   : > { %v1984_v55 = vpop.f32.mrb[16].mxu1 }
 0x741   : > { %2293 = vrot.lane.b32.xlu1 %v1984_v55, %s9829_s23  ;;  %v7386_v57 = vpop.f32.mrb[17].mxu1  ;;  %2460 = vrot.lane.b32.xlu0 %v1984_v55, %s9830_s4 }
 0x742   : > { %7412 = vmatmul.mubr.msk.f32.vlgmr.msra.gmra.mrb[10].mxu0 %vm1791_vm5, %v1984_v55 }
 0x743   : > { %7420 = vmatpush3.xpose.msk.msra.mxu0 %vm1791_vm5, %v2296_v56  ;;  %7421 = vmatprep.mubr.msk.f32.mxu0 %vm8407_vm0, %v8408_v2 }
 0x744   : > { %7429 = vmatprep.subr.mxu0 %v8408_v2 }
 0x745   : > { %2462 = vrot.lane.b32.xlu1 %v2057_v53, %s9830_s4  ;;  %2626 = vrot.lane.b32.xlu0 %v1984_v55, %s9831_s7 }
 0x748   : > { %v9033_v20 = vpop.f32.mrb[18].mxu1 }
 0x749   : > { %2628 = vrot.lane.b32.xlu1 %v2057_v53, %s9831_s7  ;;  %2792 = vrot.lane.b32.xlu0 %v1984_v55, %s9832_s24  ;;  %v7408_v21 = vpop.f32.mrb[19].mxu1 }
 0x74a   : > { %7415 = vmatpush3.msra.mxu1 %v9033_v20 }
 0x74b   : > { %7424 = vmatprep.subr.mxu1 %v8408_v2 }
 0x74d   : > { %2794 = vrot.lane.b32.xlu1 %v2057_v53, %s9832_s24  ;;  %2958 = vrot.lane.b32.xlu0 %v1984_v55, %s9833_s8 }
 0x751   : > { %2960 = vrot.lane.b32.xlu1 %v2057_v53, %s9833_s8  ;;  %3124 = vrot.lane.b32.xlu0 %v1984_v55, %s9834_s27 }
 0x755   : > { %3126 = vrot.lane.b32.xlu1 %v2057_v53, %s9834_s27  ;;  %3290 = vrot.lane.b32.xlu0 %v1984_v55, %s9835_s30 }
 0x759   : > { %3292 = vrot.lane.b32.xlu1 %v2057_v53, %s9835_s30 }
 0x7b3   : > { %v2294_v0 = vpop.permute.xlu1 %2293  ;;  %v2461_v3 = vpop.permute.xlu0 %2460 }
 0x7b4   : > { %7422 = vmatmul.mubr.msk.f32.vlgmr.msra.gmra.mrb[12].mxu0 %vm1791_vm5, %v2294_v0 }
 0x7b5   : > { %7431 = vmatprep.mubr.msk.f32.mxu0 %vm8407_vm0, %v8408_v2 }
 0x7b7   : > { %v2463_v4 = vpop.permute.xlu1 %2462  ;;  %v2627_v5 = vpop.permute.xlu0 %2626 }
 0x7b8   : > { %7430 = vmatpush3.xpose.msk.msra.mxu0 %vm1791_vm5, %v2463_v4 }
 0x7b9   : > { %7439 = vmatprep.subr.mxu0 %v8408_v2 }
 0x7bb   : > { %v2629_v6 = vpop.permute.xlu1 %2628  ;;  %7432 = vmatmul.mubr.msk.f32.vlgmr.msra.gmra.mrb[14].mxu0 %vm1791_vm5, %v2461_v3  ;;  %v2793_v7 = vpop.permute.xlu0 %2792 }
 0x7bc   : > { %7440 = vmatpush3.xpose.msk.msra.mxu0 %vm1791_vm5, %v2629_v6  ;;  %7441 = vmatprep.mubr.msk.f32.mxu0 %vm8407_vm0, %v8408_v2 }
 0x7bd   : > { %7449 = vmatprep.subr.mxu0 %v8408_v2 }
 0x7bf   : > { %v2795_v8 = vpop.permute.xlu1 %2794  ;;  %7442 = vmatmul.mubr.msk.f32.vlgmr.msra.gmra.mrb[16].mxu0 %vm1791_vm5, %v2627_v5  ;;  %v2959_v9 = vpop.permute.xlu0 %2958 }
 0x7c0   : > { %7450 = vmatpush3.xpose.msk.msra.mxu0 %vm1791_vm5, %v2795_v8  ;;  %7451 = vmatprep.mubr.msk.f32.mxu0 %vm8407_vm0, %v8408_v2 }
 0x7c1   : > { %7459 = vmatprep.subr.mxu0 %v8408_v2 }
 0x7c3   : > { %v2961_v10 = vpop.permute.xlu1 %2960  ;;  %7452 = vmatmul.mubr.msk.f32.vlgmr.msra.gmra.mrb[18].mxu0 %vm1791_vm5, %v2793_v7  ;;  %v3125_v12 = vpop.permute.xlu0 %3124 }
 0x7c4   : > { %7460 = vmatpush3.xpose.msk.msra.mxu0 %vm1791_vm5, %v2961_v10  ;;  %7461 = vmatprep.mubr.msk.f32.mxu0 %vm8407_vm0, %v8408_v2 }
 0x7c5   : > { %7469 = vmatprep.subr.mxu0 %v8408_v2 }
 0x7c7   : > { %v3127_v11 = vpop.permute.xlu1 %3126  ;;  %7462 = vmatmul.mubr.msk.f32.vlgmr.msra.gmra.mrb[20].mxu0 %vm1791_vm5, %v2959_v9  ;;  %v3291_v14 = vpop.permute.xlu0 %3290 }
 0x7c8   : > { %7470 = vmatpush3.xpose.msk.msra.mxu0 %vm1791_vm5, %v3127_v11  ;;  %7471 = vmatprep.mubr.msk.f32.mxu0 %vm8407_vm0, %v8408_v2 }
 0x7c9   : > { %7479 = vmatprep.subr.mxu0 %v8408_v2 }
 0x7cb   : > { %v3293_v13 = vpop.permute.xlu1 %3292  ;;  %7472 = vmatmul.mubr.msk.f32.vlgmr.msra.gmra.mrb[22].mxu0 %vm1791_vm5, %v3125_v12 }
 0x7cc   : > { %7480 = vmatpush3.xpose.msk.msra.mxu0 %vm1791_vm5, %v3293_v13  ;;  %7481 = vmatprep.mubr.msk.f32.mxu0 %vm8407_vm0, %v8408_v2 }
 0x7cd   : > { %7853 = vmatprep.subr.bf16.mxu0 %v8406_v1 }
 0x7cf   : > { %7482 = vmatmul.mubr.msk.f32.vlgmr.msra.gmra.mrb[24].mxu0 %vm1791_vm5, %v3291_v14 }
 0x7d0   : > { %7497 = vmatprep.mubr.msk.f32.mxu0 %vm8407_vm0, %v8408_v2 }
 0x815   : > { %v2203_v15 = vpop.f32.mrb[10].mxu0 }
 0x816   : > { %v2207_v16 = vmul.f32 0.5, %v2203_v15  ;;  %v7413_v18 = vpop.f32.mrb[11].mxu0 }
 0x818   : > { %v2209_v19 = vsel %vm2208_vm13, %v2207_v16, -inf }
 0x819   : > { %2210 = vmax.xlane.f32.xlu1 %v2209_v19 }
 0x887   : > { %v2367_v22 = vpop.f32.mrb[12].mxu0 }
 0x888   : > { %v2371_v23 = vmul.f32 0.5, %v2367_v22  ;;  %v7423_v24 = vpop.f32.mrb[13].mxu0 }
 0x88a   : > { %v2372_v25 = vsel %vm2208_vm13, %v2371_v23, -inf }
 0x88b   : > { %2373 = vmax.xlane.f32.xlu0 %v2372_v25 }
 0x88e   : > { %v2534_v26 = vpop.f32.mrb[14].mxu0 }
 0x88f   : > { %v2538_v27 = vmul.f32 0.5, %v2534_v26  ;;  %v7433_v28 = vpop.f32.mrb[15].mxu0 }
 0x891   : > { %v2539_v29 = vsel %vm2208_vm13, %v2538_v27, -inf }
 0x892   : > { %2540 = vmax.xlane.f32.xlu0 %v2539_v29  ;;  %v2700_v30 = vpop.f32.mrb[16].mxu0 }
 0x893   : > { %v2704_v31 = vmul.f32 0.5, %v2700_v30  ;;  %v7443_v32 = vpop.f32.mrb[17].mxu0 }
 0x895   : > { %v2705_v33 = vsel %vm2208_vm13, %v2704_v31, -inf }
 0x896   : > { %2706 = vmax.xlane.f32.xlu1 %v2705_v33  ;;  %v2866_v17 = vpop.f32.mrb[18].mxu0 }
 0x897   : > { %v2870_v34 = vmul.f32 0.5, %v2866_v17  ;;  %v7453_v35 = vpop.f32.mrb[19].mxu0 }
 0x899   : > { %v2871_v36 = vsel %vm2208_vm13, %v2870_v34, -inf }
 0x89a   : > { %2872 = vmax.xlane.f32.xlu0 %v2871_v36  ;;  %v3032_v37 = vpop.f32.mrb[20].mxu0 }
 0x89b   : > { %v3036_v38 = vmul.f32 0.5, %v3032_v37  ;;  %v7463_v39 = vpop.f32.mrb[21].mxu0 }
 0x89d   : > { %v3037_v40 = vsel %vm2208_vm13, %v3036_v38, -inf }
 0x89e   : > { %3038 = vmax.xlane.f32.xlu1 %v3037_v40  ;;  %v3198_v41 = vpop.f32.mrb[22].mxu0 }
 0x89f   : > { %v3202_v42 = vmul.f32 0.5, %v3198_v41  ;;  %v7473_v43 = vpop.f32.mrb[23].mxu0 }
 0x8a1   : > { %v3203_v44 = vsel %vm2208_vm13, %v3202_v42, -inf }
 0x8a2   : > { %3204 = vmax.xlane.f32.xlu0 %v3203_v44  ;;  %v3364_v45 = vpop.f32.mrb[24].mxu0 }
 0x8a3   : > { %v7483_v46 = vpop.f32.mrb[25].mxu0  ;;  %v3368_v50 = vmul.f32 0.5, %v3364_v45 }
 0x8a5   : > { %v3369_v51 = vsel %vm2208_vm13, %v3368_v50, -inf }
 0x8a6   : > { %v2211_v47 = vpop.xlane.xlu1 %2210 }
 0x8a7   : > { %v2212_v48 = vsub.f32 %v2207_v16, %v2211_v47 }
 0x8a9   : > { %v2213_v49 = vmul.f32 1.442695, %v2212_v48 }
 0x8ab   : > { %8106 = vpow2.f32 %v2213_v49 }
 0x8af   : > { %2550 = vrot.lane.b32.xlu1 %v9033_v20, %s9830_s4 }
 0x8b5   : > { %v8107_v53 = vpop.eup %8106 }
 0x8b6   : > { %v2215_v54 = vsel %vm2208_vm13, %v8107_v53, 0.0 }
 0x8b8   : > { %2384 = vrot.lane.b32.xlu0 %v9033_v20, %s9829_s23 }
 0x8d3   : > { %3370 = vmax.xlane.f32.xlu1 %v3369_v51 }
 0x8d7   : > { %2216 = vadd.xlane.f32.xlu0 %v2215_v54 }
 0x8e4   : > { %2716 = vrot.lane.b32.xlu1 %v9033_v20, %s9831_s7 }
 0x918   : > { %v2374_v55 = vpop.xlane.xlu0 %2373 }
 0x919   : > { %v2375_v56 = vsub.f32 %v2371_v23, %v2374_v55 }
 0x91b   : > { %v2376_v57 = vmul.f32 1.442695, %v2375_v56 }
 0x91d   : > { %8108 = vpow2.f32 %v2376_v57 }
 0x91f   : > { %v2541_v58 = vpop.xlane.xlu0 %2540 }
 0x920   : > { %v2542_v59 = vsub.f32 %v2538_v27, %v2541_v58 }
 0x922   : > { %v2543_v60 = vmul.f32 1.442695, %v2542_v59 }
 0x923   : > { %v2707_v3 = vpop.xlane.xlu1 %2706 }
 0x924   : > { %8110 = vpow2.f32 %v2543_v60  ;;  %v2708_v4 = vsub.f32 %v2704_v31, %v2707_v3 }
 0x926   : > { %v2709_v6 = vmul.f32 1.442695, %v2708_v4  ;;  %v1910_v4 = vld [vmem:[#allocation8] sm:$0xff] }
 0x927   : > { %v8109_v61 = vpop.eup %8108  ;;  %v2873_v7 = vpop.xlane.xlu0 %2872 }
 0x928   : > { %v2378_v62 = vsel %vm2208_vm13, %v8109_v61, 0.0  ;;  %v2874_v9 = vsub.f32 %v2870_v34, %v2873_v7  ;;  %8112 = vpow2.f32 %v2709_v6 }
 0x929   : > { %2379 = vadd.xlane.f32.xlu1 %v2378_v62 }
 0x92a   : > { %v2875_v12 = vmul.f32 1.442695, %v2874_v9  ;;  %v1912_v9 = vld [vmem:[#allocation8 + $0x10] sm:$0xff] }
 0x92b   : > { %v3039_v5 = vpop.xlane.xlu1 %3038 }
 0x92c   : > { %v3040_v8 = vsub.f32 %v3036_v38, %v3039_v5  ;;  %v1911_v5 = vld [vmem:[#allocation8 + $0x8] sm:$0xff] }
 0x92d   : > { %v7854_v7 = vpack.c.bf16 %v1911_v5, %v1910_v4  ;;  %v3671_v4 = vld [vmem:[%s9712_s18 + $0x50] sm:$0xff]  ;;  %v3672_v5 = vld [vmem:[%s9712_s18 + $0x58] sm:$0xff] }
 0x92e   : > { %v9052_v63 = vpop.eup %8110  ;;  %v3041_v10 = vmul.f32 1.442695, %v3040_v8 }
 0x92f   : > { %v2545_v0 = vsel %vm2208_vm13, %v9052_v63, 0.0  ;;  %v3205_v11 = vpop.xlane.xlu0 %3204  ;;  %v2551_v16 = vpop.permute.xlu1 %2550  ;;  %7855 = vmatpush3.bf16.msra.mxu0 %v7854_v7  ;;  %v3673_v7 = vld [vmem:[%s9712_s18 + $0x60] sm:$0xff] }
 0x930   : > { %2546 = vadd.xlane.f32.xlu0 %v2545_v0  ;;  %v3206_v13 = vsub.f32 %v3202_v42, %v3205_v11  ;;  %8114 = vpow2.f32 %v3041_v10  ;;  %7856 = vmatprep.subr.bf16.mxu0 %v8406_v1  ;;  %v1913_v10 = vld [vmem:[#allocation8 + $0x18] sm:$0xff] }
 0x931   : > { %8116 = vpow2.f32 %v2875_v12  ;;  %v7857_v11 = vpack.c.bf16 %v1913_v10, %v1912_v9 }
 0x932   : > { %v3207_v14 = vmul.f32 1.442695, %v3206_v13  ;;  %v8113_v15 = vpop.eup %8112 }
 0x933   : > { %v2711_v18 = vsel %vm2208_vm13, %v8113_v15, 0.0  ;;  %v2385_v21 = vpop.permute.xlu0 %2384  ;;  %7858 = vmatpush3.bf16.msra.mxu0 %v7857_v11 }
 0x934   : > { %8118 = vpow2.f32 %v3207_v14  ;;  %7865 = vmatprep.subr.bf16.mxu0 %v8406_v1 }
 0x93a   : > { %3048 = vrot.lane.b32.xlu1 %v9033_v20, %s9833_s8  ;;  %v9061_v19 = vpop.eup %8114 }
 0x93b   : > { %v8117_v23 = vpop.eup %8116  ;;  %v3043_v25 = vsel %vm2208_vm13, %v9061_v19, 0.0 }
 0x93c   : > { %v2877_v28 = vsel %vm2208_vm13, %v8117_v23, 0.0 }
 0x93e   : > { %v9066_v29 = vpop.eup %8118 }
 0x93f   : > { %v3209_v30 = vsel %vm2208_vm13, %v9066_v29, 0.0 }
 0x946   : > { %2882 = vrot.lane.b32.xlu0 %v9033_v20, %s9832_s24 }
 0x95e   : > { %2712 = vadd.xlane.f32.xlu1 %v2711_v18 }
 0x960   : > { %v3371_v22 = vpop.xlane.xlu1 %3370 }
 0x961   : > { %v3372_v24 = vsub.f32 %v3368_v50, %v3371_v22 }
 0x962   : > { %3044 = vadd.xlane.f32.xlu1 %v3043_v25 }
 0x963   : > { %v3373_v26 = vmul.f32 1.442695, %v3372_v24 }
 0x964   : > { %v2217_v27 = vpop.xlane.xlu0 %2216  ;;  %v2717_v34 = vpop.permute.xlu1 %2716 }
 0x965   : > { %8120 = vpow2.f32 %v3373_v26  ;;  %2878 = vadd.xlane.f32.xlu0 %v2877_v28 }
 0x966   : > { %8122 = vrcp.f32 %v2217_v27 }
 0x969   : > { %3210 = vadd.xlane.f32.xlu0 %v3209_v30 }
 0x96f   : > { %v9070_v31 = vpop.eup %8120 }
 0x970   : > { %v8123_v32 = vpop.eup %8122  ;;  %v3375_v33 = vsel %vm2208_vm13, %v9070_v31, 0.0 }
 0x971   : > { %3376 = vadd.xlane.f32.xlu1 %v3375_v33  ;;  %v2219_v17 = vmul.f32 %v8123_v32, %v8107_v53 }
 0x973   : > { %7417 = vmatmul.mubr.msk.f32.vlgmr.msra.gmra.mrb[20].mxu1 %vm1793_vm6, %v2219_v17 }
 0x974   : > { %7425 = vmatpush3.msra.mxu1 %v2385_v21  ;;  %7426 = vmatprep.mubr.msk.f32.mxu1 %vm8407_vm0, %v8408_v2 }
 0x975   : > { %7434 = vmatprep.subr.mxu1 %v8408_v2 }
 0x97f   : > { %3214 = vrot.lane.b32.xlu0 %v9033_v20, %s9834_s27 }
 0x982   : > { %3380 = vrot.lane.b32.xlu1 %v9033_v20, %s9835_s30 }
 0x9b6   : > { %v2380_v35 = vpop.xlane.xlu1 %2379 }
 0x9b7   : > { %8124 = vrcp.f32 %v2380_v35  ;;  %v1914_v35 = vld [vmem:[%s9843_s13] sm:$0x1]  ;;  %s9851_s13 = scalar_lea.vmem [#allocation3], %s9849_s25 }
 0x9ba   : > { %v3049_v20 = vpop.permute.xlu1 %3048 }
 0x9bd   : > { %v2547_v36 = vpop.xlane.xlu0 %2546 }
 0x9be   : > { %8126 = vrcp.f32 %v2547_v36 }
 0x9c1   : > { %v8125_v37 = vpop.eup %8124  ;;  %v2883_v42 = vpop.permute.xlu0 %2882 }
 0x9c2   : > { %v2382_v38 = vmul.f32 %v8125_v37, %v8109_v61 }
 0x9c4   : > { %7427 = vmatmul.mubr.msk.f32.vlgmr.msra.gmra.mrb[22].mxu1 %vm1793_vm6, %v2382_v38 }
 0x9c5   : > { %7435 = vmatpush3.msra.mxu1 %v2551_v16  ;;  %7436 = vmatprep.mubr.msk.f32.mxu1 %vm8407_vm0, %v8408_v2 }
 0x9c6   : > { %7444 = vmatprep.subr.mxu1 %v8408_v2 }
 0x9c8   : > { %v8127_v39 = vpop.eup %8126 }
 0x9c9   : > { %v2549_v40 = vmul.f32 %v8127_v39, %v9052_v63 }
 0x9cb   : > { %7437 = vmatmul.mubr.msk.f32.vlgmr.msra.gmra.mrb[24].mxu1 %vm1793_vm6, %v2549_v40 }
 0x9cc   : > { %7445 = vmatpush3.msra.mxu1 %v2717_v34  ;;  %7446 = vmatprep.mubr.msk.f32.mxu1 %vm8407_vm0, %v8408_v2 }
 0x9cd   : > { %7454 = vmatprep.subr.mxu1 %v8408_v2 }
 0x9eb   : > { %v2713_v41 = vpop.xlane.xlu1 %2712 }
 0x9ec   : > { %8128 = vrcp.f32 %v2713_v41 }
 0x9ef   : > { %v3045_v43 = vpop.xlane.xlu1 %3044 }
 0x9f2   : > { %v2879_v44 = vpop.xlane.xlu0 %2878 }
 0x9f3   : > { %8130 = vrcp.f32 %v2879_v44 }
 0x9f4   : > { %8132 = vrcp.f32 %v3045_v43 }
 0x9f6   : > { %v8129_v45 = vpop.eup %8128  ;;  %v3211_v46 = vpop.xlane.xlu0 %3210 }
 0x9f7   : > { %v2715_v47 = vmul.f32 %v8129_v45, %v8113_v15  ;;  %8134 = vrcp.f32 %v3211_v46  ;;  %v3582_v45 = vld [vmem:[#allocation10] sm:$0xff]  ;;  %v3583_v46 = vld [vmem:[#allocation10 + $0x8] sm:$0xff] }
 0x9f9   : > { %7447 = vmatmul.mubr.msk.f32.vlgmr.msra.gmra.mrb[26].mxu1 %vm1793_vm6, %v2715_v47  ;;  %v7860_v47 = vpack.c.bf16 %v3583_v46, %v3582_v45 }
 0x9fa   : > { %7455 = vmatpush3.msra.mxu1 %v2883_v42  ;;  %7456 = vmatprep.mubr.msk.f32.mxu1 %vm8407_vm0, %v8408_v2  ;;  %v3215_v55 = vpop.permute.xlu0 %3214 }
 0x9fb   : > { %7464 = vmatprep.subr.mxu1 %v8408_v2 }
 0x9fd   : > { %v8131_v48 = vpop.eup %8130 }
 0x9fe   : > { %v2881_v49 = vmul.f32 %v8131_v48, %v8117_v23  ;;  %v3377_v50 = vpop.xlane.xlu1 %3376  ;;  %v8133_v51 = vpop.eup %8132  ;;  %v3584_v48 = vld [vmem:[#allocation10 + $0x10] sm:$0xff] }
 0x9ff   : > { %8136 = vrcp.f32 %v3377_v50  ;;  %v3047_v53 = vmul.f32 %v8133_v51, %v9061_v19  ;;  %v3662_v51 = vld [vmem:[%s9712_s18 + $0x8] sm:$0xff] }
 0xa00   : > { %7457 = vmatmul.mubr.msk.f32.vlgmr.msra.gmra.mrb[28].mxu1 %vm1793_vm6, %v2881_v49  ;;  %v3585_v49 = vld [vmem:[#allocation10 + $0x18] sm:$0xff] }
 0xa01   : > { %7465 = vmatpush3.msra.mxu1 %v3049_v20  ;;  %7466 = vmatprep.mubr.msk.f32.mxu1 %vm8407_vm0, %v8408_v2  ;;  %v8135_v54 = vpop.eup %8134  ;;  %v7863_v50 = vpack.c.bf16 %v3585_v49, %v3584_v48  ;;  %v3749_v48 = vld [vmem:[%s9847_s20] sm:$0x1]  ;;  %s9854_s20 = sld [smem:[#allocation28_spill]] }
 0xa02   : > { %7474 = vmatprep.subr.mxu1 %v8408_v2  ;;  %v3213_v56 = vmul.f32 %v8135_v54, %v9066_v29  ;;  %v3381_v57 = vpop.permute.xlu1 %3380 }
 0xa04   : > { %7467 = vmatmul.mubr.msk.f32.vlgmr.msra.gmra.mrb[30].mxu1 %vm1793_vm6, %v3047_v53  ;;  %v3663_v53 = vld [vmem:[%s9712_s18 + $0x10] sm:$0xff] }
 0xa05   : > { %7475 = vmatpush3.msra.mxu1 %v3215_v55  ;;  %7476 = vmatprep.mubr.msk.f32.mxu1 %vm8407_vm0, %v8408_v2  ;;  %v3664_v55 = vld [vmem:[%s9712_s18 + $0x18] sm:$0xff] }
 0xa06   : > { %7484 = vmatprep.subr.mxu1 %v8408_v2 }
 0xa08   : > { %7477 = vmatmul.mubr.msk.f32.vlgmr.msra.gmra.mrb[32].mxu1 %vm1793_vm6, %v3213_v56  ;;  %v7869_v56 = vpack.c.bf16 %v3664_v55, %v3663_v53 }
 0xa09   : > { %v8137_v58 = vpop.eup %8136  ;;  %7485 = vmatpush3.msra.mxu1 %v3381_v57  ;;  %7486 = vmatprep.mubr.msk.f32.mxu1 %vm8407_vm0, %v8408_v2  ;;  %v3665_v57 = vld [vmem:[%s9712_s18 + $0x20] sm:$0xff] }
 0xa0a   : > { %v3379_v59 = vmul.f32 %v8137_v58, %v9070_v31  ;;  %7859 = vmatprep.subr.bf16.mxu1 %v8406_v1  ;;  %v3666_v58 = vld [vmem:[%s9712_s18 + $0x28] sm:$0xff] }
 0xa0c   : > { %7487 = vmatmul.mubr.msk.f32.vlgmr.msra.gmra.mrb[34].mxu1 %vm1793_vm6, %v3379_v59  ;;  %v7872_v59 = vpack.c.bf16 %v3666_v58, %v3665_v57  ;;  %v6972_v57 = vld [vmem:[%s9821_s19 + $0x38] sm:$0xff] }
 0xa0d   : > { %7508 = vmatprep.mubr.msk.f32.mxu1 %vm8407_vm0, %v8408_v2  ;;  %7861 = vmatpush3.bf16.msra.mxu1 %v7860_v47 }
 0xa0e   : > { %7862 = vmatprep.subr.bf16.mxu1 %v8406_v1 }
 0xa11   : > { %7864 = vmatpush3.bf16.msra.mxu1 %v7863_v50  ;;  %v6969_v50 = vld [vmem:[%s9821_s19 + $0x20] sm:$0xff] }
 0xa12   : > { %7889 = vmatprep.subr.bf16.mxu1 %v8406_v1 }
 0xa46   : > { %v2289_v60 = vpop.f32.mrb[20].mxu1 }
 0xa47   : > { %v7418_v61 = vpop.f32.mrb[21].mxu1 }
 0xa48   : > { %v3668_v61 = vld [vmem:[%s9712_s18 + $0x38] sm:$0xff] }
 0xa97   : > { %v2456_v62 = vpop.f32.mrb[22].mxu1 }
 0xa98   : > { %3457 = vrot.lane.b32.xlu0 %v2456_v62, %s9836_s2  ;;  %v7428_v63 = vpop.f32.mrb[23].mxu1 }
 0xa99   : > { %v3669_v63 = vld [vmem:[%s9712_s18 + $0x40] sm:$0xff] }
 0xa9e   : > { %v2622_v0 = vpop.f32.mrb[24].mxu1 }
 0xa9f   : > { %3461 = vrot.lane.b32.xlu1 %v2622_v0, %s9837_s11  ;;  %v7438_v3 = vpop.f32.mrb[25].mxu1  ;;  %v3670_v0 = vld [vmem:[%s9712_s18 + $0x48] sm:$0xff] }
 0xaa0   : > { %v7878_v3 = vpack.c.bf16 %v3670_v0, %v3669_v63  ;;  %v6976_v63 = vld [vmem:[%s9820_s12 + $0x38] sm:$0xff] }
 0xacc   : > { %v2788_v6 = vpop.f32.mrb[26].mxu1 }
 0xacd   : > { %3465 = vrot.lane.b32.xlu0 %v2788_v6, %s9838_s16  ;;  %v7448_v8 = vpop.f32.mrb[27].mxu1  ;;  %v7881_v6 = vpack.c.bf16 %v3672_v5, %v3671_v4 }
 0xace   : > { %v3674_v8 = vld [vmem:[%s9712_s18 + $0x68] sm:$0xff] }
 0xacf   : > { %v7884_v9 = vpack.c.bf16 %v3674_v8, %v3673_v7 }
 0xad3   : > { %v2954_v12 = vpop.f32.mrb[28].mxu1 }
 0xad4   : > { %3469 = vrot.lane.b32.xlu1 %v2954_v12, %s9839_s22  ;;  %v7458_v13 = vpop.f32.mrb[29].mxu1 }
 0xad7   : > { %v3120_v14 = vpop.f32.mrb[30].mxu1 }
 0xad8   : > { %3473 = vrot.lane.b32.xlu0 %v3120_v14, %s9840_s5  ;;  %v7468_v15 = vpop.f32.mrb[31].mxu1  ;;  %v3565_v14 = vld [vmem:[%s9708_s14] sm:$0x1] }
 0xadb   : > { %v3286_v16 = vpop.f32.mrb[32].mxu1 }
 0xadc   : > { %3477 = vrot.lane.b32.xlu1 %v3286_v16, %s9841_s6  ;;  %v7478_v18 = vpop.f32.mrb[33].mxu1  ;;  %v3566_v16 = vld [vmem:[%s9844_s15] sm:$0x1]  ;;  %s9852_s15 = sld [smem:[#allocation29_spill]] }
 0xadf   : > { %v3452_v19 = vpop.f32.mrb[34].mxu1 }
 0xae0   : > { %3481 = vrot.lane.b32.xlu0 %v3452_v19, %s9842_s28  ;;  %v7488_v21 = vpop.f32.mrb[35].mxu1 }
 0xae1   : > { %v3675_v21 = vld [vmem:[%s9712_s18 + $0x70] sm:$0xff] }
 0xb0a   : > { %v3458_v22 = vpop.permute.xlu0 %3457 }
 0xb0b   : > { %v3484_v26 = vsel %vm1791_vm5, %v2289_v60, %v3458_v22  ;;  %v3667_v60 = vld [vmem:[%s9712_s18 + $0x30] sm:$0xff]  ;;  %v3676_v22 = vld [vmem:[%s9712_s18 + $0x78] sm:$0xff] }
 0xb0c   : > { %v7875_v62 = vpack.c.bf16 %v3668_v61, %v3667_v60  ;;  %v6974_v60 = vld [vmem:[%s9820_s12 + $0x28] sm:$0xff] }
 0xb11   : > { %v3462_v23 = vpop.permute.xlu1 %3461 }
 0xb12   : > { %v3485_v27 = vsel %vm1793_vm6, %v3484_v26, %v3462_v23  ;;  %v7887_v23 = vpack.c.bf16 %v3676_v22, %v3675_v21 }
 0xb3f   : > { %v3466_v24 = vpop.permute.xlu0 %3465 }
 0xb40   : > { %v3486_v29 = vsel %vm1795_vm7, %v3485_v27, %v3466_v24  ;;  %v3586_v24 = vld [vmem:[%s9845_s17] sm:$0x1]  ;;  %s9848_s17 = sld [smem:[#allocation39_spill]] }
 0xb46   : > { %v3470_v25 = vpop.permute.xlu1 %3469 }
 0xb47   : > { %v3487_v31 = vsel %vm1797_vm8, %v3486_v29, %v3470_v25  ;;  %v3677_v29 = vld [vmem:[%s9846_s0] sm:$0x1]  ;;  %s9862_s0 = sld [smem:[#allocation41_spill]] }
 0xb4a   : > { %v3474_v28 = vpop.permute.xlu0 %3473 }
 0xb4b   : > { %v3488_v32 = vsel %vm1799_vm9, %v3487_v31, %v3474_v28 }
 0xb4e   : > { %v3478_v30 = vpop.permute.xlu1 %3477 }
 0xb4f   : > { %v3489_v33 = vsel %vm1801_vm10, %v3488_v32, %v3478_v30 }
 0xb52   : > { %v3482_v17 = vpop.permute.xlu0 %3481 }
 0xb53   : > { %v3490_v34 = vsel %vm1803_vm11, %v3489_v33, %v3482_v17 }
 0xb54   : > { %7498 = vmatmul.mubr.msk.f32.vlgmr.msra.gmra.mrb[26].mxu0 %vm828_vm1, %v3490_v34 }
 0xb55   : > { %7543 = vmatprep.mubr.msk.f32.mxu0 %vm8407_vm0, %v8408_v2 }
 0xc27   : > { %v3560_v36 = vpop.f32.mrb[26].mxu0 }
 0xc28   : > { %v3561_v37 = vadd.f32 %v3560_v36, %v1914_v35  ;;  %v7499_v38 = vpop.f32.mrb[27].mxu0 }
 0xc2a   : > { %v3564_v39 = vadd.f32 %v3561_v37, %v8967_v52  ;;  %v3661_v52 = vld [vmem:[%s9712_s18] sm:$0xff] }
 0xc2b   : > { %v7866_v54 = vpack.c.bf16 %v3662_v51, %v3661_v52  ;;  %v6970_v52 = vld [vmem:[%s9821_s19 + $0x28] sm:$0xff]  ;;  %v3750_v51 = vld [vmem:[%s9848_s17] sm:$0x1] }
 0xc2c   : > { %v3567_v40 = vsel %vm1881_vm12, %v3564_v39, 0.0 }
 0xc2d   : > { %3568 = vadd.xlane.f32.xlu1 %v3567_v40  ;;  %7867 = vmatpush3.bf16.msra.mxu0 %v7866_v54  ;;  %v6966_v40 = vld [vmem:[%s9818_s29 + $0x28] sm:$0xff]  ;;  %v7896_v54 = vpack.c.bf16 %v6970_v52, %v6969_v50 }
 0xc2e   : > { %7868 = vmatprep.subr.bf16.mxu0 %v8406_v1 }
 0xc31   : > { %7870 = vmatpush3.bf16.msra.mxu0 %v7869_v56  ;;  %v6971_v56 = vld [vmem:[%s9821_s19 + $0x30] sm:$0xff] }
 0xc32   : > { %7871 = vmatprep.subr.bf16.mxu0 %v8406_v1  ;;  %v7899_v58 = vpack.c.bf16 %v6972_v57, %v6971_v56 }
 0xc35   : > { %7873 = vmatpush3.bf16.msra.mxu0 %v7872_v59  ;;  %v6973_v59 = vld [vmem:[%s9820_s12 + $0x20] sm:$0xff] }
 0xc36   : > { %7874 = vmatprep.subr.bf16.mxu0 %v8406_v1  ;;  %v7902_v61 = vpack.c.bf16 %v6974_v60, %v6973_v59 }
 0xc39   : > { %7876 = vmatpush3.bf16.msra.mxu0 %v7875_v62  ;;  %v6975_v62 = vld [vmem:[%s9820_s12 + $0x30] sm:$0xff] }
 0xc3a   : > { %7877 = vmatprep.subr.bf16.mxu0 %v8406_v1  ;;  %v7905_v0 = vpack.c.bf16 %v6976_v63, %v6975_v62 }
 0xc3d   : > { %7879 = vmatpush3.bf16.msra.mxu0 %v7878_v3 }
 0xc3e   : > { %7880 = vmatprep.subr.bf16.mxu0 %v8406_v1 }
 0xc41   : > { %7882 = vmatpush3.bf16.msra.mxu0 %v7881_v6 }
 0xc42   : > { %7883 = vmatprep.subr.bf16.mxu0 %v8406_v1 }
 0xc45   : > { %7885 = vmatpush3.bf16.msra.mxu0 %v7884_v9 }
 0xc46   : > { %7886 = vmatprep.subr.bf16.mxu0 %v8406_v1 }
 0xc49   : > { %7888 = vmatpush3.bf16.msra.mxu0 %v7887_v23 }
 0xc4a   : > { %7589 = vmatprep.subr.mxu0 %v8408_v2 }
 0xcba   : > { %v3569_v20 = vpop.xlane.xlu1 %3568 }
 0xcbb   : > { %v3570_v41 = vmul.f32 0.03125, %v3569_v20 }
 0xcbd   : > { %v3571_v42 = vsub.f32 %v3564_v39, %v3570_v41  ;;  %v6965_v39 = vld [vmem:[%s9818_s29 + $0x20] sm:$0xff]  ;;  %v6967_v41 = vld [vmem:[%s9818_s29 + $0x30] sm:$0xff] }
 0xcbe   : > { %v7890_v20 = vpack.c.bf16 %v6966_v40, %v6965_v39 }
 0xcbf   : > { %v3572_v43 = vmul.f32 %v3571_v42, %v3571_v42 }
 0xcc1   : > { %v3573_v44 = vsel %vm1881_vm12, %v3572_v43, 0.0 }
 0xcc2   : > { %3574 = vadd.xlane.f32.xlu0 %v3573_v44 }
 0xd4f   : > { %v3575_v10 = vpop.xlane.xlu0 %3574 }
 0xd50   : > { %v3576_v11 = vmul.f32 0.03125, %v3575_v10 }
 0xd52   : > { %v3577_v12 = vadd.f32 1e-05, %v3576_v11 }
 0xd54   : > { %8138 = vrsqrt.f32 %v3577_v12 }
 0xd5e   : > { %v8139_v13 = vpop.eup %8138 }
 0xd5f   : > { %v3579_v15 = vmul.f32 %v8139_v13, %v3571_v42  ;;  %v6968_v42 = vld [vmem:[%s9818_s29 + $0x38] sm:$0xff] }
 0xd60   : > { %v7893_v43 = vpack.c.bf16 %v6968_v42, %v6967_v41 }
 0xd61   : > { %v3580_v18 = vmul.f32 %v3579_v15, %v3565_v14 }
 0xd63   : > { %v3581_v19 = vadd.f32 %v3580_v18, %v3566_v16 }
 0xd65   : > { %7509 = vmatmul.mubr.msk.f32.vlgmr.msra.gmra.mrb[36].mxu1 %vm828_vm1, %v3581_v19 }
 0xd66   : > { %7554 = vmatprep.mubr.msk.f32.mxu1 %vm8407_vm0, %v8408_v2  ;;  %7891 = vmatpush3.bf16.msra.mxu1 %v7890_v20 }
 0xd67   : > { %7892 = vmatprep.subr.bf16.mxu1 %v8406_v1 }
 0xd6a   : > { %7894 = vmatpush3.bf16.msra.mxu1 %v7893_v43 }
 0xd6b   : > { %7895 = vmatprep.subr.bf16.mxu1 %v8406_v1 }
 0xe38   : > { %v3656_v25 = vpop.f32.mrb[36].mxu1 }
 0xe39   : > { %v3657_v26 = vadd.f32 %v3656_v25, %v3586_v24  ;;  %v7510_v27 = vpop.f32.mrb[37].mxu1 }
 0xe3b   : > { %v3660_v28 = vmax.f32 %v3657_v26, 0.0 }
 0xe3d   : > { %7544 = vmatmul.mubr.f32.vlgmr.msra.gmra.mrb[28].mxu0 %v3660_v28 }
 0xe3e   : > { %7591 = vmatprep.mubr.msk.f32.mxu0 %vm8407_vm0, %v8408_v2 }
 0xf10   : > { %v3744_v30 = vpop.f32.mrb[28].mxu0 }
 0xf11   : > { %v3745_v31 = vadd.f32 %v3744_v30, %v3677_v29  ;;  %v7545_v32 = vpop.f32.mrb[29].mxu0 }
 0xf13   : > { %v3748_v33 = vadd.f32 %v3745_v31, %v3581_v19 }
 0xf15   : > { %v3751_v17 = vsel %vm1881_vm12, %v3748_v33, 0.0 }
 0xf16   : > { %3752 = vadd.xlane.f32.xlu0 %v3751_v17 }
 0xfa3   : > { %v3753_v34 = vpop.xlane.xlu0 %3752 }
 0xfa4   : > { %v3754_v35 = vmul.f32 0.03125, %v3753_v34 }
 0xfa6   : > { %v3755_v36 = vsub.f32 %v3748_v33, %v3754_v35 }
 0xfa8   : > { %v3756_v37 = vmul.f32 %v3755_v36, %v3755_v36 }
 0xfaa   : > { %v3757_v38 = vsel %vm1881_vm12, %v3756_v37, 0.0 }
 0xfab   : > { %3758 = vadd.xlane.f32.xlu1 %v3757_v38 }
0x1038   : > { %v3759_v44 = vpop.xlane.xlu1 %3758 }
0x1039   : > { %v3760_v45 = vmul.f32 0.03125, %v3759_v44 }
0x103b   : > { %v3761_v46 = vadd.f32 1e-05, %v3760_v45 }
0x103d   : > { %8140 = vrsqrt.f32 %v3761_v46 }
0x1047   : > { %v8141_v47 = vpop.eup %8140 }
0x1048   : > { %v3763_v49 = vmul.f32 %v8141_v47, %v3755_v36 }
0x104a   : > { %v3764_v53 = vmul.f32 %v3763_v49, %v3749_v48 }
0x104c   : > { %v9241_v55 = vadd.f32 %v3764_v53, %v3750_v51 }
0x104e   : > { %7555 = vmatmul.mubr.msk.f32.vlgmr.msra.gmra.mrb[38].mxu1 %vm828_vm1, %v9241_v55 }
0x104f   : > { %7897 = vmatpush3.bf16.msra.mxu1 %v7896_v54  ;;  %7565 = vmatprep.mubr.msk.f32.mxu1 %vm8407_vm0, %v8408_v2 }
0x1050   : > { %7898 = vmatprep.subr.bf16.mxu1 %v8406_v1 }
0x1053   : > { %7900 = vmatpush3.bf16.msra.mxu1 %v7899_v58 }
0x1054   : > { %7901 = vmatprep.subr.bf16.mxu1 %v8406_v1 }
0x1056   : > { %7566 = vmatmul.mubr.msk.f32.vlgmr.msra.gmra.mrb[40].mxu1 %vm828_vm1, %v9241_v55 }
0x1057   : > { %7903 = vmatpush3.bf16.msra.mxu1 %v7902_v61  ;;  %7576 = vmatprep.mubr.msk.f32.mxu1 %vm8407_vm0, %v8408_v2 }
0x1058   : > { %7904 = vmatprep.subr.bf16.mxu1 %v8406_v1 }
0x105b   : > { %7906 = vmatpush3.bf16.msra.mxu1 %v7905_v0 }
0x105c   : > { %7579 = vmatprep.subr.mxu1 %v8408_v2 }
0x105e   : > { %7577 = vmatmul.mubr.msk.f32.vlgmr.msra.gmra.mrb[42].mxu1 %vm828_vm1, %v9241_v55 }
0x105f   : > { %7581 = vmatprep.mubr.msk.f32.mxu1 %vm8407_vm0, %v8408_v2 }
0x1121   : > { %v3857_v3 = vpop.f32.mrb[38].mxu1 }
0x1122   : > { %v7556_v4 = vpop.f32.mrb[39].mxu1 }
0x1129   : > { %v3927_v5 = vpop.f32.mrb[40].mxu1 }
0x112a   : > { %v4001_v6 = vmul.f32 %v3927_v5, %v3857_v3  ;;  %v7567_v7 = vpop.f32.mrb[41].mxu1 }
0x112c   : > { %4179 = vrot.lane.b32.xlu1 %v4001_v6, %s9830_s4  ;;  %4089 = vrot.lane.b32.xlu0 %v4001_v6, %s9829_s23  ;;  %v4002_v10 = vsel %vm1043_vm3, %v4001_v6, 0.0 }
0x1130   : > { %4269 = vrot.lane.b32.xlu1 %v4001_v6, %s9831_s7  ;;  %4359 = vrot.lane.b32.xlu0 %v4001_v6, %s9832_s24 }
0x1131   : > { %v3997_v8 = vpop.f32.mrb[42].mxu1 }
0x1132   : > { %v7578_v9 = vpop.f32.mrb[43].mxu1  ;;  %7580 = vmatpush3.msk.msra.mxu1 %vm1058_vm2, %v3997_v8 }
0x1133   : > { %7584 = vmatprep.subr.mxu1 %v8408_v2 }
0x1134   : > { %4449 = vrot.lane.b32.xlu1 %v4001_v6, %s9833_s8  ;;  %4539 = vrot.lane.b32.xlu0 %v4001_v6, %s9834_s27 }
0x1138   : > { %4629 = vrot.lane.b32.xlu1 %v4001_v6, %s9835_s30 }
0x1153   : > { %4003 = vadd.xlane.f32.xlu0 %v4002_v10 }
0x119e   : > { %v4180_v11 = vpop.permute.xlu1 %4179  ;;  %v4090_v12 = vpop.permute.xlu0 %4089 }
0x119f   : > { %v4092_v13 = vsel %vm1043_vm3, %v4090_v12, 0.0  ;;  %v4182_v14 = vsel %vm1043_vm3, %v4180_v11, 0.0 }
0x11a0   : > { %4093 = vadd.xlane.f32.xlu1 %v4092_v13  ;;  %4183 = vadd.xlane.f32.xlu0 %v4182_v14 }
0x11a2   : > { %v4270_v15 = vpop.permute.xlu1 %4269  ;;  %v4360_v16 = vpop.permute.xlu0 %4359 }
0x11a3   : > { %v4362_v18 = vsel %vm1043_vm3, %v4360_v16, 0.0  ;;  %v4272_v19 = vsel %vm1043_vm3, %v4270_v15, 0.0 }
0x11a4   : > { %4363 = vadd.xlane.f32.xlu1 %v4362_v18  ;;  %4273 = vadd.xlane.f32.xlu0 %v4272_v19 }
0x11a6   : > { %v4450_v21 = vpop.permute.xlu1 %4449  ;;  %v4540_v22 = vpop.permute.xlu0 %4539 }
0x11a7   : > { %v4542_v23 = vsel %vm1043_vm3, %v4540_v22, 0.0  ;;  %v4452_v24 = vsel %vm1043_vm3, %v4450_v21, 0.0 }
0x11a8   : > { %4543 = vadd.xlane.f32.xlu1 %v4542_v23  ;;  %4453 = vadd.xlane.f32.xlu0 %v4452_v24 }
0x11aa   : > { %v4630_v25 = vpop.permute.xlu1 %4629 }
0x11ab   : > { %v4632_v26 = vsel %vm1043_vm3, %v4630_v25, 0.0 }
0x11ac   : > { %4633 = vadd.xlane.f32.xlu0 %v4632_v26 }
0x11b9   : > { %4102 = vrot.lane.b32.xlu1 %v3997_v8, %s9829_s23 }
0x11bd   : > { %4282 = vrot.lane.b32.xlu1 %v3997_v8, %s9831_s7 }
0x11c1   : > { %4372 = vrot.lane.b32.xlu1 %v3997_v8, %s9832_s24 }
0x11c2   : > { %4192 = vrot.lane.b32.xlu0 %v3997_v8, %s9830_s4 }
0x11c5   : > { %4552 = vrot.lane.b32.xlu1 %v3997_v8, %s9834_s27 }
0x11c6   : > { %4462 = vrot.lane.b32.xlu0 %v3997_v8, %s9833_s8 }
0x11ca   : > { %4642 = vrot.lane.b32.xlu0 %v3997_v8, %s9835_s30 }
0x11e0   : > { %v4004_v27 = vpop.xlane.xlu0 %4003 }
0x11e1   : > { %v4005_v28 = vmul.f32 0.5, %v4004_v27 }
0x11e3   : > { %v4006_v29 = vsub.f32 %v4005_v28, %v4005_v28 }
0x11e5   : > { %v4007_v30 = vmul.f32 1.442695, %v4006_v29 }
0x11e7   : > { %8142 = vpow2.f32 %v4007_v30 }
0x11f1   : > { %v8143_v31 = vpop.eup %8142 }
0x11f2   : > { %8144 = vrcp.f32 %v8143_v31 }
0x11fc   : > { %v8145_v32 = vpop.eup %8144 }
0x11fd   : > { %v4011_v33 = vmul.f32 %v8145_v32, %v8143_v31  ;;  %v6977_v31 = vld [vmem:[%s9822_s21 + $0x20] sm:$0xff]  ;;  %v6978_v32 = vld [vmem:[%s9822_s21 + $0x28] sm:$0xff] }
0x11ff   : > { %7582 = vmatmul.mubr.msk.f32.vlgmr.msra.gmra.mrb[44].mxu1 %vm1054_vm4, %v4011_v33  ;;  %v7908_v33 = vpack.c.bf16 %v6978_v32, %v6977_v31 }
0x1200   : > { %7586 = vmatprep.mubr.msk.f32.mxu1 %vm8407_vm0, %v8408_v2 }
0x122d   : > { %v4094_v17 = vpop.xlane.xlu1 %4093  ;;  %v4184_v34 = vpop.xlane.xlu0 %4183 }
0x122e   : > { %v4095_v35 = vmul.f32 0.5, %v4094_v17  ;;  %v4185_v36 = vmul.f32 0.5, %v4184_v34  ;;  %v6979_v17 = vld [vmem:[%s9822_s21 + $0x30] sm:$0xff]  ;;  %v6980_v34 = vld [vmem:[%s9822_s21 + $0x38] sm:$0xff] }
0x1230   : > { %v4096_v37 = vsub.f32 %v4095_v35, %v4095_v35  ;;  %v4186_v38 = vsub.f32 %v4185_v36, %v4185_v36  ;;  %v7911_v35 = vpack.c.bf16 %v6980_v34, %v6979_v17  ;;  %v7003_v34 = vld [vmem:[%s9854_s20 + $0x1] sm:$0x1] }
0x1231   : > { %v4364_v39 = vpop.xlane.xlu1 %4363  ;;  %v4274_v40 = vpop.xlane.xlu0 %4273 }
0x1232   : > { %v4097_v20 = vmul.f32 1.442695, %v4096_v37  ;;  %v4187_v41 = vmul.f32 1.442695, %v4186_v38  ;;  %v4365_v42 = vmul.f32 0.5, %v4364_v39  ;;  %v4275_v43 = vmul.f32 0.5, %v4274_v40 }
0x1234   : > { %8146 = vpow2.f32 %v4097_v20  ;;  %v4366_v44 = vsub.f32 %v4365_v42, %v4365_v42  ;;  %v4276_v45 = vsub.f32 %v4275_v43, %v4275_v43 }
0x1235   : > { %8148 = vpow2.f32 %v4187_v41  ;;  %v4544_v46 = vpop.xlane.xlu1 %4543  ;;  %v4454_v47 = vpop.xlane.xlu0 %4453 }
0x1236   : > { %v4367_v48 = vmul.f32 1.442695, %v4366_v44  ;;  %v4277_v49 = vmul.f32 1.442695, %v4276_v45  ;;  %v4545_v50 = vmul.f32 0.5, %v4544_v46  ;;  %v4455_v52 = vmul.f32 0.5, %v4454_v47 }
0x1238   : > { %8150 = vpow2.f32 %v4367_v48  ;;  %v4546_v51 = vsub.f32 %v4545_v50, %v4545_v50  ;;  %v4456_v53 = vsub.f32 %v4455_v52, %v4455_v52 }
0x1239   : > { %8152 = vpow2.f32 %v4277_v49  ;;  %v4634_v54 = vpop.xlane.xlu0 %4633  ;;  %v4103_v56 = vpop.permute.xlu1 %4102 }
0x123a   : > { %v4547_v57 = vmul.f32 1.442695, %v4546_v51  ;;  %v4457_v58 = vmul.f32 1.442695, %v4456_v53  ;;  %v4635_v59 = vmul.f32 0.5, %v4634_v54  ;;  %7585 = vmatpush3.msk.msra.mxu1 %vm1058_vm2, %v4103_v56 }
0x123b   : > { %7594 = vmatprep.subr.mxu1 %v8408_v2 }
0x123c   : > { %8154 = vpow2.f32 %v4547_v57  ;;  %v4636_v60 = vsub.f32 %v4635_v59, %v4635_v59 }
0x123d   : > { %8156 = vpow2.f32 %v4457_v58  ;;  %v4193_v61 = vpop.permute.xlu0 %4192  ;;  %v4283_v5 = vpop.permute.xlu1 %4282 }
0x123e   : > { %v8147_v62 = vpop.eup %8146  ;;  %v4637_v63 = vmul.f32 1.442695, %v4636_v60  ;;  %7590 = vmatpush3.msk.msra.mxu0 %vm1058_vm2, %v4193_v61 }
0x123f   : > { %v8149_v0 = vpop.eup %8148  ;;  %8158 = vrcp.f32 %v8147_v62  ;;  %7599 = vmatprep.subr.mxu0 %v8408_v2 }
0x1240   : > { %8160 = vrcp.f32 %v8149_v0 }
0x1241   : > { %8162 = vpow2.f32 %v4637_v63  ;;  %v4373_v12 = vpop.permute.xlu1 %4372  ;;  %v4463_v18 = vpop.permute.xlu0 %4462 }
0x1242   : > { %v8151_v3 = vpop.eup %8150 }
0x1243   : > { %v8153_v4 = vpop.eup %8152  ;;  %8164 = vrcp.f32 %v8151_v3 }
0x1244   : > { %8166 = vrcp.f32 %v8153_v4 }
0x1245   : > { %v4553_v22 = vpop.permute.xlu1 %4552  ;;  %v4643_v26 = vpop.permute.xlu0 %4642 }
0x1246   : > { %v8155_v6 = vpop.eup %8154 }
0x1247   : > { %v8157_v7 = vpop.eup %8156  ;;  %8168 = vrcp.f32 %v8155_v6 }
0x1248   : > { %8170 = vrcp.f32 %v8157_v7 }
0x1249   : > { %v8159_v8 = vpop.eup %8158 }
0x124a   : > { %v8161_v9 = vpop.eup %8160  ;;  %v4101_v10 = vmul.f32 %v8159_v8, %v8147_v62  ;;  %v7008_v8 = vld [vmem:[%s9850_s9 + $0x20] sm:$0xff] }
0x124b   : > { %v8163_v11 = vpop.eup %8162  ;;  %v4191_v13 = vmul.f32 %v8161_v9, %v8149_v0  ;;  %v6981_v0 = vld [vmem:[%s9823_s1 + $0x1] sm:$0x1]  ;;  %v7009_v9 = vld [vmem:[%s9850_s9 + $0x28] sm:$0xff] }
0x124c   : > { %8172 = vrcp.f32 %v8163_v11  ;;  %7587 = vmatmul.mubr.msk.f32.vlgmr.msra.gmra.mrb[46].mxu1 %vm1054_vm4, %v4101_v10  ;;  %v7010_v10 = vld [vmem:[%s9850_s9 + $0x30] sm:$0xff] }
0x124d   : > { %v8165_v14 = vpop.eup %8164  ;;  %7592 = vmatmul.mubr.msk.f32.vlgmr.msra.gmra.mrb[30].mxu0 %vm1054_vm4, %v4191_v13  ;;  %7595 = vmatpush3.msk.msra.mxu1 %vm1058_vm2, %v4283_v5  ;;  %v8212_v13 = vld [vmem:[%s9851_s13] sm:$0xff]  ;;  %s9857_s13 = sld [smem:[#allocation36_spill]] }
0x124e   : > { %v8167_v15 = vpop.eup %8166  ;;  %7600 = vmatpush3.msk.msra.mxu0 %vm1058_vm2, %v4373_v12  ;;  %7596 = vmatprep.mubr.msk.f32.mxu1 %vm8407_vm0, %v8408_v2  ;;  %v4371_v16 = vmul.f32 %v8165_v14, %v8151_v3 }
0x124f   : > { %7601 = vmatprep.mubr.msk.f32.mxu0 %vm8407_vm0, %v8408_v2  ;;  %7604 = vmatprep.subr.mxu1 %v8408_v2  ;;  %v4281_v19 = vmul.f32 %v8167_v15, %v8153_v4 }
0x1250   : > { %7609 = vmatprep.subr.mxu0 %v8408_v2 }
0x1251   : > { %v8169_v21 = vpop.eup %8168  ;;  %7597 = vmatmul.mubr.msk.f32.vlgmr.msra.gmra.mrb[48].mxu1 %vm1054_vm4, %v4281_v19  ;;  %7602 = vmatmul.mubr.msk.f32.vlgmr.msra.gmra.mrb[32].mxu0 %vm1054_vm4, %v4371_v16 }
0x1252   : > { %v8171_v23 = vpop.eup %8170  ;;  %7605 = vmatpush3.msk.msra.mxu1 %vm1058_vm2, %v4463_v18  ;;  %7610 = vmatpush3.msk.msra.mxu0 %vm1058_vm2, %v4553_v22  ;;  %v4551_v24 = vmul.f32 %v8169_v21, %v8155_v6  ;;  %v7004_v21 = vld [vmem:[%s9852_s15 + $0x20] sm:$0xff]  ;;  %v7005_v22 = vld [vmem:[%s9852_s15 + $0x28] sm:$0xff] }
0x1253   : > { %7606 = vmatprep.mubr.msk.f32.mxu1 %vm8407_vm0, %v8408_v2  ;;  %7611 = vmatprep.mubr.msk.f32.mxu0 %vm8407_vm0, %v8408_v2  ;;  %v4461_v25 = vmul.f32 %v8171_v23, %v8157_v7  ;;  %v7914_v23 = vpack.c.bf16 %v7005_v22, %v7004_v21 }
0x1254   : > { %7614 = vmatprep.subr.mxu1 %v8408_v2  ;;  %7907 = vmatprep.subr.bf16.mxu0 %v8406_v1 }
0x1255   : > { %7607 = vmatmul.mubr.msk.f32.vlgmr.msra.gmra.mrb[50].mxu1 %vm1054_vm4, %v4461_v25  ;;  %7612 = vmatmul.mubr.msk.f32.vlgmr.msra.gmra.mrb[34].mxu0 %vm1054_vm4, %v4551_v24  ;;  %v7006_v24 = vld [vmem:[%s9852_s15 + $0x30] sm:$0xff]  ;;  %v7007_v25 = vld [vmem:[%s9852_s15 + $0x38] sm:$0xff]  ;;  %s9858_s15 = sld [smem:[#allocation37_spill]] }
0x1256   : > { %v8173_v27 = vpop.eup %8172  ;;  %7615 = vmatpush3.msk.msra.mxu1 %vm1058_vm2, %v4643_v26  ;;  %7616 = vmatprep.mubr.msk.f32.mxu1 %vm8407_vm0, %v8408_v2  ;;  %v7917_v26 = vpack.c.bf16 %v7007_v25, %v7006_v24 }
0x1257   : > { %v4641_v28 = vmul.f32 %v8173_v27, %v8163_v11  ;;  %7627 = vmatprep.mubr.msk.f32.mxu0 %vm8407_vm0, %v8408_v2  ;;  %7913 = vmatprep.subr.bf16.mxu1 %v8406_v1  ;;  %v7920_v11 = vpack.c.bf16 %v7009_v9, %v7008_v8 }
0x1258   : > { %7909 = vmatpush3.bf16.msra.mxu0 %v7908_v33 }
0x1259   : > { %7617 = vmatmul.mubr.msk.f32.vlgmr.msra.gmra.mrb[52].mxu1 %vm1054_vm4, %v4641_v28  ;;  %7910 = vmatprep.subr.bf16.mxu0 %v8406_v1 }
0x125a   : > { %7638 = vmatprep.mubr.msk.f32.mxu1 %vm8407_vm0, %v8408_v2  ;;  %7915 = vmatpush3.bf16.msra.mxu1 %v7914_v23 }
0x125b   : > { %7916 = vmatprep.subr.bf16.mxu1 %v8406_v1 }
0x125c   : > { %7912 = vmatpush3.bf16.msra.mxu0 %v7911_v35 }
0x125d   : > { %7919 = vmatprep.subr.bf16.mxu0 %v8406_v1 }
0x125e   : > { %7918 = vmatpush3.bf16.msra.mxu1 %v7917_v26 }
0x125f   : > { %7925 = vmatprep.subr.bf16.mxu1 %v8406_v1 }
0x12d2   : > { %v4084_v29 = vpop.f32.mrb[44].mxu1 }
0x12d3   : > { %v7583_v30 = vpop.f32.mrb[45].mxu1 }
0x131f   : > { %v4175_v36 = vpop.f32.mrb[46].mxu1 }
0x1320   : > { %v4265_v37 = vpop.f32.mrb[30].mxu0  ;;  %4720 = vrot.lane.b32.xlu1 %v4175_v36, %s9836_s2  ;;  %v7588_v38 = vpop.f32.mrb[47].mxu1 }
0x1321   : > { %4724 = vrot.lane.b32.xlu0 %v4265_v37, %s9837_s11  ;;  %v7593_v39 = vpop.f32.mrb[31].mxu0  ;;  %v4858_v37 = vld [vmem:[#allocation7 + $0x20] sm:$0xff]  ;;  %v4859_v38 = vld [vmem:[#allocation7 + $0x28] sm:$0xff] }
0x1322   : > { %v4860_v39 = vld [vmem:[#allocation7 + $0x30] sm:$0xff] }
0x1324   : > { %v4355_v40 = vpop.f32.mrb[48].mxu1  ;;  %v4445_v20 = vpop.f32.mrb[32].mxu0 }
0x1325   : > { %4728 = vrot.lane.b32.xlu1 %v4355_v40, %s9838_s16  ;;  %v7598_v41 = vpop.f32.mrb[49].mxu1  ;;  %4732 = vrot.lane.b32.xlu0 %v4445_v20, %s9839_s22  ;;  %v7603_v42 = vpop.f32.mrb[33].mxu0  ;;  %v7926_v40 = vpack.c.bf16 %v4859_v38, %v4858_v37  ;;  %v4861_v20 = vld [vmem:[#allocation7 + $0x38] sm:$0xff] }
0x1326   : > { %v7929_v41 = vpack.c.bf16 %v4861_v20, %v4860_v39 }
0x1328   : > { %v4535_v43 = vpop.f32.mrb[50].mxu1  ;;  %v4625_v44 = vpop.f32.mrb[34].mxu0 }
0x1329   : > { %4736 = vrot.lane.b32.xlu1 %v4535_v43, %s9840_s5  ;;  %v7608_v45 = vpop.f32.mrb[51].mxu1  ;;  %4740 = vrot.lane.b32.xlu0 %v4625_v44, %s9841_s6  ;;  %v7613_v46 = vpop.f32.mrb[35].mxu0 }
0x132c   : > { %v4715_v47 = vpop.f32.mrb[52].mxu1 }
0x132d   : > { %4744 = vrot.lane.b32.xlu1 %v4715_v47, %s9842_s28  ;;  %v7618_v48 = vpop.f32.mrb[53].mxu1 }
0x1392   : > { %v4721_v49 = vpop.permute.xlu1 %4720 }
0x1393   : > { %v4725_v50 = vpop.permute.xlu0 %4724  ;;  %v4747_v52 = vsel %vm1791_vm5, %v4084_v29, %v4721_v49 }
0x1394   : > { %v4748_v51 = vsel %vm1793_vm6, %v4747_v52, %v4725_v50 }
0x1397   : > { %v4729_v53 = vpop.permute.xlu1 %4728  ;;  %v4733_v54 = vpop.permute.xlu0 %4732 }
0x1398   : > { %v4749_v56 = vsel %vm1795_vm7, %v4748_v51, %v4729_v53 }
0x1399   : > { %v4750_v57 = vsel %vm1797_vm8, %v4749_v56, %v4733_v54 }
0x139b   : > { %v4737_v58 = vpop.permute.xlu1 %4736  ;;  %v4741_v60 = vpop.permute.xlu0 %4740 }
0x139c   : > { %v4751_v59 = vsel %vm1799_vm9, %v4750_v57, %v4737_v58 }
0x139d   : > { %v4752_v61 = vsel %vm1801_vm10, %v4751_v59, %v4741_v60 }
0x139f   : > { %v4745_v62 = vpop.permute.xlu1 %4744 }
0x13a0   : > { %v4753_v63 = vsel %vm1803_vm11, %v4752_v61, %v4745_v62 }
0x13a1   : > { %7628 = vmatmul.mubr.msk.f32.vlgmr.msra.gmra.mrb[36].mxu0 %vm828_vm1, %v4753_v63 }
0x13a2   : > { %7649 = vmatprep.mubr.msk.f32.mxu0 %vm8407_vm0, %v8408_v2  ;;  %7921 = vmatpush3.bf16.msra.mxu0 %v7920_v11 }
0x13a3   : > { %7922 = vmatprep.subr.bf16.mxu0 %v8406_v1 }
0x1474   : > { %v4823_v3 = vpop.f32.mrb[36].mxu0 }
0x1475   : > { %v4824_v4 = vadd.f32 %v6981_v0, %v4823_v3  ;;  %v7629_v5 = vpop.f32.mrb[37].mxu0 }
0x1477   : > { %v4827_v6 = vadd.f32 %v4824_v4, %v9241_v55  ;;  %v7011_v55 = vld [vmem:[%s9850_s9 + $0x38] sm:$0xff]  ;;  %s9853_s9 = sld [smem:[#allocation27_spill]] }
0x1478   : > { %v7923_v12 = vpack.c.bf16 %v7011_v55, %v7010_v10 }
0x1479   : > { %v4832_v7 = vsel %vm1881_vm12, %v4827_v6, 0.0 }
0x147a   : > { %4833 = vadd.xlane.f32.xlu0 %v4832_v7  ;;  %7924 = vmatpush3.bf16.msra.mxu0 %v7923_v12 }
0x147b   : > { %7663 = vmatprep.subr.mxu0 %v8408_v2 }
0x147d   : > { %7650 = vmatmul.mubr.msk.f32.vlgmr.msra.gmra.mrb[38].mxu0 %vm828_vm1, %v8212_v13  ;;  %v7002_v33 = vld [vmem:[%s9853_s9 + $0x1] sm:$0x1] }
0x147e   : > { %7665 = vmatprep.mubr.msk.f32.mxu0 %vm8407_vm0, %v8408_v2 }
0x1507   : > { %v4834_v14 = vpop.xlane.xlu0 %4833 }
0x1508   : > { %v4835_v15 = vmul.f32 0.03125, %v4834_v14 }
0x150a   : > { %v4836_v16 = vsub.f32 %v4827_v6, %v4835_v15 }
0x150c   : > { %v4837_v18 = vmul.f32 %v4836_v16, %v4836_v16 }
0x150e   : > { %v4838_v19 = vsel %vm1881_vm12, %v4837_v18, 0.0 }
0x150f   : > { %4839 = vadd.xlane.f32.xlu1 %v4838_v19 }
0x1550   : > { %v5008_v27 = vpop.f32.mrb[38].mxu0 }
0x1551   : > { %5245 = vrot.lane.b32.xlu0 %v5008_v27, %s9829_s23  ;;  %v7651_v28 = vpop.f32.mrb[39].mxu0  ;;  %7664 = vmatpush3.xpose.msk.msra.mxu0 %vm1791_vm5, %v5008_v27 }
0x1552   : > { %7673 = vmatprep.subr.mxu0 %v8408_v2 }
0x1555   : > { %5412 = vrot.lane.b32.xlu0 %v5008_v27, %s9830_s4 }
0x1559   : > { %5578 = vrot.lane.b32.xlu0 %v5008_v27, %s9831_s7 }
0x155d   : > { %5744 = vrot.lane.b32.xlu0 %v5008_v27, %s9832_s24 }
0x1561   : > { %5910 = vrot.lane.b32.xlu0 %v5008_v27, %s9833_s8 }
0x1565   : > { %6076 = vrot.lane.b32.xlu0 %v5008_v27, %s9834_s27 }
0x1569   : > { %6242 = vrot.lane.b32.xlu0 %v5008_v27, %s9835_s30 }
0x159c   : > { %v4840_v29 = vpop.xlane.xlu1 %4839 }
0x159d   : > { %v4841_v30 = vmul.f32 0.03125, %v4840_v29 }
0x159f   : > { %v4842_v31 = vadd.f32 1e-05, %v4841_v30 }
0x15a1   : > { %8174 = vrsqrt.f32 %v4842_v31 }
0x15ab   : > { %v8175_v32 = vpop.eup %8174 }
0x15ac   : > { %v4844_v17 = vmul.f32 %v8175_v32, %v4836_v16 }
0x15ae   : > { %v4845_v35 = vmul.f32 %v7002_v33, %v4844_v17 }
0x15b0   : > { %v9424_v36 = vadd.f32 %v7003_v34, %v4845_v35 }
0x15b2   : > { %7639 = vmatmul.mubr.msk.f32.vlgmr.msra.gmra.mrb[54].mxu1 %vm828_vm1, %v9424_v36 }
0x15b3   : > { %7660 = vmatprep.mubr.msk.f32.mxu1 %vm8407_vm0, %v8408_v2  ;;  %7927 = vmatpush3.bf16.msra.mxu1 %v7926_v40 }
0x15b4   : > { %7928 = vmatprep.subr.bf16.mxu1 %v8406_v1 }
0x15b7   : > { %7930 = vmatpush3.bf16.msra.mxu1 %v7929_v41 }
0x15b8   : > { %7668 = vmatprep.subr.mxu1 %v8408_v2 }
0x15ba   : > { %7661 = vmatmul.mubr.msk.f32.vlgmr.msra.gmra.mrb[56].mxu1 %vm828_vm1, %v8212_v13 }
0x15bb   : > { %7670 = vmatprep.mubr.msk.f32.mxu1 %vm8407_vm0, %v8408_v2 }
0x15c3   : > { %v5246_v44 = vpop.permute.xlu0 %5245 }
0x15c7   : > { %v5413_v45 = vpop.permute.xlu0 %5412 }
0x15cb   : > { %v5579_v46 = vpop.permute.xlu0 %5578 }
0x15cf   : > { %v5745_v48 = vpop.permute.xlu0 %5744 }
0x15d3   : > { %v5911_v53 = vpop.permute.xlu0 %5910 }
0x15d7   : > { %v6077_v56 = vpop.permute.xlu0 %6076 }
0x15db   : > { %v6243_v59 = vpop.permute.xlu0 %6242 }
0x1685   : > { %v4938_v42 = vpop.f32.mrb[54].mxu1 }
0x1686   : > { %5243 = vrot.lane.b32.xlu1 %v4938_v42, %s9829_s23  ;;  %v7640_v43 = vpop.f32.mrb[55].mxu1  ;;  %7666 = vmatmul.mubr.msk.f32.vlgmr.msra.gmra.mrb[40].mxu0 %vm1791_vm5, %v4938_v42 }
0x1687   : > { %7674 = vmatpush3.xpose.msk.msra.mxu0 %vm1791_vm5, %v5246_v44  ;;  %7675 = vmatprep.mubr.msk.f32.mxu0 %vm8407_vm0, %v8408_v2 }
0x1688   : > { %7683 = vmatprep.subr.mxu0 %v8408_v2 }
0x168a   : > { %5410 = vrot.lane.b32.xlu1 %v4938_v42, %s9830_s4 }
0x168d   : > { %v9452_v49 = vpop.f32.mrb[56].mxu1 }
0x168e   : > { %5576 = vrot.lane.b32.xlu1 %v4938_v42, %s9831_s7  ;;  %v7662_v52 = vpop.f32.mrb[57].mxu1  ;;  %7669 = vmatpush3.msra.mxu1 %v9452_v49 }
0x168f   : > { %7678 = vmatprep.subr.mxu1 %v8408_v2 }
0x1692   : > { %5742 = vrot.lane.b32.xlu1 %v4938_v42, %s9832_s24 }
0x1696   : > { %5908 = vrot.lane.b32.xlu1 %v4938_v42, %s9833_s8 }
0x169a   : > { %6074 = vrot.lane.b32.xlu1 %v4938_v42, %s9834_s27 }
0x169e   : > { %6240 = vrot.lane.b32.xlu1 %v4938_v42, %s9835_s30 }
0x16a2   : > { %5334 = vrot.lane.b32.xlu1 %v9452_v49, %s9829_s23 }
0x16f8   : > { %v5244_v47 = vpop.permute.xlu1 %5243 }
0x16f9   : > { %7676 = vmatmul.mubr.msk.f32.vlgmr.msra.gmra.mrb[42].mxu0 %vm1791_vm5, %v5244_v47 }
0x16fa   : > { %7684 = vmatpush3.xpose.msk.msra.mxu0 %vm1791_vm5, %v5413_v45  ;;  %7685 = vmatprep.mubr.msk.f32.mxu0 %vm8407_vm0, %v8408_v2 }
0x16fb   : > { %7693 = vmatprep.subr.mxu0 %v8408_v2 }
0x16fc   : > { %v5411_v50 = vpop.permute.xlu1 %5410 }
0x16fd   : > { %7686 = vmatmul.mubr.msk.f32.vlgmr.msra.gmra.mrb[44].mxu0 %vm1791_vm5, %v5411_v50 }
0x16fe   : > { %7694 = vmatpush3.xpose.msk.msra.mxu0 %vm1791_vm5, %v5579_v46  ;;  %7695 = vmatprep.mubr.msk.f32.mxu0 %vm8407_vm0, %v8408_v2 }
0x16ff   : > { %7703 = vmatprep.subr.mxu0 %v8408_v2 }
0x1700   : > { %v5577_v51 = vpop.permute.xlu1 %5576 }
0x1701   : > { %7696 = vmatmul.mubr.msk.f32.vlgmr.msra.gmra.mrb[46].mxu0 %vm1791_vm5, %v5577_v51 }
0x1702   : > { %7704 = vmatpush3.xpose.msk.msra.mxu0 %vm1791_vm5, %v5745_v48  ;;  %7705 = vmatprep.mubr.msk.f32.mxu0 %vm8407_vm0, %v8408_v2 }
0x1703   : > { %7713 = vmatprep.subr.mxu0 %v8408_v2 }
0x1704   : > { %v5743_v54 = vpop.permute.xlu1 %5742 }
0x1705   : > { %7706 = vmatmul.mubr.msk.f32.vlgmr.msra.gmra.mrb[48].mxu0 %vm1791_vm5, %v5743_v54 }
0x1706   : > { %7714 = vmatpush3.xpose.msk.msra.mxu0 %vm1791_vm5, %v5911_v53  ;;  %7715 = vmatprep.mubr.msk.f32.mxu0 %vm8407_vm0, %v8408_v2 }
0x1707   : > { %7723 = vmatprep.subr.mxu0 %v8408_v2 }
0x1708   : > { %v5909_v57 = vpop.permute.xlu1 %5908 }
0x1709   : > { %7716 = vmatmul.mubr.msk.f32.vlgmr.msra.gmra.mrb[50].mxu0 %vm1791_vm5, %v5909_v57 }
0x170a   : > { %7724 = vmatpush3.xpose.msk.msra.mxu0 %vm1791_vm5, %v6077_v56  ;;  %7725 = vmatprep.mubr.msk.f32.mxu0 %vm8407_vm0, %v8408_v2 }
0x170b   : > { %7733 = vmatprep.subr.mxu0 %v8408_v2 }
0x170c   : > { %v6075_v58 = vpop.permute.xlu1 %6074 }
0x170d   : > { %7726 = vmatmul.mubr.msk.f32.vlgmr.msra.gmra.mrb[52].mxu0 %vm1791_vm5, %v6075_v58 }
0x170e   : > { %7734 = vmatpush3.xpose.msk.msra.mxu0 %vm1791_vm5, %v6243_v59  ;;  %7735 = vmatprep.mubr.msk.f32.mxu0 %vm8407_vm0, %v8408_v2 }
0x170f   : > { %7931 = vmatprep.subr.bf16.mxu0 %v8406_v1 }
0x1710   : > { %v6241_v60 = vpop.permute.xlu1 %6240 }
0x1711   : > { %7736 = vmatmul.mubr.msk.f32.vlgmr.msra.gmra.mrb[54].mxu0 %vm1791_vm5, %v6241_v60 }
0x1712   : > { %7751 = vmatprep.mubr.msk.f32.mxu0 %vm8407_vm0, %v8408_v2 }
0x1714   : > { %v5335_v37 = vpop.permute.xlu1 %5334 }
0x1759   : > { %v5154_v61 = vpop.f32.mrb[40].mxu0 }
0x175a   : > { %v5158_v62 = vmul.f32 0.5, %v5154_v61  ;;  %v7667_v63 = vpop.f32.mrb[41].mxu0 }
0x175c   : > { %v5159_v0 = vsel %vm2208_vm13, %v5158_v62, -inf }
0x175d   : > { %5160 = vmax.xlane.f32.xlu0 %v5159_v0 }
0x17cc   : > { %v5317_v3 = vpop.f32.mrb[42].mxu0 }
0x17cd   : > { %v5321_v4 = vmul.f32 0.5, %v5317_v3  ;;  %v7677_v5 = vpop.f32.mrb[43].mxu0 }
0x17cf   : > { %v5322_v6 = vsel %vm2208_vm13, %v5321_v4, -inf }
0x17d0   : > { %5323 = vmax.xlane.f32.xlu1 %v5322_v6  ;;  %v5484_v7 = vpop.f32.mrb[44].mxu0 }
0x17d1   : > { %v5488_v8 = vmul.f32 0.5, %v5484_v7  ;;  %v7687_v9 = vpop.f32.mrb[45].mxu0 }
0x17d3   : > { %v5489_v10 = vsel %vm2208_vm13, %v5488_v8, -inf }
0x17d4   : > { %5490 = vmax.xlane.f32.xlu0 %v5489_v10  ;;  %v5650_v11 = vpop.f32.mrb[46].mxu0 }
0x17d5   : > { %v5654_v55 = vmul.f32 0.5, %v5650_v11  ;;  %v7697_v12 = vpop.f32.mrb[47].mxu0 }
0x17d7   : > { %v5655_v13 = vsel %vm2208_vm13, %v5654_v55, -inf }
0x17d8   : > { %5656 = vmax.xlane.f32.xlu0 %v5655_v13  ;;  %v5816_v14 = vpop.f32.mrb[48].mxu0 }
0x17d9   : > { %v5820_v15 = vmul.f32 0.5, %v5816_v14  ;;  %v7707_v16 = vpop.f32.mrb[49].mxu0 }
0x17db   : > { %v5821_v18 = vsel %vm2208_vm13, %v5820_v15, -inf }
0x17dc   : > { %5822 = vmax.xlane.f32.xlu1 %v5821_v18  ;;  %v5982_v19 = vpop.f32.mrb[50].mxu0 }
0x17dd   : > { %v9491_v21 = vmul.f32 0.5, %v5982_v19  ;;  %v7717_v22 = vpop.f32.mrb[51].mxu0 }
0x17df   : > { %v5987_v23 = vsel %vm2208_vm13, %v9491_v21, -inf }
0x17e0   : > { %5988 = vmax.xlane.f32.xlu0 %v5987_v23  ;;  %v6148_v24 = vpop.f32.mrb[52].mxu0 }
0x17e1   : > { %v6152_v25 = vmul.f32 0.5, %v6148_v24  ;;  %v7727_v26 = vpop.f32.mrb[53].mxu0 }
0x17e3   : > { %v6153_v27 = vsel %vm2208_vm13, %v6152_v25, -inf }
0x17e4   : > { %6154 = vmax.xlane.f32.xlu1 %v6153_v27  ;;  %v6314_v28 = vpop.f32.mrb[54].mxu0 }
0x17e5   : > { %v6318_v29 = vmul.f32 0.5, %v6314_v28  ;;  %v7737_v30 = vpop.f32.mrb[55].mxu0 }
0x17e7   : > { %v6319_v31 = vsel %vm2208_vm13, %v6318_v29, -inf }
0x17e8   : > { %6320 = vmax.xlane.f32.xlu0 %v6319_v31 }
0x17ea   : > { %v5161_v32 = vpop.xlane.xlu0 %5160 }
0x17eb   : > { %v5162_v33 = vsub.f32 %v5158_v62, %v5161_v32 }
0x17ed   : > { %v5163_v17 = vmul.f32 1.442695, %v5162_v33 }
0x17ef   : > { %8176 = vpow2.f32 %v5163_v17 }
0x17f5   : > { %5666 = vrot.lane.b32.xlu1 %v9452_v49, %s9831_s7 }
0x17f9   : > { %v8177_v34 = vpop.eup %8176 }
0x17fa   : > { %v5165_v35 = vsel %vm2208_vm13, %v8177_v34, 0.0 }
0x17fe   : > { %5500 = vrot.lane.b32.xlu0 %v9452_v49, %s9830_s4 }
0x1819   : > { %5166 = vadd.xlane.f32.xlu1 %v5165_v35 }
0x182a   : > { %5832 = vrot.lane.b32.xlu1 %v9452_v49, %s9832_s24 }
0x185d   : > { %v5324_v38 = vpop.xlane.xlu1 %5323 }
0x185e   : > { %v5325_v39 = vsub.f32 %v5321_v4, %v5324_v38 }
0x1860   : > { %v5326_v40 = vmul.f32 1.442695, %v5325_v39 }
0x1861   : > { %v5491_v20 = vpop.xlane.xlu0 %5490 }
0x1862   : > { %8178 = vpow2.f32 %v5326_v40  ;;  %v5492_v41 = vsub.f32 %v5488_v8, %v5491_v20 }
0x1864   : > { %v5493_v42 = vmul.f32 1.442695, %v5492_v41 }
0x1865   : > { %v5657_v43 = vpop.xlane.xlu0 %5656 }
0x1866   : > { %8180 = vpow2.f32 %v5493_v42  ;;  %v5658_v44 = vsub.f32 %v5654_v55, %v5657_v43 }
0x1868   : > { %v5659_v45 = vmul.f32 1.442695, %v5658_v44 }
0x1869   : > { %v5823_v46 = vpop.xlane.xlu1 %5822 }
0x186a   : > { %8182 = vpow2.f32 %v5659_v45  ;;  %v5824_v47 = vsub.f32 %v5820_v15, %v5823_v46 }
0x186c   : > { %v8179_v48 = vpop.eup %8178  ;;  %v5825_v50 = vmul.f32 1.442695, %v5824_v47 }
0x186d   : > { %v5328_v52 = vsel %vm2208_vm13, %v8179_v48, 0.0  ;;  %v5989_v0 = vpop.xlane.xlu0 %5988 }
0x186e   : > { %8184 = vpow2.f32 %v5825_v50  ;;  %5329 = vadd.xlane.f32.xlu0 %v5328_v52  ;;  %v5990_v3 = vsub.f32 %v9491_v21, %v5989_v0 }
0x1870   : > { %v8181_v51 = vpop.eup %8180  ;;  %v5991_v5 = vmul.f32 1.442695, %v5990_v3 }
0x1871   : > { %v6155_v53 = vpop.xlane.xlu1 %6154  ;;  %v5495_v54 = vsel %vm2208_vm13, %v8181_v51, 0.0 }
0x1872   : > { %v6156_v56 = vsub.f32 %v6152_v25, %v6155_v53  ;;  %5496 = vadd.xlane.f32.xlu1 %v5495_v54  ;;  %v4864_v53 = vld [vmem:[#allocation8 + $0x28] sm:$0xff] }
0x1874   : > { %v8183_v57 = vpop.eup %8182  ;;  %v6157_v58 = vmul.f32 1.442695, %v6156_v56  ;;  %v4865_v56 = vld [vmem:[#allocation8 + $0x30] sm:$0xff] }
0x1875   : > { %v5661_v59 = vsel %vm2208_vm13, %v8183_v57, 0.0  ;;  %v6321_v4 = vpop.xlane.xlu0 %6320  ;;  %v5667_v8 = vpop.permute.xlu1 %5666 }
0x1876   : > { %8186 = vpow2.f32 %v6157_v58  ;;  %5662 = vadd.xlane.f32.xlu0 %v5661_v59  ;;  %v6322_v6 = vsub.f32 %v6318_v29, %v6321_v4 }
0x1877   : > { %8188 = vpow2.f32 %v5991_v5 }
0x1878   : > { %v8185_v60 = vpop.eup %8184  ;;  %v6323_v7 = vmul.f32 1.442695, %v6322_v6 }
0x1879   : > { %v5827_v61 = vsel %vm2208_vm13, %v8185_v60, 0.0  ;;  %v5501_v15 = vpop.permute.xlu0 %5500 }
0x187a   : > { %5828 = vadd.xlane.f32.xlu1 %v5827_v61  ;;  %8190 = vpow2.f32 %v6323_v7 }
0x1880   : > { %v9508_v62 = vpop.eup %8186 }
0x1881   : > { %v6159_v63 = vsel %vm2208_vm13, %v9508_v62, 0.0  ;;  %v8189_v10 = vpop.eup %8188 }
0x1882   : > { %6160 = vadd.xlane.f32.xlu1 %v6159_v63  ;;  %v5993_v11 = vsel %vm2208_vm13, %v8189_v10, 0.0 }
0x1884   : > { %v9518_v55 = vpop.eup %8190 }
0x1885   : > { %v6325_v12 = vsel %vm2208_vm13, %v9518_v55, 0.0 }
0x188c   : > { %5998 = vrot.lane.b32.xlu0 %v9452_v49, %s9833_s8  ;;  %s9861_s8 = sld [smem:[#allocation38_spill]] }
0x1893   : > { %6164 = vrot.lane.b32.xlu1 %v9452_v49, %s9834_s27  ;;  %s9856_s27 = sld [smem:[#allocation34_spill]] }
0x18a6   : > { %v5167_v9 = vpop.xlane.xlu1 %5166 }
0x18a7   : > { %8192 = vrcp.f32 %v5167_v9 }
0x18aa   : > { %v5833_v16 = vpop.permute.xlu1 %5832 }
0x18ab   : > { %5994 = vadd.xlane.f32.xlu0 %v5993_v11 }
0x18af   : > { %6326 = vadd.xlane.f32.xlu0 %v6325_v12 }
0x18b1   : > { %v8193_v13 = vpop.eup %8192 }
0x18b2   : > { %v5169_v14 = vmul.f32 %v8193_v13, %v8177_v34 }
0x18b4   : > { %7671 = vmatmul.mubr.msk.f32.vlgmr.msra.gmra.mrb[58].mxu1 %vm1793_vm6, %v5169_v14 }
0x18b5   : > { %7679 = vmatpush3.msra.mxu1 %v5335_v37  ;;  %7680 = vmatprep.mubr.msk.f32.mxu1 %vm8407_vm0, %v8408_v2 }
0x18b6   : > { %7688 = vmatprep.subr.mxu1 %v8408_v2 }
0x18c5   : > { %6330 = vrot.lane.b32.xlu0 %v9452_v49, %s9835_s30 }
0x18fb   : > { %v5330_v18 = vpop.xlane.xlu0 %5329 }
0x18fc   : > { %8194 = vrcp.f32 %v5330_v18 }
0x18ff   : > { %v5497_v19 = vpop.xlane.xlu1 %5496 }
0x1900   : > { %8196 = vrcp.f32 %v5497_v19 }
0x1903   : > { %v5663_v21 = vpop.xlane.xlu0 %5662 }
0x1904   : > { %8198 = vrcp.f32 %v5663_v21 }
0x1906   : > { %v8195_v22 = vpop.eup %8194 }
0x1907   : > { %v5332_v23 = vmul.f32 %v8195_v22, %v8179_v48  ;;  %v5829_v24 = vpop.xlane.xlu1 %5828  ;;  %v5999_v30 = vpop.permute.xlu0 %5998 }
0x1908   : > { %8200 = vrcp.f32 %v5829_v24 }
0x1909   : > { %7681 = vmatmul.mubr.msk.f32.vlgmr.msra.gmra.mrb[60].mxu1 %vm1793_vm6, %v5332_v23 }
0x190a   : > { %v8197_v25 = vpop.eup %8196  ;;  %7689 = vmatpush3.msra.mxu1 %v5501_v15  ;;  %7690 = vmatprep.mubr.msk.f32.mxu1 %vm8407_vm0, %v8408_v2 }
0x190b   : > { %v5499_v49 = vmul.f32 %v8197_v25, %v8181_v51  ;;  %7698 = vmatprep.subr.mxu1 %v8408_v2  ;;  %v4863_v51 = vld [vmem:[#allocation8 + $0x20] sm:$0xff] }
0x190c   : > { %v7932_v54 = vpack.c.bf16 %v4864_v53, %v4863_v51  ;;  %v7058_v51 = vld [vmem:[%s9712_s18 + $0xe8] sm:$0xff] }
0x190d   : > { %7691 = vmatmul.mubr.msk.f32.vlgmr.msra.gmra.mrb[62].mxu1 %vm1793_vm6, %v5499_v49 }
0x190e   : > { %v8199_v26 = vpop.eup %8198  ;;  %7699 = vmatpush3.msra.mxu1 %v5667_v8  ;;  %7700 = vmatprep.mubr.msk.f32.mxu1 %vm8407_vm0, %v8408_v2 }
0x190f   : > { %v5665_v27 = vmul.f32 %v8199_v26, %v8183_v57  ;;  %7708 = vmatprep.subr.mxu1 %v8408_v2  ;;  %v6161_v31 = vpop.xlane.xlu1 %6160  ;;  %7933 = vmatpush3.bf16.msra.mxu0 %v7932_v54  ;;  %v4866_v57 = vld [vmem:[#allocation8 + $0x38] sm:$0xff] }
0x1910   : > { %7934 = vmatprep.subr.bf16.mxu0 %v8406_v1  ;;  %v7935_v58 = vpack.c.bf16 %v4866_v57, %v4865_v56 }
0x1911   : > { %7701 = vmatmul.mubr.msk.f32.vlgmr.msra.gmra.mrb[64].mxu1 %vm1793_vm6, %v5665_v27 }
0x1912   : > { %v8201_v28 = vpop.eup %8200  ;;  %7709 = vmatpush3.msra.mxu1 %v5833_v16  ;;  %7710 = vmatprep.mubr.msk.f32.mxu1 %vm8407_vm0, %v8408_v2 }
0x1913   : > { %v5831_v29 = vmul.f32 %v8201_v28, %v8185_v60  ;;  %7718 = vmatprep.subr.mxu1 %v8408_v2  ;;  %v6165_v37 = vpop.permute.xlu1 %6164  ;;  %7936 = vmatpush3.bf16.msra.mxu0 %v7935_v58  ;;  %v6535_v28 = vld [vmem:[#allocation10 + $0x20] sm:$0xff] }
0x1914   : > { %7943 = vmatprep.subr.bf16.mxu0 %v8406_v1 }
0x1915   : > { %7711 = vmatmul.mubr.msk.f32.vlgmr.msra.gmra.mrb[66].mxu1 %vm1793_vm6, %v5831_v29  ;;  %v6536_v29 = vld [vmem:[#allocation10 + $0x28] sm:$0xff] }
0x1916   : > { %7719 = vmatpush3.msra.mxu1 %v5999_v30  ;;  %7720 = vmatprep.mubr.msk.f32.mxu1 %vm8407_vm0, %v8408_v2  ;;  %v7938_v30 = vpack.c.bf16 %v6536_v29, %v6535_v28 }
0x1917   : > { %7728 = vmatprep.subr.mxu1 %v8408_v2 }
0x1938   : > { %v5995_v32 = vpop.xlane.xlu0 %5994 }
0x1939   : > { %8202 = vrcp.f32 %v5995_v32  ;;  %v6538_v32 = vld [vmem:[#allocation10 + $0x38] sm:$0xff] }
0x193a   : > { %8204 = vrcp.f32 %v6161_v31  ;;  %v6537_v31 = vld [vmem:[#allocation10 + $0x30] sm:$0xff] }
0x193c   : > { %v6327_v33 = vpop.xlane.xlu0 %6326 }
0x193d   : > { %8206 = vrcp.f32 %v6327_v33  ;;  %v7941_v33 = vpack.c.bf16 %v6538_v32, %v6537_v31  ;;  %v7063_v31 = vld [vmem:[%s9848_s17 + $0x1] sm:$0x1] }
0x1940   : > { %v6331_v40 = vpop.permute.xlu0 %6330 }
0x1943   : > { %v8203_v17 = vpop.eup %8202 }
0x1944   : > { %v5997_v34 = vmul.f32 %v8203_v17, %v8189_v10  ;;  %v8205_v35 = vpop.eup %8204  ;;  %v7046_v17 = vld [vmem:[%s9712_s18 + $0x88] sm:$0xff] }
0x1945   : > { %v6163_v38 = vmul.f32 %v8205_v35, %v9508_v62 }
0x1946   : > { %7721 = vmatmul.mubr.msk.f32.vlgmr.msra.gmra.mrb[68].mxu1 %vm1793_vm6, %v5997_v34  ;;  %v7047_v34 = vld [vmem:[%s9712_s18 + $0x90] sm:$0xff] }
0x1947   : > { %7729 = vmatpush3.msra.mxu1 %v6165_v37  ;;  %7730 = vmatprep.mubr.msk.f32.mxu1 %vm8407_vm0, %v8408_v2  ;;  %v8207_v39 = vpop.eup %8206  ;;  %v7048_v37 = vld [vmem:[%s9712_s18 + $0x98] sm:$0xff] }
0x1948   : > { %7738 = vmatprep.subr.mxu1 %v8408_v2  ;;  %v6329_v20 = vmul.f32 %v8207_v39, %v9518_v55  ;;  %v7049_v39 = vld [vmem:[%s9712_s18 + $0xa0] sm:$0xff] }
0x194a   : > { %7731 = vmatmul.mubr.msk.f32.vlgmr.msra.gmra.mrb[70].mxu1 %vm1793_vm6, %v6163_v38  ;;  %v7947_v38 = vpack.c.bf16 %v7048_v37, %v7047_v34 }
0x194b   : > { %7739 = vmatpush3.msra.mxu1 %v6331_v40  ;;  %7740 = vmatprep.mubr.msk.f32.mxu1 %vm8407_vm0, %v8408_v2  ;;  %v7050_v40 = vld [vmem:[%s9712_s18 + $0xa8] sm:$0xff] }
0x194c   : > { %7937 = vmatprep.subr.bf16.mxu1 %v8406_v1 }
0x194e   : > { %7741 = vmatmul.mubr.msk.f32.vlgmr.msra.gmra.mrb[72].mxu1 %vm1793_vm6, %v6329_v20  ;;  %v7950_v20 = vpack.c.bf16 %v7050_v40, %v7049_v39 }
0x194f   : > { %7762 = vmatprep.mubr.msk.f32.mxu1 %vm8407_vm0, %v8408_v2  ;;  %7939 = vmatpush3.bf16.msra.mxu1 %v7938_v30 }
0x1950   : > { %7940 = vmatprep.subr.bf16.mxu1 %v8406_v1 }
0x1953   : > { %7942 = vmatpush3.bf16.msra.mxu1 %v7941_v33 }
0x1954   : > { %7967 = vmatprep.subr.bf16.mxu1 %v8406_v1 }
0x1987   : > { %v5239_v41 = vpop.f32.mrb[58].mxu1 }
0x1988   : > { %v7672_v42 = vpop.f32.mrb[59].mxu1 }
0x1989   : > { %v7052_v42 = vld [vmem:[%s9712_s18 + $0xb8] sm:$0xff] }
0x19dc   : > { %v5406_v43 = vpop.f32.mrb[60].mxu1 }
0x19dd   : > { %6407 = vrot.lane.b32.xlu1 %v5406_v43, %s9836_s2  ;;  %v7682_v44 = vpop.f32.mrb[61].mxu1 }
0x19de   : > { %v7053_v44 = vld [vmem:[%s9712_s18 + $0xc0] sm:$0xff] }
0x19e0   : > { %v5572_v45 = vpop.f32.mrb[62].mxu1 }
0x19e1   : > { %6411 = vrot.lane.b32.xlu0 %v5572_v45, %s9837_s11  ;;  %v7692_v46 = vpop.f32.mrb[63].mxu1  ;;  %v7054_v45 = vld [vmem:[%s9712_s18 + $0xc8] sm:$0xff]  ;;  %s9859_s11 = sld [smem:[#allocation40_spill]] }
0x19e2   : > { %v7956_v46 = vpack.c.bf16 %v7054_v45, %v7053_v44 }
0x19e4   : > { %v5738_v47 = vpop.f32.mrb[64].mxu1 }
0x19e5   : > { %6415 = vrot.lane.b32.xlu1 %v5738_v47, %s9838_s16  ;;  %v7702_v48 = vpop.f32.mrb[65].mxu1  ;;  %v7055_v47 = vld [vmem:[%s9712_s18 + $0xd0] sm:$0xff] }
0x19e6   : > { %v7056_v48 = vld [vmem:[%s9712_s18 + $0xd8] sm:$0xff] }
0x19e8   : > { %v5904_v50 = vpop.f32.mrb[66].mxu1 }
0x19e9   : > { %6419 = vrot.lane.b32.xlu0 %v5904_v50, %s9839_s22  ;;  %v7712_v52 = vpop.f32.mrb[67].mxu1  ;;  %v7959_v50 = vpack.c.bf16 %v7056_v48, %v7055_v47  ;;  %s9860_s22 = sld [smem:[#allocation16_spill]] }
0x19ea   : > { %v7057_v52 = vld [vmem:[%s9712_s18 + $0xe0] sm:$0xff] }
0x19eb   : > { %v7962_v53 = vpack.c.bf16 %v7058_v51, %v7057_v52 }
0x19ef   : > { %p806_p11 = scmp.lt.s32.totalorder %s9860_s22, 1 }
0x19f1   : > { %s9868_s22 = smov (!%p806_p11, %s9860_s22), 1 }
0x19f2   : > { %s808_s10 = scalar_lea.vmem %s9862_s0, %s9868_s22 }
0x1a19   : > { %v6070_v59 = vpop.f32.mrb[68].mxu1 }
0x1a1a   : > { %6423 = vrot.lane.b32.xlu1 %v6070_v59, %s9840_s5  ;;  %v7722_v60 = vpop.f32.mrb[69].mxu1  ;;  %v7041_v59 = vld [vmem:[%s9708_s14 + $0x1] sm:$0x1] }
0x1a1d   : > { %v6236_v61 = vpop.f32.mrb[70].mxu1 }
0x1a1e   : > { %6427 = vrot.lane.b32.xlu0 %v6236_v61, %s9841_s6  ;;  %v7732_v62 = vpop.f32.mrb[71].mxu1  ;;  %v7042_v61 = vld [vmem:[%s9856_s27 + $0x1] sm:$0x1] }
0x1a21   : > { %v6402_v63 = vpop.f32.mrb[72].mxu1 }
0x1a22   : > { %6431 = vrot.lane.b32.xlu1 %v6402_v63, %s9842_s28  ;;  %v7742_v0 = vpop.f32.mrb[73].mxu1  ;;  %s9855_s28 = sld [smem:[#allocation33_spill]] }
0x1a23   : > { %v7059_v0 = vld [vmem:[%s9712_s18 + $0xf0] sm:$0xff] }
0x1a28   : > { %v7012_v16 = vld [vmem:[%s9855_s28 + $0x1] sm:$0x1] }
0x1a4f   : > { %v6408_v3 = vpop.permute.xlu1 %6407 }
0x1a50   : > { %v6434_v7 = vsel %vm1791_vm5, %v5239_v41, %v6408_v3  ;;  %v7051_v41 = vld [vmem:[%s9712_s18 + $0xb0] sm:$0xff]  ;;  %v7060_v3 = vld [vmem:[%s9712_s18 + $0xf8] sm:$0xff] }
0x1a51   : > { %v7953_v43 = vpack.c.bf16 %v7052_v42, %v7051_v41 }
0x1a53   : > { %v6412_v4 = vpop.permute.xlu0 %6411 }
0x1a54   : > { %v6435_v8 = vsel %vm1793_vm6, %v6434_v7, %v6412_v4  ;;  %v7965_v4 = vpack.c.bf16 %v7060_v3, %v7059_v0 }
0x1a57   : > { %v6416_v5 = vpop.permute.xlu1 %6415 }
0x1a58   : > { %v6436_v10 = vsel %vm1795_vm7, %v6435_v8, %v6416_v5  ;;  %v7043_v5 = vld [vmem:[%s9857_s13 + $0x1] sm:$0x1] }
0x1a5b   : > { %v6420_v6 = vpop.permute.xlu0 %6419 }
0x1a5c   : > { %v6437_v55 = vsel %vm1797_vm8, %v6436_v10, %v6420_v6 }
0x1a8c   : > { %v6424_v9 = vpop.permute.xlu1 %6423 }
0x1a8d   : > { %v6438_v12 = vsel %vm1799_vm9, %v6437_v55, %v6424_v9 }
0x1a90   : > { %v6428_v11 = vpop.permute.xlu0 %6427 }
0x1a91   : > { %v6439_v13 = vsel %vm1801_vm10, %v6438_v12, %v6428_v11 }
0x1a94   : > { %v6432_v14 = vpop.permute.xlu1 %6431 }
0x1a95   : > { %v6440_v15 = vsel %vm1803_vm11, %v6439_v13, %v6432_v14 }
0x1a96   : > { %7752 = vmatmul.mubr.msk.f32.vlgmr.msra.gmra.mrb[56].mxu0 %vm828_vm1, %v6440_v15 }
0x1a97   : > { %7797 = vmatprep.mubr.msk.f32.mxu0 %vm8407_vm0, %v8408_v2 }
0x1b69   : > { %v6510_v18 = vpop.f32.mrb[56].mxu0 }
0x1b6a   : > { %v6511_v19 = vadd.f32 %v7012_v16, %v6510_v18  ;;  %v7753_v21 = vpop.f32.mrb[57].mxu0 }
0x1b6b   : > { %v6724_v21 = vld [vmem:[%s9859_s11] sm:$0xff] }
0x1b6c   : > { %v6514_v22 = vadd.f32 %v6511_v19, %v9424_v36  ;;  %v7045_v36 = vld [vmem:[%s9712_s18 + $0x80] sm:$0xff] }
0x1b6d   : > { %v7944_v35 = vpack.c.bf16 %v7046_v17, %v7045_v36  ;;  %v6728_v36 = vld [vmem:[#allocation2] sm:$0x1] }
0x1b6e   : > { %v6519_v23 = vsel %vm1881_vm12, %v6514_v22, 0.0 }
0x1b6f   : > { %6520 = vadd.xlane.f32.xlu0 %v6519_v23  ;;  %7945 = vmatpush3.bf16.msra.mxu0 %v7944_v35 }
0x1b70   : > { %7946 = vmatprep.subr.bf16.mxu0 %v8406_v1 }
0x1b73   : > { %7948 = vmatpush3.bf16.msra.mxu0 %v7947_v38 }
0x1b74   : > { %7949 = vmatprep.subr.bf16.mxu0 %v8406_v1 }
0x1b77   : > { %7951 = vmatpush3.bf16.msra.mxu0 %v7950_v20 }
0x1b78   : > { %7952 = vmatprep.subr.bf16.mxu0 %v8406_v1 }
0x1b7b   : > { %7954 = vmatpush3.bf16.msra.mxu0 %v7953_v43 }
0x1b7c   : > { %7955 = vmatprep.subr.bf16.mxu0 %v8406_v1 }
0x1b7f   : > { %7957 = vmatpush3.bf16.msra.mxu0 %v7956_v46 }
0x1b80   : > { %7958 = vmatprep.subr.bf16.mxu0 %v8406_v1 }
0x1b83   : > { %7960 = vmatpush3.bf16.msra.mxu0 %v7959_v50 }
0x1b84   : > { %7961 = vmatprep.subr.bf16.mxu0 %v8406_v1 }
0x1b87   : > { %7963 = vmatpush3.bf16.msra.mxu0 %v7962_v53 }
0x1b88   : > { %7964 = vmatprep.subr.bf16.mxu0 %v8406_v1 }
0x1b8b   : > { %7966 = vmatpush3.bf16.msra.mxu0 %v7965_v4 }
0x1bfc   : > { %v6521_v24 = vpop.xlane.xlu0 %6520 }
0x1bfd   : > { %v6522_v25 = vmul.f32 0.03125, %v6521_v24  ;;  %v6726_v24 = vld [vmem:[%s9859_s11 + $0x10] sm:$0xff] }
0x1bff   : > { %v6523_v49 = vsub.f32 %v6514_v22, %v6522_v25  ;;  %v6725_v22 = vld [vmem:[%s9859_s11 + $0x8] sm:$0xff]  ;;  %v6727_v25 = vld [vmem:[%s9859_s11 + $0x18] sm:$0xff] }
0x1c00   : > { %v7968_v23 = vpack.c.bf16 %v6725_v22, %v6724_v21 }
0x1c01   : > { %v6524_v26 = vmul.f32 %v6523_v49, %v6523_v49 }
0x1c03   : > { %v6525_v27 = vsel %vm1881_vm12, %v6524_v26, 0.0 }
0x1c04   : > { %6526 = vadd.xlane.f32.xlu1 %v6525_v27 }
0x1c91   : > { %v6527_v54 = vpop.xlane.xlu1 %6526 }
0x1c92   : > { %v6528_v56 = vmul.f32 0.03125, %v6527_v54 }
0x1c94   : > { %v6529_v57 = vadd.f32 1e-05, %v6528_v56 }
0x1c96   : > { %8208 = vrsqrt.f32 %v6529_v57 }
0x1ca0   : > { %v8209_v58 = vpop.eup %8208 }
0x1ca1   : > { %v6531_v60 = vmul.f32 %v8209_v58, %v6523_v49  ;;  %v7971_v49 = vpack.c.bf16 %v6727_v25, %v6726_v24 }
0x1ca3   : > { %v6532_v62 = vmul.f32 %v7041_v59, %v6531_v60 }
0x1ca5   : > { %v6533_v63 = vadd.f32 %v7042_v61, %v6532_v62 }
0x1ca7   : > { %7763 = vmatmul.mubr.msk.f32.vlgmr.msra.gmra.mrb[74].mxu1 %vm828_vm1, %v6533_v63 }
0x1ca8   : > { %7808 = vmatprep.mubr.msk.f32.mxu1 %vm8407_vm0, %v8408_v2  ;;  %v7061_v2 = vld [vmem:[%s9858_s15 + $0x1] sm:$0x1]  ;;  %7969 = vmatpush3.bf16.msra.mxu1 %v7968_v23 }
0x1ca9   : > { %7970 = vmatprep.subr.bf16.mxu1 %v8406_v1  ;;  %v7062_v1 = vld [vmem:[%s9861_s8 + $0x1] sm:$0x1] }
0x1cac   : > { %7972 = vmatpush3.bf16.msra.mxu1 %v7971_v49 }
0x1d7a   : > { %v6610_v6 = vpop.f32.mrb[74].mxu1 }
0x1d7b   : > { %v6611_v7 = vadd.f32 %v7043_v5, %v6610_v6  ;;  %v7764_v8 = vpop.f32.mrb[75].mxu1 }
0x1d7d   : > { %v6614_v9 = vmax.f32 %v6611_v7, 0.0 }
0x1d7f   : > { %7798 = vmatmul.mubr.f32.vlgmr.msra.gmra.mrb[58].mxu0 %v6614_v9 }
0x1e52   : > { %v6700_v10 = vpop.f32.mrb[58].mxu0 }
0x1e53   : > { %v6701_v11 = vadd.f32 %v7061_v2, %v6700_v10  ;;  %v7799_v55 = vpop.f32.mrb[59].mxu0 }
0x1e55   : > { %v6704_v12 = vadd.f32 %v6701_v11, %v6533_v63 }
0x1e57   : > { %v6709_v13 = vsel %vm1881_vm12, %v6704_v12, 0.0 }
0x1e58   : > { %6710 = vadd.xlane.f32.xlu0 %v6709_v13 }
0x1ee5   : > { %v6711_v14 = vpop.xlane.xlu0 %6710 }
0x1ee6   : > { %v6712_v15 = vmul.f32 0.03125, %v6711_v14 }
0x1ee8   : > { %v6713_v16 = vsub.f32 %v6704_v12, %v6712_v15 }
0x1eea   : > { %v6714_v18 = vmul.f32 %v6713_v16, %v6713_v16 }
0x1eec   : > { %v6715_v19 = vsel %vm1881_vm12, %v6714_v18, 0.0 }
0x1eed   : > { %6716 = vadd.xlane.f32.xlu0 %v6715_v19 }
0x1f7a   : > { %v6717_v26 = vpop.xlane.xlu0 %6716 }
0x1f7b   : > { %v6718_v27 = vmul.f32 0.03125, %v6717_v26 }
0x1f7d   : > { %v6719_v28 = vadd.f32 1e-05, %v6718_v27 }
0x1f7f   : > { %8210 = vrsqrt.f32 %v6719_v28 }
0x1f89   : > { %v8211_v29 = vpop.eup %8210 }
0x1f8a   : > { %v6721_v30 = vmul.f32 %v8211_v29, %v6713_v16 }
0x1f8c   : > { %v6722_v32 = vmul.f32 %v7062_v1, %v6721_v30 }
0x1f8e   : > { %v6723_v33 = vadd.f32 %v7063_v31, %v6722_v32 }
0x1f90   : > { %7809 = vmatmul.mubr.msk.f32.vlgmr.msra.gmra.mrb[76].mxu1 %vm828_vm1, %v6723_v33 }
0x2063   : > { %v6798_v17 = vpop.f32.mrb[76].mxu1 }
0x2064   : > { %v6799_v34 = vadd.f32 %v6798_v17, %v6728_v36  ;;  %v7810_v35 = vpop.f32.mrb[77].mxu1 }
0x2066   : > { %6803 = vst.msk [vmem:[%s808_s10] sm:$0x1] %vm6802_vm14, %v6799_v34 }
0x2067 PF: > { %s9863_s2 = sld [smem:[#allocation17_spill]]  ;;  %s9864_s27 = sld [smem:[#allocation14_spill]] }
0x2068   : > { %s9865_s28 = sld [smem:[#allocation15_spill]]  ;;  %s9866_s6 = sld [smem:[#allocation18_spill]] }
0x206d   : > { %p38_p1 = scmp.ge.s32.totalorder %s9863_s2, 4  }
0x206f   :  { %40 = sbr.rel (!%p38_p1) target bundleno = 28 (0x1c), region = 192 }
0x2076   :  { %6821 = vsyncpa [#allocation4], 1 }
0x2077   :  { %6823 = vsyncpa [#allocation4 + $0x1], 1 }
0x2078   :  { %6824 = vsyncpa [#allocation6], 1 }
0x2079   :  { %6825 = vsyncpa [#allocation9], 1 }

</bundles_post_ra>
